<compile_context>
chip_gen: v7x
topology: tpu7x:2x2x1
jax: 0.10.0
libtpu: 0.0.40
codegen_flags: <defaults>
</compile_context>

<pallas_src>
import math
import functools

import jax
import jax.numpy as jnp
from jax.experimental import pallas as pl
from jax.experimental.pallas import tpu as pltpu


def encoder_layer_kernel(x_ref,
                         wq_ref, bq_ref, wkv_ref, bkv_ref,
                         wo_ref, bo_ref,
                         w1_ref, b1_ref, w2_ref, b2_ref,
                         g1_ref, be1_ref, g2_ref, be2_ref,
                         out_ref, attn_ref,
                         kh_ref, vh_ref,
                         *, num_heads, d_k, d_model, q_tile):
    S = x_ref.shape[1]
    bf16 = jnp.bfloat16
    f32 = jnp.float32
    t = pl.program_id(1)

    # ---- fused K/V projection + head split: ONCE per batch element ----------
    @pl.when(t == 0)
    def _():
        xf_b = x_ref[0].astype(bf16)                                # (S, D)
        kv = jnp.dot(xf_b, wkv_ref[...],
                     preferred_element_type=f32) + bkv_ref[...]     # (S, 2D) f32
        k = kv[:, :d_model]
        v = kv[:, d_model:]
        # cast to bf16 immediately; only the bf16 head-split slabs stay live
        kh_ref[...] = k.reshape(S, num_heads, d_k).transpose(1, 0, 2).astype(bf16)
        vh_ref[...] = v.reshape(S, num_heads, d_k).transpose(1, 0, 2).astype(bf16)

    # ---- query tile sliced from the resident full-sequence x ----------------
    q0 = pl.multiple_of(t * q_tile, q_tile)
    x_tile = x_ref[0, pl.ds(q0, q_tile), :]                         # (Tq, D) f32

    q = jnp.dot(x_tile.astype(bf16), wq_ref[...],
                preferred_element_type=f32) + bq_ref[...]           # (Tq, D) f32
    q = q * (1.0 / math.sqrt(d_k))                                  # fold 1/sqrt(dk) into Q
    qh = q.reshape(q_tile, num_heads, d_k).transpose(1, 0, 2).astype(bf16)  # (H,Tq,dk)

    # ---- scaled dot-product attention, all heads batched ---------------------
    # TODO(synk): for very large H*q_tile*S on v7x (64 MiB VMEM), stream head
    # groups / K-tiles (online softmax) to bound the live (H, Tq, S) f32 slab.
    scores = jnp.einsum('hqd,hkd->hqk', qh, kh_ref[...],
                        preferred_element_type=f32)                 # (H, Tq, S)
    m = jnp.max(scores, axis=-1, keepdims=True)
    e = jnp.exp(scores - m)                                         # f32 for torch parity
    attn = e * pl.reciprocal(jnp.sum(e, axis=-1, keepdims=True), approx=True)
    attn_ref[0] = attn.astype(attn_ref.dtype)                       # lane-dense bf16 slab

    ctx = jnp.einsum('hqk,hkd->hqd', attn.astype(bf16), vh_ref[...],
                     preferred_element_type=f32)                    # (H, Tq, dk) f32

    # ---- output projection fused over heads (no transpose+reshape copy) -----
    # proj[q, :] = sum_h ctx[h] @ Wo[h]   (== einsum('hqd,hdD->qD'))
    acc = jnp.zeros((q_tile, d_model), f32)
    for h in range(num_heads):                                      # small static unroll
        acc = acc + jnp.dot(ctx[h].astype(bf16), wo_ref[h],
                            preferred_element_type=f32)
    proj = acc + bo_ref[...]

    # ---- residual + LayerNorm1 (f32 VPU math; dropout == identity) ----------
    h1 = x_tile + proj
    mu1 = jnp.mean(h1, axis=-1, keepdims=True)
    var1 = jnp.mean(jnp.square(h1 - mu1), axis=-1, keepdims=True)
    n1 = (h1 - mu1) * jax.lax.rsqrt(var1 + 1e-5) * g1_ref[...] + be1_ref[...]

    # ---- feed-forward + residual + LayerNorm2 --------------------------------
    f = jnp.dot(n1.astype(bf16), w1_ref[...],
                preferred_element_type=f32) + b1_ref[...]
    f = jnp.maximum(f, 0.0)
    f = jnp.dot(f.astype(bf16), w2_ref[...],
                preferred_element_type=f32) + b2_ref[...]
    h2 = n1 + f                                                     # dropout == identity
    mu2 = jnp.mean(h2, axis=-1, keepdims=True)
    var2 = jnp.mean(jnp.square(h2 - mu2), axis=-1, keepdims=True)
    n2 = (h2 - mu2) * jax.lax.rsqrt(var2 + 1e-5) * g2_ref[...] + be2_ref[...]

    out_ref[0] = n2.astype(out_ref.dtype)


def _pick_vmem_limit_bytes():
    # v7x: 64 MiB physical VMEM per TC -> request 48 MiB, leave compiler headroom.
    # v5e/v6e: 128 MiB physical -> allow a larger scoped budget for bigger tiles.
    try:
        kind = jax.devices()[0].device_kind.lower()
    except Exception:
        kind = ""
    if "v7" in kind or "7x" in kind:
        return 48 * 1024 * 1024
    if "v5" in kind or "v6" in kind:
        return 100 * 1024 * 1024
    return 48 * 1024 * 1024


def encoder_layer(x, params, *, num_heads, q_tile=None,
                  attn_dtype=jnp.bfloat16, single_buffer_weights=True):
    B, S, D = x.shape
    d_ff = params["w1"].shape[1]
    assert D % num_heads == 0
    d_k = D // num_heads
    bf16 = jnp.bfloat16

    # Query-tile size: with K/V hoisted, bigger tiles amortize per-step overhead
    # and fill the 256-tall MXU on v6e/v7x.  Fall back to whole-S for small S.
    if q_tile is None:
        if S % 256 == 0:
            q_tile = 256
        elif S % 128 == 0:
            q_tile = 128
        else:
            q_tile = S
    assert S % q_tile == 0
    n_qt = S // q_tile

    # Pre-cast weights to bf16 (halves weight HBM traffic / VMEM residency).
    # Biases and LayerNorm params stay f32 (added to f32 accumulators).
    wq = params["wq"].astype(bf16)
    wkv = jnp.concatenate([params["wk"], params["wv"]], axis=1).astype(bf16)  # (D, 2D)
    bkv = jnp.concatenate([params["bk"], params["bv"]], axis=1)               # (1, 2D)
    wo_h = params["wo"].reshape(num_heads, d_k, D).astype(bf16)               # (H, dk, D)
    w1 = params["w1"].astype(bf16)
    w2 = params["w2"].astype(bf16)

    # Constant (grid-invariant) operands: single-buffer them — double buffering
    # blocks whose index_map never changes is pure VMEM waste.
    w_mode = pl.Buffered(1) if single_buffer_weights else None

    def const_spec(shape):
        nd = len(shape)
        return pl.BlockSpec(shape, lambda *_: (0,) * nd, pipeline_mode=w_mode)

    in_specs = [
        pl.BlockSpec((1, S, D), lambda b, t: (b, 0, 0)),       # x (full seq, resident)
        const_spec((D, D)), const_spec((1, D)),                # Wq, bq
        const_spec((D, 2 * D)), const_spec((1, 2 * D)),        # Wkv, bkv (fused)
        const_spec((num_heads, d_k, D)), const_spec((1, D)),   # Wo (head-split), bo
        const_spec((D, d_ff)), const_spec((1, d_ff)),          # W1, b1
        const_spec((d_ff, D)), const_spec((1, D)),             # W2, b2
        const_spec((1, D)), const_spec((1, D)),                # ln1 gamma, beta
        const_spec((1, D)), const_spec((1, D)),                # ln2 gamma, beta
    ]
    out_specs = [
        pl.BlockSpec((1, q_tile, D), lambda b, t: (b, t, 0)),
        pl.BlockSpec((1, num_heads, q_tile, S), lambda b, t: (b, 0, t, 0)),
    ]
    out_shape = [
        jax.ShapeDtypeStruct((B, S, D), x.dtype),
        jax.ShapeDtypeStruct((B, num_heads, S, S), attn_dtype),
    ]
    scratch_shapes = [
        pltpu.VMEM((num_heads, S, d_k), bf16),   # K (head-split), per-batch carry
        pltpu.VMEM((num_heads, S, d_k), bf16),   # V (head-split), per-batch carry
    ]

    kernel = functools.partial(encoder_layer_kernel, num_heads=num_heads,
                               d_k=d_k, d_model=D, q_tile=q_tile)
    return pl.pallas_call(
        kernel,
        grid=(B, n_qt),
        in_specs=in_specs,
        out_specs=out_specs,
        out_shape=out_shape,
        scratch_shapes=scratch_shapes,
        compiler_params=pltpu.CompilerParams(
            # t must be "arbitrary": the K/V scratch computed at t == 0 carries
            # across the query tiles of the same batch element.
            dimension_semantics=("parallel", "arbitrary"),
            vmem_limit_bytes=_pick_vmem_limit_bytes()),
    )(x,
      wq, params["bq"], wkv, bkv, wo_h, params["bo"],
      w1, params["b1"], w2, params["b2"],
      params["ln1_g"], params["ln1_b"], params["ln2_g"], params["ln2_b"])


def reference_encoder_layer(x, params, *, num_heads):
    """Plain-JAX f32 reference mirroring the PyTorch forward (dropout = identity)."""
    B, S, D = x.shape
    d_k = D // num_heads

    def lin(v, w, b):
        return v @ w + b[0]

    q = lin(x, params["wq"], params["bq"]).reshape(B, S, num_heads, d_k).transpose(0, 2, 1, 3)
    k = lin(x, params["wk"], params["bk"]).reshape(B, S, num_heads, d_k).transpose(0, 2, 1, 3)
    v = lin(x, params["wv"], params["bv"]).reshape(B, S, num_heads, d_k).transpose(0, 2, 1, 3)
    scores = jnp.einsum("bhqd,bhkd->bhqk", q, k) / math.sqrt(d_k)
    attn = jax.nn.softmax(scores, axis=-1)
    o = jnp.einsum("bhqk,bhkd->bhqd", attn, v).transpose(0, 2, 1, 3).reshape(B, S, D)
    o = lin(o, params["wo"], params["bo"])

    def ln(v, g, b):
        mu = v.mean(-1, keepdims=True)
        var = ((v - mu) ** 2).mean(-1, keepdims=True)
        return (v - mu) / jnp.sqrt(var + 1e-5) * g[0] + b[0]

    x1 = ln(x + o, params["ln1_g"], params["ln1_b"])
    f = lin(jnp.maximum(lin(x1, params["w1"], params["b1"]), 0.0),
            params["w2"], params["b2"])
    x2 = ln(x1 + f, params["ln2_g"], params["ln2_b"])
    return x2, attn


if __name__ == "__main__":
    B, S, D, H, d_ff = 2, 8, 32, 4, 64

    key = jax.random.PRNGKey(0)
    keys = jax.random.split(key, 16)
    r = lambda k, shape: (0.1 * jax.random.normal(k, shape)).astype(jnp.float32)

    # Linear weights stored as (in, out); biases as (1, out).  LayerNorm uses
    # PyTorch default init (gamma=1, beta=0).
    params = {
        "wq": r(keys[0], (D, D)), "bq": r(keys[1], (1, D)),
        "wk": r(keys[2], (D, D)), "bk": r(keys[3], (1, D)),
        "wv": r(keys[4], (D, D)), "bv": r(keys[5], (1, D)),
        "wo": r(keys[6], (D, D)), "bo": r(keys[7], (1, D)),
        "w1": r(keys[8], (D, d_ff)), "b1": r(keys[9], (1, d_ff)),
        "w2": r(keys[10], (d_ff, D)), "b2": r(keys[11], (1, D)),
        "ln1_g": jnp.ones((1, D), jnp.float32), "ln1_b": jnp.zeros((1, D), jnp.float32),
        "ln2_g": jnp.ones((1, D), jnp.float32), "ln2_b": jnp.zeros((1, D), jnp.float32),
    }

    x = jax.random.normal(keys[12], (B, S, D), dtype=jnp.float32)

    try:
        out, attn = encoder_layer(x, params, num_heads=H)
    except Exception:
        # Fallback for JAX builds without BlockSpec.pipeline_mode / Buffered(1):
        # identical math, default double-buffered constant operands.
        out, attn = encoder_layer(x, params, num_heads=H, single_buffer_weights=False)
    jax.block_until_ready(out)
    jax.block_until_ready(attn)

    ref_out, ref_attn = reference_encoder_layer(x, params, num_heads=H)
    # Kernel uses bf16 MXU operands (f32 accumulation), approx reciprocal and a
    # bf16 attention-prob output, so compare with mixed-precision tolerance.
    assert jnp.allclose(out, ref_out, atol=2e-2, rtol=2e-2), "output mismatch"
    assert jnp.allclose(attn.astype(jnp.float32), ref_attn, atol=2e-2, rtol=2e-2), "attn mismatch"

    # TODO(synk): dropout (training mode) needs RNG state threaded into the
    # kernel; implemented as identity (eval-mode semantics).  mask=None only.
    print("KERNEL_OK")
</pallas_src>

<mosaic_0001>
module attributes {stable_mosaic.version = 11 : i64} {
  func.func @encoder_layer_kernel(%arg0: i32, %arg1: i32, %arg2: memref<1x8x32xf32, #tpu.memory_space<vmem>>, %arg3: memref<32x32xbf16, #tpu.memory_space<vmem>>, %arg4: memref<1x32xf32, #tpu.memory_space<vmem>>, %arg5: memref<32x64xbf16, #tpu.memory_space<vmem>>, %arg6: memref<1x64xf32, #tpu.memory_space<vmem>>, %arg7: memref<4x8x32xbf16, #tpu.memory_space<vmem>>, %arg8: memref<1x32xf32, #tpu.memory_space<vmem>>, %arg9: memref<32x64xbf16, #tpu.memory_space<vmem>>, %arg10: memref<1x64xf32, #tpu.memory_space<vmem>>, %arg11: memref<64x32xbf16, #tpu.memory_space<vmem>>, %arg12: memref<1x32xf32, #tpu.memory_space<vmem>>, %arg13: memref<1x32xf32, #tpu.memory_space<vmem>>, %arg14: memref<1x32xf32, #tpu.memory_space<vmem>>, %arg15: memref<1x32xf32, #tpu.memory_space<vmem>>, %arg16: memref<1x32xf32, #tpu.memory_space<vmem>>, %arg17: memref<1x8x32xf32, #tpu.memory_space<vmem>>, %arg18: memref<1x4x8x8xbf16, #tpu.memory_space<vmem>>, %arg19: memref<4x8x8xbf16, #tpu.memory_space<vmem>>, %arg20: memref<4x8x8xbf16, #tpu.memory_space<vmem>>) attributes {dimension_semantics = [#tpu.dimension_semantics<parallel>, #tpu.dimension_semantics<arbitrary>], iteration_bounds = array<i64: 2, 1>, scalar_prefetch = 0 : i64, scratch_operands = 2 : i64, tpu.core_type = #tpu.core_type<tc>, window_params = [{transform_indices = @transform_0, window_bounds = array<i64: 1, 8, 32>}, {pipeline_mode = #tpu.pipeline_mode<synchronous>, transform_indices = @transform_1, window_bounds = array<i64: 32, 32>}, {pipeline_mode = #tpu.pipeline_mode<synchronous>, transform_indices = @transform_2, window_bounds = array<i64: 1, 32>}, {pipeline_mode = #tpu.pipeline_mode<synchronous>, transform_indices = @transform_3, window_bounds = array<i64: 32, 64>}, {pipeline_mode = #tpu.pipeline_mode<synchronous>, transform_indices = @transform_4, window_bounds = array<i64: 1, 64>}, {pipeline_mode = #tpu.pipeline_mode<synchronous>, transform_indices = @transform_5, window_bounds = array<i64: 4, 8, 32>}, {pipeline_mode = #tpu.pipeline_mode<synchronous>, transform_indices = @transform_6, window_bounds = array<i64: 1, 32>}, {pipeline_mode = #tpu.pipeline_mode<synchronous>, transform_indices = @transform_7, window_bounds = array<i64: 32, 64>}, {pipeline_mode = #tpu.pipeline_mode<synchronous>, transform_indices = @transform_8, window_bounds = array<i64: 1, 64>}, {pipeline_mode = #tpu.pipeline_mode<synchronous>, transform_indices = @transform_9, window_bounds = array<i64: 64, 32>}, {pipeline_mode = #tpu.pipeline_mode<synchronous>, transform_indices = @transform_10, window_bounds = array<i64: 1, 32>}, {pipeline_mode = #tpu.pipeline_mode<synchronous>, transform_indices = @transform_11, window_bounds = array<i64: 1, 32>}, {pipeline_mode = #tpu.pipeline_mode<synchronous>, transform_indices = @transform_12, window_bounds = array<i64: 1, 32>}, {pipeline_mode = #tpu.pipeline_mode<synchronous>, transform_indices = @transform_13, window_bounds = array<i64: 1, 32>}, {pipeline_mode = #tpu.pipeline_mode<synchronous>, transform_indices = @transform_14, window_bounds = array<i64: 1, 32>}, {transform_indices = @transform_15, window_bounds = array<i64: 1, 8, 32>}, {transform_indices = @transform_16, window_bounds = array<i64: 1, 4, 8, 8>}]} {
    %c0_i32 = arith.constant 0 : i32
    %0 = arith.cmpi eq, %arg1, %c0_i32 : i32
    %1 = arith.extui %0 : i1 to i32
    %c0_i32_0 = arith.constant 0 : i32
    %2 = arith.cmpi ne, %1, %c0_i32_0 : i32
    scf.if %2 {
      %c0_69 = arith.constant 0 : index
      %c0_70 = arith.constant 0 : index
      %c0_71 = arith.constant 0 : index
      %137 = vector.load %arg2[%c0_69, %c0_70, %c0_71] : memref<1x8x32xf32, #tpu.memory_space<vmem>>, vector<1x8x32xf32>
      %138 = vector.shape_cast %137 : vector<1x8x32xf32> to vector<8x32xf32>
      %139 = arith.truncf %138 : vector<8x32xf32> to vector<8x32xbf16>
      %c0_72 = arith.constant 0 : index
      %c0_73 = arith.constant 0 : index
      %140 = vector.load %arg5[%c0_72, %c0_73] : memref<32x64xbf16, #tpu.memory_space<vmem>>, vector<32x64xbf16>
      %cst_74 = arith.constant dense<0.000000e+00> : vector<8x64xf32>
      %141 = tpu.matmul %139, %140, %cst_74 {dimension_numbers = #tpu.dot_dimension_numbers<[1], [0], [0], [1], [0, 0, 1, 1], [], []>} : vector<8x32xbf16>, vector<32x64xbf16>, vector<8x64xf32> -> vector<8x64xf32>
      %c0_75 = arith.constant 0 : index
      %c0_76 = arith.constant 0 : index
      %142 = vector.load %arg6[%c0_75, %c0_76] : memref<1x64xf32, #tpu.memory_space<vmem>>, vector<1x64xf32>
      %143 = vector.broadcast %142 : vector<1x64xf32> to vector<8x64xf32>
      %144 = arith.addf %141, %143 : vector<8x64xf32>
      %145 = vector.extract_strided_slice %144 {offsets = [0, 0], sizes = [8, 32], strides = [1, 1]} : vector<8x64xf32> to vector<8x32xf32>
      %146 = vector.extract_strided_slice %144 {offsets = [0, 32], sizes = [8, 32], strides = [1, 1]} : vector<8x64xf32> to vector<8x32xf32>
      %147 = vector.shape_cast %145 : vector<8x32xf32> to vector<8x4x8xf32>
      %148 = tpu.transpose %147, [1, 0, 2] : vector<8x4x8xf32> -> vector<4x8x8xf32>
      %149 = arith.truncf %148 : vector<4x8x8xf32> to vector<4x8x8xbf16>
      %c0_77 = arith.constant 0 : index
      %c0_78 = arith.constant 0 : index
      %c0_79 = arith.constant 0 : index
      %150 = vector.load %arg19[%c0_77, %c0_78, %c0_79] : memref<4x8x8xbf16, #tpu.memory_space<vmem>>, vector<4x8x8xbf16>
      tpu.vector_store %arg19[%c0_77, %c0_78, %c0_79], %149 {strides = array<i32>} : memref<4x8x8xbf16, #tpu.memory_space<vmem>>, vector<4x8x8xbf16>,
      %151 = vector.shape_cast %146 : vector<8x32xf32> to vector<8x4x8xf32>
      %152 = tpu.transpose %151, [1, 0, 2] : vector<8x4x8xf32> -> vector<4x8x8xf32>
      %153 = arith.truncf %152 : vector<4x8x8xf32> to vector<4x8x8xbf16>
      %c0_80 = arith.constant 0 : index
      %c0_81 = arith.constant 0 : index
      %c0_82 = arith.constant 0 : index
      %154 = vector.load %arg20[%c0_80, %c0_81, %c0_82] : memref<4x8x8xbf16, #tpu.memory_space<vmem>>, vector<4x8x8xbf16>
      tpu.vector_store %arg20[%c0_80, %c0_81, %c0_82], %153 {strides = array<i32>} : memref<4x8x8xbf16, #tpu.memory_space<vmem>>, vector<4x8x8xbf16>,
    } else {
    }
    %c8_i32 = arith.constant 8 : i32
    %3 = arith.muli %arg1, %c8_i32 : i32
    %4 = tpu.assume_multiple %3, 8 : i32
    %c0 = arith.constant 0 : index
    %5 = arith.index_cast %4 : i32 to index
    %c0_1 = arith.constant 0 : index
    %6 = vector.load %arg2[%c0, %5, %c0_1] : memref<1x8x32xf32, #tpu.memory_space<vmem>>, vector<1x8x32xf32>
    %7 = vector.shape_cast %6 : vector<1x8x32xf32> to vector<8x32xf32>
    %8 = arith.truncf %7 : vector<8x32xf32> to vector<8x32xbf16>
    %c0_2 = arith.constant 0 : index
    %c0_3 = arith.constant 0 : index
    %9 = vector.load %arg3[%c0_2, %c0_3] : memref<32x32xbf16, #tpu.memory_space<vmem>>, vector<32x32xbf16>
    %cst = arith.constant dense<0.000000e+00> : vector<8x32xf32>
    %10 = tpu.matmul %8, %9, %cst {dimension_numbers = #tpu.dot_dimension_numbers<[1], [0], [0], [1], [0, 0, 1, 1], [], []>} : vector<8x32xbf16>, vector<32x32xbf16>, vector<8x32xf32> -> vector<8x32xf32>
    %c0_4 = arith.constant 0 : index
    %c0_5 = arith.constant 0 : index
    %11 = vector.load %arg4[%c0_4, %c0_5] : memref<1x32xf32, #tpu.memory_space<vmem>>, vector<1x32xf32>
    %12 = vector.broadcast %11 : vector<1x32xf32> to vector<8x32xf32>
    %13 = arith.addf %10, %12 : vector<8x32xf32>
    %cst_6 = arith.constant 0.353553385 : f32
    %14 = vector.broadcast %cst_6 : f32 to vector<8x32xf32>
    %15 = arith.mulf %13, %14 : vector<8x32xf32>
    %16 = vector.shape_cast %15 : vector<8x32xf32> to vector<8x4x8xf32>
    %17 = tpu.transpose %16, [1, 0, 2] : vector<8x4x8xf32> -> vector<4x8x8xf32>
    %18 = arith.truncf %17 : vector<4x8x8xf32> to vector<4x8x8xbf16>
    %c0_7 = arith.constant 0 : index
    %c0_8 = arith.constant 0 : index
    %c0_9 = arith.constant 0 : index
    %19 = vector.load %arg19[%c0_7, %c0_8, %c0_9] : memref<4x8x8xbf16, #tpu.memory_space<vmem>>, vector<4x8x8xbf16>
    "tpu.trace_start"() <{level = 10 : i32, message = "hqd,hkd->hqk"}> : () -> ()
    %cst_10 = arith.constant dense<0.000000e+00> : vector<4x8x8xf32>
    %20 = tpu.matmul %18, %19, %cst_10 {dimension_numbers = #tpu.dot_dimension_numbers<[2], [2], [1], [1], [0, 0, 0, 1, 1, 1], [0], [0]>} : vector<4x8x8xbf16>, vector<4x8x8xbf16>, vector<4x8x8xf32> -> vector<4x8x8xf32>
    "tpu.trace_stop"() : () -> ()
    %cst_11 = arith.constant dense<0xFF800000> : vector<4x8xf32>
    %21 = vector.multi_reduction <maximumf>, %20, %cst_11 [2] : vector<4x8x8xf32> to vector<4x8xf32>
    %22 = vector.shape_cast %21 : vector<4x8xf32> to vector<4x8x1xf32>
    %23 = vector.broadcast %22 : vector<4x8x1xf32> to vector<4x8x8xf32>
    %24 = arith.subf %20, %23 : vector<4x8x8xf32>
    %25 = math.exp %24 : vector<4x8x8xf32>
    %cst_12 = arith.constant dense<0.000000e+00> : vector<4x8xf32>
    %26 = vector.multi_reduction <add>, %25, %cst_12 [2] : vector<4x8x8xf32> to vector<4x8xf32>
    %27 = vector.shape_cast %26 : vector<4x8xf32> to vector<4x8x1xf32>
    %28 = tpu.reciprocal %27 {approx = true} : vector<4x8x1xf32> -> vector<4x8x1xf32>
    %29 = vector.broadcast %28 : vector<4x8x1xf32> to vector<4x8x8xf32>
    %30 = arith.mulf %25, %29 : vector<4x8x8xf32>
    %31 = arith.truncf %30 : vector<4x8x8xf32> to vector<4x8x8xbf16>
    %c0_13 = arith.constant 0 : index
    %c0_14 = arith.constant 0 : index
    %c0_15 = arith.constant 0 : index
    %c0_16 = arith.constant 0 : index
    %32 = vector.load %arg18[%c0_13, %c0_14, %c0_15, %c0_16] : memref<1x4x8x8xbf16, #tpu.memory_space<vmem>>, vector<1x4x8x8xbf16>
    %33 = vector.shape_cast %32 : vector<1x4x8x8xbf16> to vector<4x8x8xbf16>
    %34 = vector.shape_cast %31 : vector<4x8x8xbf16> to vector<1x4x8x8xbf16>
    tpu.vector_store %arg18[%c0_13, %c0_14, %c0_15, %c0_16], %34 {strides = array<i32>} : memref<1x4x8x8xbf16, #tpu.memory_space<vmem>>, vector<1x4x8x8xbf16>,
    %35 = arith.truncf %30 : vector<4x8x8xf32> to vector<4x8x8xbf16>
    %c0_17 = arith.constant 0 : index
    %c0_18 = arith.constant 0 : index
    %c0_19 = arith.constant 0 : index
    %36 = vector.load %arg20[%c0_17, %c0_18, %c0_19] : memref<4x8x8xbf16, #tpu.memory_space<vmem>>, vector<4x8x8xbf16>
    "tpu.trace_start"() <{level = 10 : i32, message = "hqk,hkd->hqd"}> : () -> ()
    %cst_20 = arith.constant dense<0.000000e+00> : vector<4x8x8xf32>
    %37 = tpu.matmul %35, %36, %cst_20 {dimension_numbers = #tpu.dot_dimension_numbers<[2], [1], [1], [2], [0, 0, 0, 1, 1, 2], [0], [0]>} : vector<4x8x8xbf16>, vector<4x8x8xbf16>, vector<4x8x8xf32> -> vector<4x8x8xf32>
    %cst_21 = arith.constant 0.000000e+00 : f32
    "tpu.trace_stop"() : () -> ()
    %38 = vector.broadcast %cst_21 : f32 to vector<8x32xf32>
    %39 = vector.extract_strided_slice %37 {offsets = [0, 0, 0], sizes = [1, 8, 8], strides = [1, 1, 1]} : vector<4x8x8xf32> to vector<1x8x8xf32>
    %40 = vector.shape_cast %39 : vector<1x8x8xf32> to vector<8x8xf32>
    %41 = arith.truncf %40 : vector<8x8xf32> to vector<8x8xbf16>
    %c0_22 = arith.constant 0 : index
    %c0_23 = arith.constant 0 : index
    %c0_24 = arith.constant 0 : index
    %42 = vector.load %arg7[%c0_22, %c0_23, %c0_24] : memref<4x8x32xbf16, #tpu.memory_space<vmem>>, vector<1x8x32xbf16>
    %43 = vector.shape_cast %42 : vector<1x8x32xbf16> to vector<8x32xbf16>
    %cst_25 = arith.constant dense<0.000000e+00> : vector<8x32xf32>
    %44 = tpu.matmul %41, %43, %cst_25 {dimension_numbers = #tpu.dot_dimension_numbers<[1], [0], [0], [1], [0, 0, 1, 1], [], []>} : vector<8x8xbf16>, vector<8x32xbf16>, vector<8x32xf32> -> vector<8x32xf32>
    %45 = arith.addf %38, %44 : vector<8x32xf32>
    %46 = vector.extract_strided_slice %37 {offsets = [1, 0, 0], sizes = [1, 8, 8], strides = [1, 1, 1]} : vector<4x8x8xf32> to vector<1x8x8xf32>
    %47 = vector.shape_cast %46 : vector<1x8x8xf32> to vector<8x8xf32>
    %48 = arith.truncf %47 : vector<8x8xf32> to vector<8x8xbf16>
    %c1 = arith.constant 1 : index
    %c0_26 = arith.constant 0 : index
    %c0_27 = arith.constant 0 : index
    %49 = vector.load %arg7[%c1, %c0_26, %c0_27] : memref<4x8x32xbf16, #tpu.memory_space<vmem>>, vector<1x8x32xbf16>
    %50 = vector.shape_cast %49 : vector<1x8x32xbf16> to vector<8x32xbf16>
    %cst_28 = arith.constant dense<0.000000e+00> : vector<8x32xf32>
    %51 = tpu.matmul %48, %50, %cst_28 {dimension_numbers = #tpu.dot_dimension_numbers<[1], [0], [0], [1], [0, 0, 1, 1], [], []>} : vector<8x8xbf16>, vector<8x32xbf16>, vector<8x32xf32> -> vector<8x32xf32>
    %52 = arith.addf %45, %51 : vector<8x32xf32>
    %53 = vector.extract_strided_slice %37 {offsets = [2, 0, 0], sizes = [1, 8, 8], strides = [1, 1, 1]} : vector<4x8x8xf32> to vector<1x8x8xf32>
    %54 = vector.shape_cast %53 : vector<1x8x8xf32> to vector<8x8xf32>
    %55 = arith.truncf %54 : vector<8x8xf32> to vector<8x8xbf16>
    %c2 = arith.constant 2 : index
    %c0_29 = arith.constant 0 : index
    %c0_30 = arith.constant 0 : index
    %56 = vector.load %arg7[%c2, %c0_29, %c0_30] : memref<4x8x32xbf16, #tpu.memory_space<vmem>>, vector<1x8x32xbf16>
    %57 = vector.shape_cast %56 : vector<1x8x32xbf16> to vector<8x32xbf16>
    %cst_31 = arith.constant dense<0.000000e+00> : vector<8x32xf32>
    %58 = tpu.matmul %55, %57, %cst_31 {dimension_numbers = #tpu.dot_dimension_numbers<[1], [0], [0], [1], [0, 0, 1, 1], [], []>} : vector<8x8xbf16>, vector<8x32xbf16>, vector<8x32xf32> -> vector<8x32xf32>
    %59 = arith.addf %52, %58 : vector<8x32xf32>
    %60 = vector.extract_strided_slice %37 {offsets = [3, 0, 0], sizes = [1, 8, 8], strides = [1, 1, 1]} : vector<4x8x8xf32> to vector<1x8x8xf32>
    %61 = vector.shape_cast %60 : vector<1x8x8xf32> to vector<8x8xf32>
    %62 = arith.truncf %61 : vector<8x8xf32> to vector<8x8xbf16>
    %c3 = arith.constant 3 : index
    %c0_32 = arith.constant 0 : index
    %c0_33 = arith.constant 0 : index
    %63 = vector.load %arg7[%c3, %c0_32, %c0_33] : memref<4x8x32xbf16, #tpu.memory_space<vmem>>, vector<1x8x32xbf16>
    %64 = vector.shape_cast %63 : vector<1x8x32xbf16> to vector<8x32xbf16>
    %cst_34 = arith.constant dense<0.000000e+00> : vector<8x32xf32>
    %65 = tpu.matmul %62, %64, %cst_34 {dimension_numbers = #tpu.dot_dimension_numbers<[1], [0], [0], [1], [0, 0, 1, 1], [], []>} : vector<8x8xbf16>, vector<8x32xbf16>, vector<8x32xf32> -> vector<8x32xf32>
    %66 = arith.addf %59, %65 : vector<8x32xf32>
    %c0_35 = arith.constant 0 : index
    %c0_36 = arith.constant 0 : index
    %67 = vector.load %arg8[%c0_35, %c0_36] : memref<1x32xf32, #tpu.memory_space<vmem>>, vector<1x32xf32>
    %68 = vector.broadcast %67 : vector<1x32xf32> to vector<8x32xf32>
    %69 = arith.addf %66, %68 : vector<8x32xf32>
    %70 = arith.addf %7, %69 : vector<8x32xf32>
    %cst_37 = arith.constant dense<0.000000e+00> : vector<8xf32>
    %71 = vector.multi_reduction <add>, %70, %cst_37 [1] : vector<8x32xf32> to vector<8xf32>
    %72 = vector.shape_cast %71 : vector<8xf32> to vector<8x1xf32>
    %cst_38 = arith.constant 3.200000e+01 : f32
    %73 = vector.broadcast %cst_38 : f32 to vector<8x1xf32>
    %74 = arith.divf %72, %73 : vector<8x1xf32>
    %75 = vector.broadcast %74 : vector<8x1xf32> to vector<8x32xf32>
    %76 = arith.subf %70, %75 : vector<8x32xf32>
    %77 = arith.mulf %76, %76 : vector<8x32xf32>
    %cst_39 = arith.constant dense<0.000000e+00> : vector<8xf32>
    %78 = vector.multi_reduction <add>, %77, %cst_39 [1] : vector<8x32xf32> to vector<8xf32>
    %79 = vector.shape_cast %78 : vector<8xf32> to vector<8x1xf32>
    %cst_40 = arith.constant 3.200000e+01 : f32
    %80 = vector.broadcast %cst_40 : f32 to vector<8x1xf32>
    %81 = arith.divf %79, %80 : vector<8x1xf32>
    %82 = vector.broadcast %74 : vector<8x1xf32> to vector<8x32xf32>
    %83 = arith.subf %70, %82 : vector<8x32xf32>
    %cst_41 = arith.constant 9.99999974E-6 : f32
    %84 = vector.broadcast %cst_41 : f32 to vector<8x1xf32>
    %85 = arith.addf %81, %84 : vector<8x1xf32>
    %86 = math.rsqrt %85 : vector<8x1xf32>
    %87 = vector.broadcast %86 : vector<8x1xf32> to vector<8x32xf32>
    %88 = arith.mulf %83, %87 : vector<8x32xf32>
    %c0_42 = arith.constant 0 : index
    %c0_43 = arith.constant 0 : index
    %89 = vector.load %arg13[%c0_42, %c0_43] : memref<1x32xf32, #tpu.memory_space<vmem>>, vector<1x32xf32>
    %90 = vector.broadcast %89 : vector<1x32xf32> to vector<8x32xf32>
    %91 = arith.mulf %88, %90 : vector<8x32xf32>
    %c0_44 = arith.constant 0 : index
    %c0_45 = arith.constant 0 : index
    %92 = vector.load %arg14[%c0_44, %c0_45] : memref<1x32xf32, #tpu.memory_space<vmem>>, vector<1x32xf32>
    %93 = vector.broadcast %92 : vector<1x32xf32> to vector<8x32xf32>
    %94 = arith.addf %91, %93 : vector<8x32xf32>
    %95 = arith.truncf %94 : vector<8x32xf32> to vector<8x32xbf16>
    %c0_46 = arith.constant 0 : index
    %c0_47 = arith.constant 0 : index
    %96 = vector.load %arg9[%c0_46, %c0_47] : memref<32x64xbf16, #tpu.memory_space<vmem>>, vector<32x64xbf16>
    %cst_48 = arith.constant dense<0.000000e+00> : vector<8x64xf32>
    %97 = tpu.matmul %95, %96, %cst_48 {dimension_numbers = #tpu.dot_dimension_numbers<[1], [0], [0], [1], [0, 0, 1, 1], [], []>} : vector<8x32xbf16>, vector<32x64xbf16>, vector<8x64xf32> -> vector<8x64xf32>
    %c0_49 = arith.constant 0 : index
    %c0_50 = arith.constant 0 : index
    %98 = vector.load %arg10[%c0_49, %c0_50] : memref<1x64xf32, #tpu.memory_space<vmem>>, vector<1x64xf32>
    %99 = vector.broadcast %98 : vector<1x64xf32> to vector<8x64xf32>
    %100 = arith.addf %97, %99 : vector<8x64xf32>
    %cst_51 = arith.constant 0.000000e+00 : f32
    %101 = vector.broadcast %cst_51 : f32 to vector<8x64xf32>
    %102 = arith.maximumf %100, %101 : vector<8x64xf32>
    %103 = arith.truncf %102 : vector<8x64xf32> to vector<8x64xbf16>
    %c0_52 = arith.constant 0 : index
    %c0_53 = arith.constant 0 : index
    %104 = vector.load %arg11[%c0_52, %c0_53] : memref<64x32xbf16, #tpu.memory_space<vmem>>, vector<64x32xbf16>
    %cst_54 = arith.constant dense<0.000000e+00> : vector<8x32xf32>
    %105 = tpu.matmul %103, %104, %cst_54 {dimension_numbers = #tpu.dot_dimension_numbers<[1], [0], [0], [1], [0, 0, 1, 1], [], []>} : vector<8x64xbf16>, vector<64x32xbf16>, vector<8x32xf32> -> vector<8x32xf32>
    %c0_55 = arith.constant 0 : index
    %c0_56 = arith.constant 0 : index
    %106 = vector.load %arg12[%c0_55, %c0_56] : memref<1x32xf32, #tpu.memory_space<vmem>>, vector<1x32xf32>
    %107 = vector.broadcast %106 : vector<1x32xf32> to vector<8x32xf32>
    %108 = arith.addf %105, %107 : vector<8x32xf32>
    %109 = arith.addf %94, %108 : vector<8x32xf32>
    %cst_57 = arith.constant dense<0.000000e+00> : vector<8xf32>
    %110 = vector.multi_reduction <add>, %109, %cst_57 [1] : vector<8x32xf32> to vector<8xf32>
    %111 = vector.shape_cast %110 : vector<8xf32> to vector<8x1xf32>
    %cst_58 = arith.constant 3.200000e+01 : f32
    %112 = vector.broadcast %cst_58 : f32 to vector<8x1xf32>
    %113 = arith.divf %111, %112 : vector<8x1xf32>
    %114 = vector.broadcast %113 : vector<8x1xf32> to vector<8x32xf32>
    %115 = arith.subf %109, %114 : vector<8x32xf32>
    %116 = arith.mulf %115, %115 : vector<8x32xf32>
    %cst_59 = arith.constant dense<0.000000e+00> : vector<8xf32>
    %117 = vector.multi_reduction <add>, %116, %cst_59 [1] : vector<8x32xf32> to vector<8xf32>
    %118 = vector.shape_cast %117 : vector<8xf32> to vector<8x1xf32>
    %cst_60 = arith.constant 3.200000e+01 : f32
    %119 = vector.broadcast %cst_60 : f32 to vector<8x1xf32>
    %120 = arith.divf %118, %119 : vector<8x1xf32>
    %121 = vector.broadcast %113 : vector<8x1xf32> to vector<8x32xf32>
    %122 = arith.subf %109, %121 : vector<8x32xf32>
    %cst_61 = arith.constant 9.99999974E-6 : f32
    %123 = vector.broadcast %cst_61 : f32 to vector<8x1xf32>
    %124 = arith.addf %120, %123 : vector<8x1xf32>
    %125 = math.rsqrt %124 : vector<8x1xf32>
    %126 = vector.broadcast %125 : vector<8x1xf32> to vector<8x32xf32>
    %127 = arith.mulf %122, %126 : vector<8x32xf32>
    %c0_62 = arith.constant 0 : index
    %c0_63 = arith.constant 0 : index
    %128 = vector.load %arg15[%c0_62, %c0_63] : memref<1x32xf32, #tpu.memory_space<vmem>>, vector<1x32xf32>
    %129 = vector.broadcast %128 : vector<1x32xf32> to vector<8x32xf32>
    %130 = arith.mulf %127, %129 : vector<8x32xf32>
    %c0_64 = arith.constant 0 : index
    %c0_65 = arith.constant 0 : index
    %131 = vector.load %arg16[%c0_64, %c0_65] : memref<1x32xf32, #tpu.memory_space<vmem>>, vector<1x32xf32>
    %132 = vector.broadcast %131 : vector<1x32xf32> to vector<8x32xf32>
    %133 = arith.addf %130, %132 : vector<8x32xf32>
    %c0_66 = arith.constant 0 : index
    %c0_67 = arith.constant 0 : index
    %c0_68 = arith.constant 0 : index
    %134 = vector.load %arg17[%c0_66, %c0_67, %c0_68] : memref<1x8x32xf32, #tpu.memory_space<vmem>>, vector<1x8x32xf32>
    %135 = vector.shape_cast %134 : vector<1x8x32xf32> to vector<8x32xf32>
    %136 = vector.shape_cast %133 : vector<8x32xf32> to vector<1x8x32xf32>
    tpu.vector_store %arg17[%c0_66, %c0_67, %c0_68], %136 {strides = array<i32>} : memref<1x8x32xf32, #tpu.memory_space<vmem>>, vector<1x8x32xf32>,
    return
  }
  func.func @transform_0(%arg0: i32, %arg1: i32) -> (i32, i32, i32) {
    %c0_i32 = arith.constant 0 : i32
    %c0_i32_0 = arith.constant 0 : i32
    %c0_i32_1 = arith.constant 0 : i32
    return %arg0, %c0_i32, %c0_i32_0 : i32, i32, i32
  }
  func.func @transform_1(%arg0: i32, %arg1: i32) -> (i32, i32) {
    %c0_i32 = arith.constant 0 : i32
    %c0_i32_0 = arith.constant 0 : i32
    %c0_i32_1 = arith.constant 0 : i32
    return %c0_i32, %c0_i32_0 : i32, i32
  }
  func.func @transform_2(%arg0: i32, %arg1: i32) -> (i32, i32) {
    %c0_i32 = arith.constant 0 : i32
    %c0_i32_0 = arith.constant 0 : i32
    %c0_i32_1 = arith.constant 0 : i32
    return %c0_i32, %c0_i32_0 : i32, i32
  }
  func.func @transform_3(%arg0: i32, %arg1: i32) -> (i32, i32) {
    %c0_i32 = arith.constant 0 : i32
    %c0_i32_0 = arith.constant 0 : i32
    %c0_i32_1 = arith.constant 0 : i32
    return %c0_i32, %c0_i32_0 : i32, i32
  }
  func.func @transform_4(%arg0: i32, %arg1: i32) -> (i32, i32) {
    %c0_i32 = arith.constant 0 : i32
    %c0_i32_0 = arith.constant 0 : i32
    %c0_i32_1 = arith.constant 0 : i32
    return %c0_i32, %c0_i32_0 : i32, i32
  }
  func.func @transform_5(%arg0: i32, %arg1: i32) -> (i32, i32, i32) {
    %c0_i32 = arith.constant 0 : i32
    %c0_i32_0 = arith.constant 0 : i32
    %c0_i32_1 = arith.constant 0 : i32
    %c0_i32_2 = arith.constant 0 : i32
    return %c0_i32, %c0_i32_0, %c0_i32_1 : i32, i32, i32
  }
  func.func @transform_6(%arg0: i32, %arg1: i32) -> (i32, i32) {
    %c0_i32 = arith.constant 0 : i32
    %c0_i32_0 = arith.constant 0 : i32
    %c0_i32_1 = arith.constant 0 : i32
    return %c0_i32, %c0_i32_0 : i32, i32
  }
  func.func @transform_7(%arg0: i32, %arg1: i32) -> (i32, i32) {
    %c0_i32 = arith.constant 0 : i32
    %c0_i32_0 = arith.constant 0 : i32
    %c0_i32_1 = arith.constant 0 : i32
    return %c0_i32, %c0_i32_0 : i32, i32
  }
  func.func @transform_8(%arg0: i32, %arg1: i32) -> (i32, i32) {
    %c0_i32 = arith.constant 0 : i32
    %c0_i32_0 = arith.constant 0 : i32
    %c0_i32_1 = arith.constant 0 : i32
    return %c0_i32, %c0_i32_0 : i32, i32
  }
  func.func @transform_9(%arg0: i32, %arg1: i32) -> (i32, i32) {
    %c0_i32 = arith.constant 0 : i32
    %c0_i32_0 = arith.constant 0 : i32
    %c0_i32_1 = arith.constant 0 : i32
    return %c0_i32, %c0_i32_0 : i32, i32
  }
  func.func @transform_10(%arg0: i32, %arg1: i32) -> (i32, i32) {
    %c0_i32 = arith.constant 0 : i32
    %c0_i32_0 = arith.constant 0 : i32
    %c0_i32_1 = arith.constant 0 : i32
    return %c0_i32, %c0_i32_0 : i32, i32
  }
  func.func @transform_11(%arg0: i32, %arg1: i32) -> (i32, i32) {
    %c0_i32 = arith.constant 0 : i32
    %c0_i32_0 = arith.constant 0 : i32
    %c0_i32_1 = arith.constant 0 : i32
    return %c0_i32, %c0_i32_0 : i32, i32
  }
  func.func @transform_12(%arg0: i32, %arg1: i32) -> (i32, i32) {
    %c0_i32 = arith.constant 0 : i32
    %c0_i32_0 = arith.constant 0 : i32
    %c0_i32_1 = arith.constant 0 : i32
    return %c0_i32, %c0_i32_0 : i32, i32
  }
  func.func @transform_13(%arg0: i32, %arg1: i32) -> (i32, i32) {
    %c0_i32 = arith.constant 0 : i32
    %c0_i32_0 = arith.constant 0 : i32
    %c0_i32_1 = arith.constant 0 : i32
    return %c0_i32, %c0_i32_0 : i32, i32
  }
  func.func @transform_14(%arg0: i32, %arg1: i32) -> (i32, i32) {
    %c0_i32 = arith.constant 0 : i32
    %c0_i32_0 = arith.constant 0 : i32
    %c0_i32_1 = arith.constant 0 : i32
    return %c0_i32, %c0_i32_0 : i32, i32
  }
  func.func @transform_15(%arg0: i32, %arg1: i32) -> (i32, i32, i32) {
    %c0_i32 = arith.constant 0 : i32
    %c0_i32_0 = arith.constant 0 : i32
    return %arg0, %arg1, %c0_i32 : i32, i32, i32
  }
  func.func @transform_16(%arg0: i32, %arg1: i32) -> (i32, i32, i32, i32) {
    %c0_i32 = arith.constant 0 : i32
    %c0_i32_0 = arith.constant 0 : i32
    %c0_i32_1 = arith.constant 0 : i32
    return %arg0, %c0_i32, %arg1, %c0_i32_0 : i32, i32, i32, i32
  }
}

module attributes {stable_mosaic.version = 11 : i64} {
  func.func @encoder_layer_kernel(%arg0: i32, %arg1: i32, %arg2: memref<1x8x32xf32, #tpu.memory_space<vmem>>, %arg3: memref<32x32xbf16, #tpu.memory_space<vmem>>, %arg4: memref<1x32xf32, #tpu.memory_space<vmem>>, %arg5: memref<32x64xbf16, #tpu.memory_space<vmem>>, %arg6: memref<1x64xf32, #tpu.memory_space<vmem>>, %arg7: memref<4x8x32xbf16, #tpu.memory_space<vmem>>, %arg8: memref<1x32xf32, #tpu.memory_space<vmem>>, %arg9: memref<32x64xbf16, #tpu.memory_space<vmem>>, %arg10: memref<1x64xf32, #tpu.memory_space<vmem>>, %arg11: memref<64x32xbf16, #tpu.memory_space<vmem>>, %arg12: memref<1x32xf32, #tpu.memory_space<vmem>>, %arg13: memref<1x32xf32, #tpu.memory_space<vmem>>, %arg14: memref<1x32xf32, #tpu.memory_space<vmem>>, %arg15: memref<1x32xf32, #tpu.memory_space<vmem>>, %arg16: memref<1x32xf32, #tpu.memory_space<vmem>>, %arg17: memref<1x8x32xf32, #tpu.memory_space<vmem>>, %arg18: memref<1x4x8x8xbf16, #tpu.memory_space<vmem>>, %arg19: memref<4x8x8xbf16, #tpu.memory_space<vmem>>, %arg20: memref<4x8x8xbf16, #tpu.memory_space<vmem>>) attributes {dimension_semantics = [#tpu.dimension_semantics<parallel>, #tpu.dimension_semantics<arbitrary>], iteration_bounds = array<i64: 2, 1>, scalar_prefetch = 0 : i64, scratch_operands = 2 : i64, tpu.core_type = #tpu.core_type<tc>, window_params = [{transform_indices = @transform_0, window_bounds = array<i64: 1, 8, 32>}, {pipeline_mode = #tpu.pipeline_mode<synchronous>, transform_indices = @transform_1, window_bounds = array<i64: 32, 32>}, {pipeline_mode = #tpu.pipeline_mode<synchronous>, transform_indices = @transform_2, window_bounds = array<i64: 1, 32>}, {pipeline_mode = #tpu.pipeline_mode<synchronous>, transform_indices = @transform_3, window_bounds = array<i64: 32, 64>}, {pipeline_mode = #tpu.pipeline_mode<synchronous>, transform_indices = @transform_4, window_bounds = array<i64: 1, 64>}, {pipeline_mode = #tpu.pipeline_mode<synchronous>, transform_indices = @transform_5, window_bounds = array<i64: 4, 8, 32>}, {pipeline_mode = #tpu.pipeline_mode<synchronous>, transform_indices = @transform_6, window_bounds = array<i64: 1, 32>}, {pipeline_mode = #tpu.pipeline_mode<synchronous>, transform_indices = @transform_7, window_bounds = array<i64: 32, 64>}, {pipeline_mode = #tpu.pipeline_mode<synchronous>, transform_indices = @transform_8, window_bounds = array<i64: 1, 64>}, {pipeline_mode = #tpu.pipeline_mode<synchronous>, transform_indices = @transform_9, window_bounds = array<i64: 64, 32>}, {pipeline_mode = #tpu.pipeline_mode<synchronous>, transform_indices = @transform_10, window_bounds = array<i64: 1, 32>}, {pipeline_mode = #tpu.pipeline_mode<synchronous>, transform_indices = @transform_11, window_bounds = array<i64: 1, 32>}, {pipeline_mode = #tpu.pipeline_mode<synchronous>, transform_indices = @transform_12, window_bounds = array<i64: 1, 32>}, {pipeline_mode = #tpu.pipeline_mode<synchronous>, transform_indices = @transform_13, window_bounds = array<i64: 1, 32>}, {pipeline_mode = #tpu.pipeline_mode<synchronous>, transform_indices = @transform_14, window_bounds = array<i64: 1, 32>}, {transform_indices = @transform_15, window_bounds = array<i64: 1, 8, 32>}, {transform_indices = @transform_16, window_bounds = array<i64: 1, 4, 8, 8>}]} {
    %c0_i32 = arith.constant 0 : i32
    %0 = arith.cmpi eq, %arg1, %c0_i32 : i32
    %1 = arith.extui %0 : i1 to i32
    %c0_i32_0 = arith.constant 0 : i32
    %2 = arith.cmpi ne, %1, %c0_i32_0 : i32
    scf.if %2 {
      %c0_69 = arith.constant 0 : index
      %c0_70 = arith.constant 0 : index
      %c0_71 = arith.constant 0 : index
      %137 = vector.load %arg2[%c0_69, %c0_70, %c0_71] : memref<1x8x32xf32, #tpu.memory_space<vmem>>, vector<1x8x32xf32>
      %138 = vector.shape_cast %137 : vector<1x8x32xf32> to vector<8x32xf32>
      %139 = arith.truncf %138 : vector<8x32xf32> to vector<8x32xbf16>
      %c0_72 = arith.constant 0 : index
      %c0_73 = arith.constant 0 : index
      %140 = vector.load %arg5[%c0_72, %c0_73] : memref<32x64xbf16, #tpu.memory_space<vmem>>, vector<32x64xbf16>
      %cst_74 = arith.constant dense<0.000000e+00> : vector<8x64xf32>
      %141 = tpu.matmul %139, %140, %cst_74 {dimension_numbers = #tpu.dot_dimension_numbers<[1], [0], [0], [1], [0, 0, 1, 1], [], []>} : vector<8x32xbf16>, vector<32x64xbf16>, vector<8x64xf32> -> vector<8x64xf32>
      %c0_75 = arith.constant 0 : index
      %c0_76 = arith.constant 0 : index
      %142 = vector.load %arg6[%c0_75, %c0_76] : memref<1x64xf32, #tpu.memory_space<vmem>>, vector<1x64xf32>
      %143 = vector.broadcast %142 : vector<1x64xf32> to vector<8x64xf32>
      %144 = arith.addf %141, %143 : vector<8x64xf32>
      %145 = vector.extract_strided_slice %144 {offsets = [0, 0], sizes = [8, 32], strides = [1, 1]} : vector<8x64xf32> to vector<8x32xf32>
      %146 = vector.extract_strided_slice %144 {offsets = [0, 32], sizes = [8, 32], strides = [1, 1]} : vector<8x64xf32> to vector<8x32xf32>
      %147 = vector.shape_cast %145 : vector<8x32xf32> to vector<8x4x8xf32>
      %148 = tpu.transpose %147, [1, 0, 2] : vector<8x4x8xf32> -> vector<4x8x8xf32>
      %149 = arith.truncf %148 : vector<4x8x8xf32> to vector<4x8x8xbf16>
      %c0_77 = arith.constant 0 : index
      %c0_78 = arith.constant 0 : index
      %c0_79 = arith.constant 0 : index
      %150 = vector.load %arg19[%c0_77, %c0_78, %c0_79] : memref<4x8x8xbf16, #tpu.memory_space<vmem>>, vector<4x8x8xbf16>
      tpu.vector_store %arg19[%c0_77, %c0_78, %c0_79], %149 {strides = array<i32>} : memref<4x8x8xbf16, #tpu.memory_space<vmem>>, vector<4x8x8xbf16>,
      %151 = vector.shape_cast %146 : vector<8x32xf32> to vector<8x4x8xf32>
      %152 = tpu.transpose %151, [1, 0, 2] : vector<8x4x8xf32> -> vector<4x8x8xf32>
      %153 = arith.truncf %152 : vector<4x8x8xf32> to vector<4x8x8xbf16>
      %c0_80 = arith.constant 0 : index
      %c0_81 = arith.constant 0 : index
      %c0_82 = arith.constant 0 : index
      %154 = vector.load %arg20[%c0_80, %c0_81, %c0_82] : memref<4x8x8xbf16, #tpu.memory_space<vmem>>, vector<4x8x8xbf16>
      tpu.vector_store %arg20[%c0_80, %c0_81, %c0_82], %153 {strides = array<i32>} : memref<4x8x8xbf16, #tpu.memory_space<vmem>>, vector<4x8x8xbf16>,
    } else {
    }
    %c8_i32 = arith.constant 8 : i32
    %3 = arith.muli %arg1, %c8_i32 : i32
    %4 = tpu.assume_multiple %3, 8 : i32
    %c0 = arith.constant 0 : index
    %5 = arith.index_cast %4 : i32 to index
    %c0_1 = arith.constant 0 : index
    %6 = vector.load %arg2[%c0, %5, %c0_1] : memref<1x8x32xf32, #tpu.memory_space<vmem>>, vector<1x8x32xf32>
    %7 = vector.shape_cast %6 : vector<1x8x32xf32> to vector<8x32xf32>
    %8 = arith.truncf %7 : vector<8x32xf32> to vector<8x32xbf16>
    %c0_2 = arith.constant 0 : index
    %c0_3 = arith.constant 0 : index
    %9 = vector.load %arg3[%c0_2, %c0_3] : memref<32x32xbf16, #tpu.memory_space<vmem>>, vector<32x32xbf16>
    %cst = arith.constant dense<0.000000e+00> : vector<8x32xf32>
    %10 = tpu.matmul %8, %9, %cst {dimension_numbers = #tpu.dot_dimension_numbers<[1], [0], [0], [1], [0, 0, 1, 1], [], []>} : vector<8x32xbf16>, vector<32x32xbf16>, vector<8x32xf32> -> vector<8x32xf32>
    %c0_4 = arith.constant 0 : index
    %c0_5 = arith.constant 0 : index
    %11 = vector.load %arg4[%c0_4, %c0_5] : memref<1x32xf32, #tpu.memory_space<vmem>>, vector<1x32xf32>
    %12 = vector.broadcast %11 : vector<1x32xf32> to vector<8x32xf32>
    %13 = arith.addf %10, %12 : vector<8x32xf32>
    %cst_6 = arith.constant 0.353553385 : f32
    %14 = vector.broadcast %cst_6 : f32 to vector<8x32xf32>
    %15 = arith.mulf %13, %14 : vector<8x32xf32>
    %16 = vector.shape_cast %15 : vector<8x32xf32> to vector<8x4x8xf32>
    %17 = tpu.transpose %16, [1, 0, 2] : vector<8x4x8xf32> -> vector<4x8x8xf32>
    %18 = arith.truncf %17 : vector<4x8x8xf32> to vector<4x8x8xbf16>
    %c0_7 = arith.constant 0 : index
    %c0_8 = arith.constant 0 : index
    %c0_9 = arith.constant 0 : index
    %19 = vector.load %arg19[%c0_7, %c0_8, %c0_9] : memref<4x8x8xbf16, #tpu.memory_space<vmem>>, vector<4x8x8xbf16>
    "tpu.trace_start"() <{level = 10 : i32, message = "hqd,hkd->hqk"}> : () -> ()
    %cst_10 = arith.constant dense<0.000000e+00> : vector<4x8x8xf32>
    %20 = tpu.matmul %18, %19, %cst_10 {dimension_numbers = #tpu.dot_dimension_numbers<[2], [2], [1], [1], [0, 0, 0, 1, 1, 1], [0], [0]>} : vector<4x8x8xbf16>, vector<4x8x8xbf16>, vector<4x8x8xf32> -> vector<4x8x8xf32>
    "tpu.trace_stop"() : () -> ()
    %cst_11 = arith.constant dense<0xFF800000> : vector<4x8xf32>
    %21 = vector.multi_reduction <maximumf>, %20, %cst_11 [2] : vector<4x8x8xf32> to vector<4x8xf32>
    %22 = vector.shape_cast %21 : vector<4x8xf32> to vector<4x8x1xf32>
    %23 = vector.broadcast %22 : vector<4x8x1xf32> to vector<4x8x8xf32>
    %24 = arith.subf %20, %23 : vector<4x8x8xf32>
    %25 = math.exp %24 : vector<4x8x8xf32>
    %cst_12 = arith.constant dense<0.000000e+00> : vector<4x8xf32>
    %26 = vector.multi_reduction <add>, %25, %cst_12 [2] : vector<4x8x8xf32> to vector<4x8xf32>
    %27 = vector.shape_cast %26 : vector<4x8xf32> to vector<4x8x1xf32>
    %28 = tpu.reciprocal %27 {approx = true} : vector<4x8x1xf32> -> vector<4x8x1xf32>
    %29 = vector.broadcast %28 : vector<4x8x1xf32> to vector<4x8x8xf32>
    %30 = arith.mulf %25, %29 : vector<4x8x8xf32>
    %31 = arith.truncf %30 : vector<4x8x8xf32> to vector<4x8x8xbf16>
    %c0_13 = arith.constant 0 : index
    %c0_14 = arith.constant 0 : index
    %c0_15 = arith.constant 0 : index
    %c0_16 = arith.constant 0 : index
    %32 = vector.load %arg18[%c0_13, %c0_14, %c0_15, %c0_16] : memref<1x4x8x8xbf16, #tpu.memory_space<vmem>>, vector<1x4x8x8xbf16>
    %33 = vector.shape_cast %32 : vector<1x4x8x8xbf16> to vector<4x8x8xbf16>
    %34 = vector.shape_cast %31 : vector<4x8x8xbf16> to vector<1x4x8x8xbf16>
    tpu.vector_store %arg18[%c0_13, %c0_14, %c0_15, %c0_16], %34 {strides = array<i32>} : memref<1x4x8x8xbf16, #tpu.memory_space<vmem>>, vector<1x4x8x8xbf16>,
    %35 = arith.truncf %30 : vector<4x8x8xf32> to vector<4x8x8xbf16>
    %c0_17 = arith.constant 0 : index
    %c0_18 = arith.constant 0 : index
    %c0_19 = arith.constant 0 : index
    %36 = vector.load %arg20[%c0_17, %c0_18, %c0_19] : memref<4x8x8xbf16, #tpu.memory_space<vmem>>, vector<4x8x8xbf16>
    "tpu.trace_start"() <{level = 10 : i32, message = "hqk,hkd->hqd"}> : () -> ()
    %cst_20 = arith.constant dense<0.000000e+00> : vector<4x8x8xf32>
    %37 = tpu.matmul %35, %36, %cst_20 {dimension_numbers = #tpu.dot_dimension_numbers<[2], [1], [1], [2], [0, 0, 0, 1, 1, 2], [0], [0]>} : vector<4x8x8xbf16>, vector<4x8x8xbf16>, vector<4x8x8xf32> -> vector<4x8x8xf32>
    %cst_21 = arith.constant 0.000000e+00 : f32
    "tpu.trace_stop"() : () -> ()
    %38 = vector.broadcast %cst_21 : f32 to vector<8x32xf32>
    %39 = vector.extract_strided_slice %37 {offsets = [0, 0, 0], sizes = [1, 8, 8], strides = [1, 1, 1]} : vector<4x8x8xf32> to vector<1x8x8xf32>
    %40 = vector.shape_cast %39 : vector<1x8x8xf32> to vector<8x8xf32>
    %41 = arith.truncf %40 : vector<8x8xf32> to vector<8x8xbf16>
    %c0_22 = arith.constant 0 : index
    %c0_23 = arith.constant 0 : index
    %c0_24 = arith.constant 0 : index
    %42 = vector.load %arg7[%c0_22, %c0_23, %c0_24] : memref<4x8x32xbf16, #tpu.memory_space<vmem>>, vector<1x8x32xbf16>
    %43 = vector.shape_cast %42 : vector<1x8x32xbf16> to vector<8x32xbf16>
    %cst_25 = arith.constant dense<0.000000e+00> : vector<8x32xf32>
    %44 = tpu.matmul %41, %43, %cst_25 {dimension_numbers = #tpu.dot_dimension_numbers<[1], [0], [0], [1], [0, 0, 1, 1], [], []>} : vector<8x8xbf16>, vector<8x32xbf16>, vector<8x32xf32> -> vector<8x32xf32>
    %45 = arith.addf %38, %44 : vector<8x32xf32>
    %46 = vector.extract_strided_slice %37 {offsets = [1, 0, 0], sizes = [1, 8, 8], strides = [1, 1, 1]} : vector<4x8x8xf32> to vector<1x8x8xf32>
    %47 = vector.shape_cast %46 : vector<1x8x8xf32> to vector<8x8xf32>
    %48 = arith.truncf %47 : vector<8x8xf32> to vector<8x8xbf16>
    %c1 = arith.constant 1 : index
    %c0_26 = arith.constant 0 : index
    %c0_27 = arith.constant 0 : index
    %49 = vector.load %arg7[%c1, %c0_26, %c0_27] : memref<4x8x32xbf16, #tpu.memory_space<vmem>>, vector<1x8x32xbf16>
    %50 = vector.shape_cast %49 : vector<1x8x32xbf16> to vector<8x32xbf16>
    %cst_28 = arith.constant dense<0.000000e+00> : vector<8x32xf32>
    %51 = tpu.matmul %48, %50, %cst_28 {dimension_numbers = #tpu.dot_dimension_numbers<[1], [0], [0], [1], [0, 0, 1, 1], [], []>} : vector<8x8xbf16>, vector<8x32xbf16>, vector<8x32xf32> -> vector<8x32xf32>
    %52 = arith.addf %45, %51 : vector<8x32xf32>
    %53 = vector.extract_strided_slice %37 {offsets = [2, 0, 0], sizes = [1, 8, 8], strides = [1, 1, 1]} : vector<4x8x8xf32> to vector<1x8x8xf32>
    %54 = vector.shape_cast %53 : vector<1x8x8xf32> to vector<8x8xf32>
    %55 = arith.truncf %54 : vector<8x8xf32> to vector<8x8xbf16>
    %c2 = arith.constant 2 : index
    %c0_29 = arith.constant 0 : index
    %c0_30 = arith.constant 0 : index
    %56 = vector.load %arg7[%c2, %c0_29, %c0_30] : memref<4x8x32xbf16, #tpu.memory_space<vmem>>, vector<1x8x32xbf16>
    %57 = vector.shape_cast %56 : vector<1x8x32xbf16> to vector<8x32xbf16>
    %cst_31 = arith.constant dense<0.000000e+00> : vector<8x32xf32>
    %58 = tpu.matmul %55, %57, %cst_31 {dimension_numbers = #tpu.dot_dimension_numbers<[1], [0], [0], [1], [0, 0, 1, 1], [], []>} : vector<8x8xbf16>, vector<8x32xbf16>, vector<8x32xf32> -> vector<8x32xf32>
    %59 = arith.addf %52, %58 : vector<8x32xf32>
    %60 = vector.extract_strided_slice %37 {offsets = [3, 0, 0], sizes = [1, 8, 8], strides = [1, 1, 1]} : vector<4x8x8xf32> to vector<1x8x8xf32>
    %61 = vector.shape_cast %60 : vector<1x8x8xf32> to vector<8x8xf32>
    %62 = arith.truncf %61 : vector<8x8xf32> to vector<8x8xbf16>
    %c3 = arith.constant 3 : index
    %c0_32 = arith.constant 0 : index
    %c0_33 = arith.constant 0 : index
    %63 = vector.load %arg7[%c3, %c0_32, %c0_33] : memref<4x8x32xbf16, #tpu.memory_space<vmem>>, vector<1x8x32xbf16>
    %64 = vector.shape_cast %63 : vector<1x8x32xbf16> to vector<8x32xbf16>
    %cst_34 = arith.constant dense<0.000000e+00> : vector<8x32xf32>
    %65 = tpu.matmul %62, %64, %cst_34 {dimension_numbers = #tpu.dot_dimension_numbers<[1], [0], [0], [1], [0, 0, 1, 1], [], []>} : vector<8x8xbf16>, vector<8x32xbf16>, vector<8x32xf32> -> vector<8x32xf32>
    %66 = arith.addf %59, %65 : vector<8x32xf32>
    %c0_35 = arith.constant 0 : index
    %c0_36 = arith.constant 0 : index
    %67 = vector.load %arg8[%c0_35, %c0_36] : memref<1x32xf32, #tpu.memory_space<vmem>>, vector<1x32xf32>
    %68 = vector.broadcast %67 : vector<1x32xf32> to vector<8x32xf32>
    %69 = arith.addf %66, %68 : vector<8x32xf32>
    %70 = arith.addf %7, %69 : vector<8x32xf32>
    %cst_37 = arith.constant dense<0.000000e+00> : vector<8xf32>
    %71 = vector.multi_reduction <add>, %70, %cst_37 [1] : vector<8x32xf32> to vector<8xf32>
    %72 = vector.shape_cast %71 : vector<8xf32> to vector<8x1xf32>
    %cst_38 = arith.constant 3.200000e+01 : f32
    %73 = vector.broadcast %cst_38 : f32 to vector<8x1xf32>
    %74 = arith.divf %72, %73 : vector<8x1xf32>
    %75 = vector.broadcast %74 : vector<8x1xf32> to vector<8x32xf32>
    %76 = arith.subf %70, %75 : vector<8x32xf32>
    %77 = arith.mulf %76, %76 : vector<8x32xf32>
    %cst_39 = arith.constant dense<0.000000e+00> : vector<8xf32>
    %78 = vector.multi_reduction <add>, %77, %cst_39 [1] : vector<8x32xf32> to vector<8xf32>
    %79 = vector.shape_cast %78 : vector<8xf32> to vector<8x1xf32>
    %cst_40 = arith.constant 3.200000e+01 : f32
    %80 = vector.broadcast %cst_40 : f32 to vector<8x1xf32>
    %81 = arith.divf %79, %80 : vector<8x1xf32>
    %82 = vector.broadcast %74 : vector<8x1xf32> to vector<8x32xf32>
    %83 = arith.subf %70, %82 : vector<8x32xf32>
    %cst_41 = arith.constant 9.99999974E-6 : f32
    %84 = vector.broadcast %cst_41 : f32 to vector<8x1xf32>
    %85 = arith.addf %81, %84 : vector<8x1xf32>
    %86 = math.rsqrt %85 : vector<8x1xf32>
    %87 = vector.broadcast %86 : vector<8x1xf32> to vector<8x32xf32>
    %88 = arith.mulf %83, %87 : vector<8x32xf32>
    %c0_42 = arith.constant 0 : index
    %c0_43 = arith.constant 0 : index
    %89 = vector.load %arg13[%c0_42, %c0_43] : memref<1x32xf32, #tpu.memory_space<vmem>>, vector<1x32xf32>
    %90 = vector.broadcast %89 : vector<1x32xf32> to vector<8x32xf32>
    %91 = arith.mulf %88, %90 : vector<8x32xf32>
    %c0_44 = arith.constant 0 : index
    %c0_45 = arith.constant 0 : index
    %92 = vector.load %arg14[%c0_44, %c0_45] : memref<1x32xf32, #tpu.memory_space<vmem>>, vector<1x32xf32>
    %93 = vector.broadcast %92 : vector<1x32xf32> to vector<8x32xf32>
    %94 = arith.addf %91, %93 : vector<8x32xf32>
    %95 = arith.truncf %94 : vector<8x32xf32> to vector<8x32xbf16>
    %c0_46 = arith.constant 0 : index
    %c0_47 = arith.constant 0 : index
    %96 = vector.load %arg9[%c0_46, %c0_47] : memref<32x64xbf16, #tpu.memory_space<vmem>>, vector<32x64xbf16>
    %cst_48 = arith.constant dense<0.000000e+00> : vector<8x64xf32>
    %97 = tpu.matmul %95, %96, %cst_48 {dimension_numbers = #tpu.dot_dimension_numbers<[1], [0], [0], [1], [0, 0, 1, 1], [], []>} : vector<8x32xbf16>, vector<32x64xbf16>, vector<8x64xf32> -> vector<8x64xf32>
    %c0_49 = arith.constant 0 : index
    %c0_50 = arith.constant 0 : index
    %98 = vector.load %arg10[%c0_49, %c0_50] : memref<1x64xf32, #tpu.memory_space<vmem>>, vector<1x64xf32>
    %99 = vector.broadcast %98 : vector<1x64xf32> to vector<8x64xf32>
    %100 = arith.addf %97, %99 : vector<8x64xf32>
    %cst_51 = arith.constant 0.000000e+00 : f32
    %101 = vector.broadcast %cst_51 : f32 to vector<8x64xf32>
    %102 = arith.maximumf %100, %101 : vector<8x64xf32>
    %103 = arith.truncf %102 : vector<8x64xf32> to vector<8x64xbf16>
    %c0_52 = arith.constant 0 : index
    %c0_53 = arith.constant 0 : index
    %104 = vector.load %arg11[%c0_52, %c0_53] : memref<64x32xbf16, #tpu.memory_space<vmem>>, vector<64x32xbf16>
    %cst_54 = arith.constant dense<0.000000e+00> : vector<8x32xf32>
    %105 = tpu.matmul %103, %104, %cst_54 {dimension_numbers = #tpu.dot_dimension_numbers<[1], [0], [0], [1], [0, 0, 1, 1], [], []>} : vector<8x64xbf16>, vector<64x32xbf16>, vector<8x32xf32> -> vector<8x32xf32>
    %c0_55 = arith.constant 0 : index
    %c0_56 = arith.constant 0 : index
    %106 = vector.load %arg12[%c0_55, %c0_56] : memref<1x32xf32, #tpu.memory_space<vmem>>, vector<1x32xf32>
    %107 = vector.broadcast %106 : vector<1x32xf32> to vector<8x32xf32>
    %108 = arith.addf %105, %107 : vector<8x32xf32>
    %109 = arith.addf %94, %108 : vector<8x32xf32>
    %cst_57 = arith.constant dense<0.000000e+00> : vector<8xf32>
    %110 = vector.multi_reduction <add>, %109, %cst_57 [1] : vector<8x32xf32> to vector<8xf32>
    %111 = vector.shape_cast %110 : vector<8xf32> to vector<8x1xf32>
    %cst_58 = arith.constant 3.200000e+01 : f32
    %112 = vector.broadcast %cst_58 : f32 to vector<8x1xf32>
    %113 = arith.divf %111, %112 : vector<8x1xf32>
    %114 = vector.broadcast %113 : vector<8x1xf32> to vector<8x32xf32>
    %115 = arith.subf %109, %114 : vector<8x32xf32>
    %116 = arith.mulf %115, %115 : vector<8x32xf32>
    %cst_59 = arith.constant dense<0.000000e+00> : vector<8xf32>
    %117 = vector.multi_reduction <add>, %116, %cst_59 [1] : vector<8x32xf32> to vector<8xf32>
    %118 = vector.shape_cast %117 : vector<8xf32> to vector<8x1xf32>
    %cst_60 = arith.constant 3.200000e+01 : f32
    %119 = vector.broadcast %cst_60 : f32 to vector<8x1xf32>
    %120 = arith.divf %118, %119 : vector<8x1xf32>
    %121 = vector.broadcast %113 : vector<8x1xf32> to vector<8x32xf32>
    %122 = arith.subf %109, %121 : vector<8x32xf32>
    %cst_61 = arith.constant 9.99999974E-6 : f32
    %123 = vector.broadcast %cst_61 : f32 to vector<8x1xf32>
    %124 = arith.addf %120, %123 : vector<8x1xf32>
    %125 = math.rsqrt %124 : vector<8x1xf32>
    %126 = vector.broadcast %125 : vector<8x1xf32> to vector<8x32xf32>
    %127 = arith.mulf %122, %126 : vector<8x32xf32>
    %c0_62 = arith.constant 0 : index
    %c0_63 = arith.constant 0 : index
    %128 = vector.load %arg15[%c0_62, %c0_63] : memref<1x32xf32, #tpu.memory_space<vmem>>, vector<1x32xf32>
    %129 = vector.broadcast %128 : vector<1x32xf32> to vector<8x32xf32>
    %130 = arith.mulf %127, %129 : vector<8x32xf32>
    %c0_64 = arith.constant 0 : index
    %c0_65 = arith.constant 0 : index
    %131 = vector.load %arg16[%c0_64, %c0_65] : memref<1x32xf32, #tpu.memory_space<vmem>>, vector<1x32xf32>
    %132 = vector.broadcast %131 : vector<1x32xf32> to vector<8x32xf32>
    %133 = arith.addf %130, %132 : vector<8x32xf32>
    %c0_66 = arith.constant 0 : index
    %c0_67 = arith.constant 0 : index
    %c0_68 = arith.constant 0 : index
    %134 = vector.load %arg17[%c0_66, %c0_67, %c0_68] : memref<1x8x32xf32, #tpu.memory_space<vmem>>, vector<1x8x32xf32>
    %135 = vector.shape_cast %134 : vector<1x8x32xf32> to vector<8x32xf32>
    %136 = vector.shape_cast %133 : vector<8x32xf32> to vector<1x8x32xf32>
    tpu.vector_store %arg17[%c0_66, %c0_67, %c0_68], %136 {strides = array<i32>} : memref<1x8x32xf32, #tpu.memory_space<vmem>>, vector<1x8x32xf32>,
    return
  }
  func.func @transform_0(%arg0: i32, %arg1: i32) -> (i32, i32, i32) {
    %c0_i32 = arith.constant 0 : i32
    %c0_i32_0 = arith.constant 0 : i32
    %c0_i32_1 = arith.constant 0 : i32
    return %arg0, %c0_i32, %c0_i32_0 : i32, i32, i32
  }
  func.func @transform_1(%arg0: i32, %arg1: i32) -> (i32, i32) {
    %c0_i32 = arith.constant 0 : i32
    %c0_i32_0 = arith.constant 0 : i32
    %c0_i32_1 = arith.constant 0 : i32
    return %c0_i32, %c0_i32_0 : i32, i32
  }
  func.func @transform_2(%arg0: i32, %arg1: i32) -> (i32, i32) {
    %c0_i32 = arith.constant 0 : i32
    %c0_i32_0 = arith.constant 0 : i32
    %c0_i32_1 = arith.constant 0 : i32
    return %c0_i32, %c0_i32_0 : i32, i32
  }
  func.func @transform_3(%arg0: i32, %arg1: i32) -> (i32, i32) {
    %c0_i32 = arith.constant 0 : i32
    %c0_i32_0 = arith.constant 0 : i32
    %c0_i32_1 = arith.constant 0 : i32
    return %c0_i32, %c0_i32_0 : i32, i32
  }
  func.func @transform_4(%arg0: i32, %arg1: i32) -> (i32, i32) {
    %c0_i32 = arith.constant 0 : i32
    %c0_i32_0 = arith.constant 0 : i32
    %c0_i32_1 = arith.constant 0 : i32
    return %c0_i32, %c0_i32_0 : i32, i32
  }
  func.func @transform_5(%arg0: i32, %arg1: i32) -> (i32, i32, i32) {
    %c0_i32 = arith.constant 0 : i32
    %c0_i32_0 = arith.constant 0 : i32
    %c0_i32_1 = arith.constant 0 : i32
    %c0_i32_2 = arith.constant 0 : i32
    return %c0_i32, %c0_i32_0, %c0_i32_1 : i32, i32, i32
  }
  func.func @transform_6(%arg0: i32, %arg1: i32) -> (i32, i32) {
    %c0_i32 = arith.constant 0 : i32
    %c0_i32_0 = arith.constant 0 : i32
    %c0_i32_1 = arith.constant 0 : i32
    return %c0_i32, %c0_i32_0 : i32, i32
  }
  func.func @transform_7(%arg0: i32, %arg1: i32) -> (i32, i32) {
    %c0_i32 = arith.constant 0 : i32
    %c0_i32_0 = arith.constant 0 : i32
    %c0_i32_1 = arith.constant 0 : i32
    return %c0_i32, %c0_i32_0 : i32, i32
  }
  func.func @transform_8(%arg0: i32, %arg1: i32) -> (i32, i32) {
    %c0_i32 = arith.constant 0 : i32
    %c0_i32_0 = arith.constant 0 : i32
    %c0_i32_1 = arith.constant 0 : i32
    return %c0_i32, %c0_i32_0 : i32, i32
  }
  func.func @transform_9(%arg0: i32, %arg1: i32) -> (i32, i32) {
    %c0_i32 = arith.constant 0 : i32
    %c0_i32_0 = arith.constant 0 : i32
    %c0_i32_1 = arith.constant 0 : i32
    return %c0_i32, %c0_i32_0 : i32, i32
  }
  func.func @transform_10(%arg0: i32, %arg1: i32) -> (i32, i32) {
    %c0_i32 = arith.constant 0 : i32
    %c0_i32_0 = arith.constant 0 : i32
    %c0_i32_1 = arith.constant 0 : i32
    return %c0_i32, %c0_i32_0 : i32, i32
  }
  func.func @transform_11(%arg0: i32, %arg1: i32) -> (i32, i32) {
    %c0_i32 = arith.constant 0 : i32
    %c0_i32_0 = arith.constant 0 : i32
    %c0_i32_1 = arith.constant 0 : i32
    return %c0_i32, %c0_i32_0 : i32, i32
  }
  func.func @transform_12(%arg0: i32, %arg1: i32) -> (i32, i32) {
    %c0_i32 = arith.constant 0 : i32
    %c0_i32_0 = arith.constant 0 : i32
    %c0_i32_1 = arith.constant 0 : i32
    return %c0_i32, %c0_i32_0 : i32, i32
  }
  func.func @transform_13(%arg0: i32, %arg1: i32) -> (i32, i32) {
    %c0_i32 = arith.constant 0 : i32
    %c0_i32_0 = arith.constant 0 : i32
    %c0_i32_1 = arith.constant 0 : i32
    return %c0_i32, %c0_i32_0 : i32, i32
  }
  func.func @transform_14(%arg0: i32, %arg1: i32) -> (i32, i32) {
    %c0_i32 = arith.constant 0 : i32
    %c0_i32_0 = arith.constant 0 : i32
    %c0_i32_1 = arith.constant 0 : i32
    return %c0_i32, %c0_i32_0 : i32, i32
  }
  func.func @transform_15(%arg0: i32, %arg1: i32) -> (i32, i32, i32) {
    %c0_i32 = arith.constant 0 : i32
    %c0_i32_0 = arith.constant 0 : i32
    return %arg0, %arg1, %c0_i32 : i32, i32, i32
  }
  func.func @transform_16(%arg0: i32, %arg1: i32) -> (i32, i32, i32, i32) {
    %c0_i32 = arith.constant 0 : i32
    %c0_i32_0 = arith.constant 0 : i32
    %c0_i32_1 = arith.constant 0 : i32
    return %arg0, %c0_i32, %arg1, %c0_i32_0 : i32, i32, i32, i32
  }
}

</mosaic_0001>

<bundles_post_ra>
// kernel: tpu_custom_call.1
= control target key start
LH: loop header
LB: loop body
LE: loop exit
PB: predicated region body
PF: predicated region fallthrough
CT: control target
= control target key end

     0   :  { %s3285_s0 = inlined_call_operand.vmem [shape: f32[2,8,32], index: 0, kind: input, shape index: {}]   ;;  %s3286_s1 = inlined_call_operand.vmem [shape: bf16[32,32], index: 1, kind: input, shape index: {}]   ;;  %s3287_s2 = inlined_call_operand.vmem [shape: f32[1,32], index: 2, kind: input, shape index: {}]   ;;  %s3288_s3 = inlined_call_operand.vmem [shape: bf16[32,64], index: 3, kind: input, shape index: {}]   ;;  %s3289_s4 = inlined_call_operand.vmem [shape: f32[1,64], index: 4, kind: input, shape index: {}]   ;;  %s3290_s5 = inlined_call_operand.hbm [shape: bf16[4,8,32], index: 5, kind: input, shape index: {}]   ;;  %s3291_s6 = inlined_call_operand.vmem [shape: f32[1,32], index: 6, kind: input, shape index: {}]   ;;  %s3292_s7 = inlined_call_operand.hbm [shape: bf16[32,64], index: 7, kind: input, shape index: {}]   ;;  %s3293_s8 = inlined_call_operand.vmem [shape: f32[1,64], index: 8, kind: input, shape index: {}]   ;;  %s3294_s9 = inlined_call_operand.vmem [shape: bf16[64,32], index: 9, kind: input, shape index: {}]   ;;  %s3295_s10 = inlined_call_operand.vmem [shape: f32[1,32], index: 10, kind: input, shape index: {}]   ;;  %s3296_s11 = inlined_call_operand.vmem [shape: f32[1,32], index: 11, kind: input, shape index: {}]   ;;  %s3297_s12 = inlined_call_operand.vmem [shape: f32[1,32], index: 12, kind: input, shape index: {}]   ;;  %s3298_s13 = inlined_call_operand.vmem [shape: f32[1,32], index: 13, kind: input, shape index: {}]   ;;  %s3299_s14 = inlined_call_operand.vmem [shape: f32[1,32], index: 14, kind: input, shape index: {}]   ;;  %s3300_s15 = inlined_call_operand.hbm [shape: f32[2,8,32], index: 15, kind: output, shape index: {0}]   ;;  %s3301_s16 = inlined_call_operand.hbm [shape: bf16[2,4,8,8], index: 16, kind: output, shape index: {1}]  }
   0x1   :  { %3315 = sst [smem:[#allocation23_spill]] %s3285_s0 }
   0x2   :  { %3316 = sst [smem:[#allocation24_spill]] %s3286_s1 }
   0x3   :  { %3317 = sst [smem:[#allocation25_spill]] %s3298_s13 }
   0x4   :  { %3318 = sst [smem:[#allocation26_spill]] %s3299_s14 }
   0x5   :  { %3319 = sst [smem:[#allocation27_spill]] %s3300_s15 }
   0x6   :  { %3320 = sst [smem:[#allocation28_spill]] %s3301_s16 }
   0x7   :  { %22 = vsyncpa [#allocation5], 0 }
   0x8   :  { %23 = vsyncpa [#allocation8], 0 }
   0x9   :  { %24 = vsyncpa [#allocation6], 0 }
   0xa   :  { %26 = vsyncpa [#allocation6 + $0x1], 0 }
   0xb   :  { %27 = vsyncpa [#allocation11], 0 }
   0xc   :  { %29 = vsyncpa [#allocation11 + $0x1], 0  ;;  %s2801_s21 = smov 0   ;;  %s2803_s22 = smov 0  }
   0xd   :  { %s2805_s23 = smov 0   ;;  %s2807_s24 = smov 0  }
   0xe   :  { %s2809_s25 = smov 0   ;;  %s2811_s26 = smov 0  }
   0xf LB: > { %3321 = sst [smem:[#allocation16_spill]] %s2678_s21  ;;  %s2194_s27 = sadd.s32 4294967295, %s2698_s26   ;;  %s2698_s26 = sphi %s2811_s26, %s35_s26   ;;  %s2694_s25 = sphi %s2809_s25, %s3351_s25   ;;  %s2690_s24 = sphi %s2807_s24, %s3350_s24   ;;  %s2686_s23 = sphi %s2805_s23, %s3349_s23   ;;  %s2682_s22 = sphi %s2803_s22, %s3353_s22   ;;  %s2678_s21 = sphi %s2801_s21, %s3352_s21  }
  0x10   : > { %3322 = sst [smem:[#allocation17_spill]] %s2686_s23  ;;  %s2195_s28 = sadd.s32 4294967294, %s2698_s26  }
  0x11   : > { %3323 = sst [smem:[#allocation18_spill]] %s2694_s25  ;;  %s47_s29 = sadd.s32 1, %s2694_s25 }
  0x12   : > { %3324 = sst [smem:[#allocation19_spill]] %s2698_s26  ;;  %s376_s30 = sadd.s32 1, %s2686_s23 }
  0x13   : > { %p49_p0 = scmp.ge.s32.totalorder %s47_s29, 2  ;;  %p386_p1 = scmp.ne.s32.totalorder %s2686_s23, %s2682_s22 }
  0x14   : > { %p387_p2 = scmp.eq.s32.totalorder %s2194_s27, 1  ;;  %p392_p3 = scmp.ne.s32.totalorder %s2682_s22, %s2678_s21 }
  0x15   : > { %s3355_s29 = smov (%p49_p0, %s47_s29), 0  ;;  %p393_p5 = scmp.eq.s32.totalorder %s2195_s28, 1 }
  0x16   : > { %3325 = sst [smem:[#allocation20_spill]] %s3355_s29  ;;  %p2841_p4 = por %p387_p2, %p386_p1 }
  0x17   : > { %s371_s17 = ssub.s32 %s2694_s25, %s3355_s29  ;;  %p2196_p6 = scmp.ge.s32.totalorder %s2698_s26, 1 }
  0x18   : > { %s3326_s0 = scalar_select %p2841_p4, 1, 0 }
  0x19   : > { %p374_p7 = scmp.eq.s32.totalorder %s371_s17, 0  ;;  %p2848_p8 = por %p393_p5, %p392_p3 }
  0x1a   : > { %p428_p9 = scmp.lt.s32.totalorder %s2698_s26, 3  ;;  %p2860_p11 = scmp.eq.s32.totalorder %s2194_s27, 0 }
  0x1b   : > { %s3327_s18 = scalar_select %p2848_p8, 1, 0 }
  0x1c   : > { %s2854_s19 = scalar_select %p374_p7, %s2686_s23, %s376_s30  }
  0x1d   : > { %3328 = sst [smem:[#allocation21_spill]] %s3327_s18  ;;  %p2856_p10 = pnand %p2196_p6, %p428_p9 }
  0x1e   : > { %3329 = sst [smem:[#allocation22_spill]] %s2854_s19  ;;  %s2700_s28 = smov [#allocation4]  }
  0x1f   : > { %s3330_s20 = scalar_select %p2856_p10, 1, 0 }
  0x20   : > { %s3331_s21 = scalar_select %p2860_p11, 1, 0 }
  0x21   : > { %p2413_p12 = pneg %p2856_p10  ;;  %s452_s17 = sshll.u32 %s2700_s28, 4  ;;  %s453_s17 = int_to_ptr.vmem [resolvable:$true] %s452_s17 }
  0x22   : > { %s2701_s30 = smov [#allocation7]   ;;  %s2524_s23 = scalar_lea.hbm %s3290_s5, 256 }
  0x23   : > { %p2868_p13 = pnand %p2860_p11, %p2413_p12  ;;  %s468_s25 = sshll.u32 %s2701_s30, 4  ;;  %s2872_s25 = int_to_ptr.vmem [resolvable:$true] %s468_s25 }
  0x24   : > { %p2525_p0 = scmp.ne.s32.totalorder %s3290_s5, %s2524_s23  ;;  %p2531_p5 = scmp.lt.u32.totalorder %s2524_s23, %s3290_s5 }
  0x25   : > { %p2526_p1 = pneg %p2868_p13 }
  0x27   : > { %p2527_p2 = pnand %p2526_p1, %p2525_p0 }
  0x29   : > { %p2528_p3 = pneg %p2527_p2 }
  0x2b   : > { %p2533_p6 = pnand %p2531_p5, %p2528_p3 }
  0x2d   : > { %2536 = shalt.err (!%p2533_p6)
}
  0x2e   : > { %s2537_s30 = scalar_lea.vmem %s453_s17, 256  ;;  %p2545_p8 = scmp.lt.s32.totalorder %s453_s17, %s453_s17 }
  0x2f   : > { %p2538_p7 = scmp.ne.s32.totalorder %s453_s17, %s2537_s30  ;;  %p2546_p4 = scmp.lt.s32.totalorder %s2537_s30, %s2537_s30 }
  0x31   : > { %p2540_p9 = pnand %p2538_p7, %p2526_p1  ;;  %p2547_p11 = por %p2546_p4, %p2545_p8 }
  0x33   : > { %p2541_p12 = pneg %p2540_p9 }
  0x35   : > { %p2548_p10 = pnand %p2547_p11, %p2541_p12 }
  0x37   : > { %2551 = shalt.err (!%p2548_p10)
}
  0x38   : > { %s2702_s26 = smov 64   ;;  %s2703_s18 = smov 4  }
  0x39   : > { %2416 = dma.hbm_to_vmem [thread:$0]  (!%p2868_p13), %s3290_s5, 256, %s453_s17, [#allocation5], %s2702_s26, %s2702_s26, %s2703_s18  }
  0x3a   : > { %s2552_s28 = scalar_lea.hbm %s3292_s7, 256 }
  0x3b   : > { %p2553_p0 = scmp.ne.s32.totalorder %s3292_s7, %s2552_s28  ;;  %p2559_p10 = scmp.lt.u32.totalorder %s2552_s28, %s3292_s7 }
  0x3d   : > { %p2555_p4 = pnand %p2553_p0, %p2526_p1 }
  0x3f   : > { %p2556_p8 = pneg %p2555_p4 }
  0x41   : > { %p2561_p11 = pnand %p2559_p10, %p2556_p8 }
  0x43   : > { %2564 = shalt.err (!%p2561_p11)
}
  0x44   : > { %s2565_s17 = scalar_lea.vmem %s2872_s25, 256  ;;  %p2573_p6 = scmp.lt.s32.totalorder %s2872_s25, %s2872_s25 }
  0x45   : > { %p2566_p2 = scmp.ne.s32.totalorder %s2872_s25, %s2565_s17  ;;  %p2574_p7 = scmp.lt.s32.totalorder %s2565_s17, %s2565_s17 }
  0x47   : > { %p2568_p3 = pnand %p2566_p2, %p2526_p1  ;;  %p2575_p9 = por %p2574_p7, %p2573_p6 }
  0x49   : > { %p2569_p5 = pneg %p2568_p3 }
  0x4b   : > { %p2576_p12 = pnand %p2575_p9, %p2569_p5 }
  0x4d   : > { %2579 = shalt.err (!%p2576_p12)
}
  0x4e   : > { %2419 = dma.hbm_to_vmem [thread:$0]  (!%p2868_p13), %s3292_s7, 256, %s2872_s25, [#allocation8], %s2702_s26, %s2702_s26, %s2703_s18  }
  0x4f   : > { %p3333_p0 = scmp.ne.s32.totalorder %s3330_s20, 0 }
  0x50   : > { %p3334_p4 = scmp.ne.s32.totalorder (!%p3333_p0), %s3331_s21, 0 }
  0x51   : > { %512 = sbr.rel (%p3333_p0) target bundleno = 2520 (0x9d8), region = 80 }
  0x58   : > { %2661 = dma.done.wait (%p3334_p4), [#allocation5], 256  }
  0x59   : > { %2663 = vsyncadd (%p3334_p4), [#allocation5], 4294967040 }
  0x5a   : > { %2665 = dma.done.wait (%p3334_p4), [#allocation8], 256  }
  0x5b   : > { %2667 = vsyncadd (%p3334_p4), [#allocation8], 4294967040  ;;  %p570_p1 = scmp.lt.s32.totalorder %s2690_s24, 1  ;;  %v2704_v0 = vmov 0.0   ;;  %vm2705_vm0 = vmmov 0   ;;  %v2494_v1 = vld [vmem:[%s3288_s3] sm:$0xff]   ;;  %v663_v22 = vlaneseq }
  0x5c   : > { %2293 = vmatprep.subr.bf16.mxu0 %v2704_v0  ;;  %2301 = vmatprep.subr.bf16.mxu1 %v2704_v0  ;;  %s3335_s1 = sld [smem:[#allocation24_spill]]  ;;  %s3336_s23 = sld [smem:[#allocation23_spill]]  ;;  %v2496_v3 = vld [vmem:[%s3288_s3 + $0x8] sm:$0xff]   ;;  %vm604_vm1 = vcmask 261120   ;;  %v2206_v7 = vld [vmem:[%s3289_s4] ss:$0 sm:$0xff] }
  0x5d   : > { %2297 = vmatprep.mubr.msk.bf16.mxu0 %vm2705_vm0, %v2704_v0  ;;  %s571_s16 = scalar_select %p570_p1, %s2690_s24, 1  ;;  %2305 = vmatprep.mubr.msk.bf16.mxu1 %vm2705_vm0, %v2704_v0  ;;  %v2214_v8 = vld [vmem:[%s3287_s2] ss:$0 sm:$0xff]  ;;  %v2709_v20 = vmov 1983009808   ;;  %v664_v26 = vshrl.u32 %v663_v22, 7 }
  0x5e   : > { %2294 = vmatpush3.bf16.msra.mxu0 %v2494_v1  ;;  %s2706_s29 = smov 104   ;;  %s2707_s21 = smov 120   ;;  %v661_v21 = vunpack.c.l.s4 %v2709_v20  ;;  %v2710_v23 = vmov 1934713408   ;;  %vm798_vm2 = vcmask 60416   ;;  %vm1185_vm3 = vcmask 64512  }
  0x5f   : > { %s2205_s25 = sshll.u32 %s571_s16, 3  ;;  %2295 = vmatprep.subr.bf16.mxu0 %v2704_v0  ;;  %s2708_s20 = smov 112   ;;  %v693_v24 = vunpack.c.l.s4 %v2710_v23  ;;  %vm1430_vm4 = vcmask 1043456   ;;  %vm1956_vm5 = vcmask 523264  }
  0x60   : > { %v662_v25 = vunpack.c.0.s8 %v661_v21  ;;  %s2711_s26 = smov 96   ;;  %s3102_s18 = sand.u32 1, %s2682_s22  }
  0x61   : > { %v694_v29 = vunpack.c.0.s8 %v693_v24  ;;  %s2204_s15 = sshll.u32 %s3102_s18, 4  ;;  %s2254_s13 = sshll.u32 %s2690_s24, 8 }
  0x62   : > { %v2495_v2 = vld [vmem:[%s3335_s1] sm:$0xff]   ;;  %s573_s19 = scalar_lea.vmem %s3336_s23, %s2205_s25  ;;  %v2497_v4 = vld [vmem:[%s3335_s1 + $0x8] sm:$0xff]   ;;  %2296 = vmatpush3.bf16.msra.mxu0 %v2496_v3  ;;  %v2983_v30 = vsub.s32 %v662_v25, %v664_v26  ;;  %s3109_s23 = scalar_lea.vmem [#allocation10], %s2204_s15 }
  0x63   : > { %2302 = vmatpush3.bf16.msra.mxu1 %v2495_v2  ;;  %v2956_v5 = vld [vmem:[%s573_s19] sm:$0xff]  ;;  %2309 = vmatprep.subr.bf16.mxu0 %v2704_v0  ;;  %v2995_v37 = vsub.s32 %v694_v29, %v664_v26  ;;  %s2065_s17 = sshll.u32 %s3109_s23, 4  ;;  %s3337_s25 = sld [smem:[#allocation28_spill]]  ;;  %s3194_s17 = int_to_ptr.vmem [resolvable:$true] %s2065_s17 }
  0x64   : > { %2303 = vmatprep.subr.bf16.mxu1 %v2704_v0  ;;  %v580_v6 = vpack.c.bf16 %v2956_v5, %v2956_v5  ;;  %p3339_p8 = scmp.ne.s32.totalorder %s3326_s0, 0  ;;  %s2712_s15 = smov [#allocation10]  }
  0x65   : > { %s2584_s19 = sshll.u32 %s2712_s15, 4  ;;  %s2585_s19 = int_to_ptr.vmem [resolvable:$false] %s2584_s19 }
  0x66   : > { %2298 = vmatmul.mubr.msk.bf16.vlgmr.msra.gmra.mrb[0].mxu0 %vm604_vm1, %v580_v6  ;;  %p2587_p2 = scmp.lt.s32.totalorder %s3194_s17, %s2585_s19 }
  0x67   : > { %2304 = vmatpush3.bf16.msra.mxu1 %v2497_v4  ;;  %2311 = vmatprep.mubr.msk.bf16.mxu0 %vm2705_vm0, %v2704_v0 }
  0x68   : > { %2315 = vmatprep.subr.bf16.mxu1 %v2704_v0 }
  0x6a   : > { %2306 = vmatmul.mubr.msk.bf16.vlgmr.msra.gmra.mrb[0].mxu1 %vm604_vm1, %v580_v6 }
  0x6b   : > { %2317 = vmatprep.mubr.msk.bf16.mxu1 %vm2705_vm0, %v2704_v0 }
 0x139   : > { %v642_v9 = vpop.f32.mrb[0].mxu0 }
 0x13a   : > { %v2974_v10 = vadd.f32 %v2206_v7, %v642_v9  ;;  %v2299_v11 = vpop.f32.mrb[1].mxu0 }
 0x13b   : > { %v645_v13 = vpop.f32.mrb[2].mxu0 }
 0x13c   : > { %655 = vrot.lane.b32.xlu1 %v2974_v10, %s2706_s29  ;;  %649 = vrot.lane.b32.xlu0 %v2974_v10, %s2707_s21  ;;  %v2300_v16 = vpop.f32.mrb[3].mxu0 }
 0x13d   : > { %v1024_v12 = vpop.f32.mrb[0].mxu1 }
 0x13e   : > { %v1025_v14 = vadd.f32 %v2214_v8, %v1024_v12  ;;  %v2307_v15 = vpop.f32.mrb[1].mxu1 }
 0x13f   : > { %v1027_v17 = vpop.f32.mrb[2].mxu1 }
 0x140   : > { %v1030_v18 = vmul.f32 0.35355338, %v1025_v14  ;;  %v2308_v19 = vpop.f32.mrb[3].mxu1  ;;  %652 = vrot.lane.b32.xlu0 %v2974_v10, %s2708_s20 }
 0x142   : > { %1032 = vrot.lane.b32.xlu1 %v1030_v18, %s2707_s21  ;;  %s3199_s21 = scalar_lea.hbm %s3337_s25, %s2254_s13 }
 0x144   : > { %1035 = vrot.lane.b32.xlu0 %v1030_v18, %s2708_s20  ;;  %s2037_s20 = scalar_lea.sflag [#allocation11], %s3102_s18 }
 0x146   : > { %1038 = vrot.lane.b32.xlu1 %v1030_v18, %s2706_s29  ;;  %s3338_s29 = smov %s3337_s25 }
 0x1ae   : > { %v2979_v27 = vpop.permute.xlu1 %655  ;;  %v2981_v28 = vpop.permute.xlu0 %649 }
 0x1af   : > { %v674_v31 = vcombine.low %v2981_v28, %v2979_v27  ;;  %v675_v32 = vcombine.high %v2981_v28, %v2979_v27 }
 0x1b1   : > { %v682_v38 = vrot.slane %v674_v31, %v2983_v30  ;;  %v689_v39 = vrot.slane %v675_v32, %v2983_v30 }
 0x1b2   : > { %v2989_v34 = vpop.permute.xlu0 %652 }
 0x1b3   : > { %v658_v35 = vcombine.low %v2974_v10, %v2989_v34  ;;  %v659_v36 = vcombine.high %v2974_v10, %v2989_v34 }
 0x1b4   : > { %v1033_v33 = vpop.permute.xlu1 %1032 }
 0x1b5   : > { %v666_v40 = vrot.slane %v658_v35, %v2983_v30  ;;  %v673_v41 = vrot.slane %v659_v36, %v2983_v30 }
 0x1b6   : > { %v1036_v43 = vpop.permute.xlu0 %1035 }
 0x1b7   : > { %v690_v44 = vcombine.low %v666_v40, %v682_v38  ;;  %v691_v45 = vcombine.high %v666_v40, %v682_v38  ;;  %v706_v46 = vcombine.low %v673_v41, %v689_v39  ;;  %v707_v47 = vcombine.high %v673_v41, %v689_v39 }
 0x1b8   : > { %v1039_v42 = vpop.permute.xlu1 %1038  ;;  %v1041_v50 = vcombine.low %v1030_v18, %v1036_v43  ;;  %v1042_v51 = vcombine.high %v1030_v18, %v1036_v43 }
 0x1b9   : > { %v1057_v48 = vcombine.low %v1033_v33, %v1039_v42  ;;  %v1058_v49 = vcombine.high %v1033_v33, %v1039_v42  ;;  %v698_v52 = vrot.slane %v690_v44, %v2995_v37  ;;  %v705_v53 = vrot.slane %v691_v45, %v2995_v37 }
 0x1ba   : > { %v714_v54 = vrot.slane %v706_v46, %v2995_v37  ;;  %v721_v55 = vrot.slane %v707_v47, %v2995_v37  ;;  %v1049_v58 = vrot.slane %v1041_v50, %v2983_v30  ;;  %v1056_v59 = vrot.slane %v1042_v51, %v2983_v30 }
 0x1bb   : > { %v1065_v56 = vrot.slane %v1057_v48, %v2983_v30  ;;  %v1072_v57 = vrot.slane %v1058_v49, %v2983_v30  ;;  %v726_v60 = vcombine.low %v698_v52, %v705_v53  ;;  %v2210_v61 = vcombine.high %v698_v52, %v705_v53 }
 0x1bc   : > { %v742_v62 = vcombine.low %v714_v54, %v721_v55  ;;  %v2211_v63 = vcombine.high %v714_v54, %v721_v55 }
 0x1bd   : > { %v1073_v1 = vcombine.low %v1049_v58, %v1065_v56  ;;  %v1074_v2 = vcombine.high %v1049_v58, %v1065_v56  ;;  %v1089_v3 = vcombine.low %v1056_v59, %v1072_v57  ;;  %v1090_v4 = vcombine.high %v1056_v59, %v1072_v57 }
 0x1be   : > { %v733_v6 = vrot.slane %v726_v60, %v2983_v30  ;;  %v741_v7 = vrot.slane %v2210_v61, %v2983_v30  ;;  %v749_v8 = vrot.slane %v742_v62, %v2983_v30  ;;  %v757_v9 = vrot.slane %v2211_v63, %v2983_v30 }
 0x1bf   : > { %v1081_v11 = vrot.slane %v1073_v1, %v2995_v37  ;;  %v1088_v12 = vrot.slane %v1074_v2, %v2995_v37  ;;  %v1097_v13 = vrot.slane %v1089_v3, %v2995_v37  ;;  %v1104_v14 = vrot.slane %v1090_v4, %v2995_v37 }
 0x1c0   : > { %v758_v15 = vcombine.low %v733_v6, %v741_v7  ;;  %v759_v16 = vcombine.high %v733_v6, %v741_v7  ;;  %v774_v17 = vcombine.low %v749_v8, %v757_v9  ;;  %v775_v18 = vcombine.high %v749_v8, %v757_v9 }
 0x1c1   : > { %v1109_v19 = vcombine.low %v1081_v11, %v1088_v12  ;;  %v2218_v20 = vcombine.high %v1081_v11, %v1088_v12  ;;  %v1125_v21 = vcombine.low %v1097_v13, %v1104_v14  ;;  %v2219_v22 = vcombine.high %v1097_v13, %v1104_v14 }
 0x1c2   : > { %v766_v23 = vrot.slane %v758_v15, %v2995_v37  ;;  %v773_v24 = vrot.slane %v759_v16, %v2995_v37  ;;  %v782_v25 = vrot.slane %v774_v17, %v2995_v37  ;;  %v789_v26 = vrot.slane %v775_v18, %v2995_v37 }
 0x1c3   : > { %v1116_v35 = vrot.slane %v1109_v19, %v2983_v30  ;;  %v1124_v36 = vrot.slane %v2218_v20, %v2983_v30  ;;  %v1132_v38 = vrot.slane %v1125_v21, %v2983_v30  ;;  %v1140_v39 = vrot.slane %v2219_v22, %v2983_v30 }
 0x1c4   : > { %v790_v29 = vcombine.low %v766_v23, %v782_v25  ;;  %v791_v31 = vcombine.high %v766_v23, %v782_v25  ;;  %v792_v32 = vcombine.low %v773_v24, %v789_v26  ;;  %v793_v33 = vcombine.high %v773_v24, %v789_v26 }
 0x1c5   : > { %v1141_v44 = vcombine.low %v1116_v35, %v1124_v36  ;;  %v1157_v45 = vcombine.low %v1132_v38, %v1140_v39  ;;  %v1142_v52 = vcombine.high %v1116_v35, %v1124_v36  ;;  %v1158_v53 = vcombine.high %v1132_v38, %v1140_v39 }
 0x1c6   : > { %v794_v40 = vpack.c.bf16 %v790_v29, %v790_v29  ;;  %v795_v41 = vpack.c.bf16 %v791_v31, %v791_v31  ;;  %v796_v42 = vpack.c.bf16 %v792_v32, %v792_v32  ;;  %v797_v43 = vpack.c.bf16 %v793_v33, %v793_v33 }
 0x1c7   : > { %v1149_v46 = vrot.slane %v1141_v44, %v2995_v37  ;;  %v1165_v47 = vrot.slane %v1157_v45, %v2995_v37  ;;  %v1156_v60 = vrot.slane %v1142_v52, %v2995_v37  ;;  %v1172_v61 = vrot.slane %v1158_v53, %v2995_v37 }
 0x1c8   : > { %799 = vst.msk [vmem:[#allocation2] sm:$0xf] %vm798_vm2, %v794_v40  ;;  %800 = vst.msk [vmem:[#allocation2 + $0x4] sm:$0xf] %vm798_vm2, %v795_v41 }
 0x1c9   : > { %801 = vst.msk [vmem:[#allocation2 + $0x8] sm:$0xf] %vm798_vm2, %v796_v42  ;;  %802 = vst.msk [vmem:[#allocation2 + $0xc] sm:$0xf] %vm798_vm2, %v797_v43  ;;  %v1173_v54 = vcombine.low %v1149_v46, %v1165_v47  ;;  %v1174_v55 = vcombine.high %v1149_v46, %v1165_v47  ;;  %v1175_v1 = vcombine.low %v1156_v60, %v1172_v61 }
 0x1ca   : > { %v1176_v2 = vcombine.high %v1156_v60, %v1172_v61 }
 0x1cb   : > { %v1177_v58 = vpack.c.bf16 %v1173_v54, %v1173_v54  ;;  %v1178_v59 = vpack.c.bf16 %v1174_v55, %v1174_v55  ;;  %v1179_v3 = vpack.c.bf16 %v1175_v1, %v1175_v1 }
 0x1cc   : > { %v1180_v4 = vpack.c.bf16 %v1176_v2, %v1176_v2 }
 0x1cf   : > { %v1181_v48 = vld [vmem:[#allocation2] sm:$0xf]  ;;  %v1182_v49 = vld [vmem:[#allocation2 + $0x4] sm:$0xf] }
 0x1d0   : > { %v1190_v50 = vsel %vm1185_vm3, %v1181_v48, 0  ;;  %v1236_v51 = vsel %vm1185_vm3, %v1182_v49, 0  ;;  %v1183_v56 = vld [vmem:[#allocation2 + $0x8] sm:$0xf]  ;;  %v1184_v57 = vld [vmem:[#allocation2 + $0xc] sm:$0xf] }
 0x1d1   : > { %2310 = vmatpush3.bf16.xpose.msra.mxu0 %v1190_v50  ;;  %2316 = vmatpush3.bf16.xpose.msra.mxu1 %v1236_v51  ;;  %v1282_v62 = vsel %vm1185_vm3, %v1183_v56, 0  ;;  %v1328_v63 = vsel %vm1185_vm3, %v1184_v57, 0 }
 0x1d2   : > { %2321 = vmatprep.subr.bf16.mxu0 %v2704_v0  ;;  %2327 = vmatprep.subr.bf16.mxu1 %v2704_v0 }
 0x1d8   : > { %2312 = vmatmul.mubr.msk.bf16.vlgmr.msra.gmra.mrb[4].mxu0 %vm1185_vm3, %v1177_v58  ;;  %2318 = vmatmul.mubr.msk.bf16.vlgmr.msra.gmra.mrb[4].mxu1 %vm1185_vm3, %v1178_v59 }
 0x1d9   : > { %2322 = vmatpush3.bf16.xpose.msra.mxu0 %v1282_v62  ;;  %2328 = vmatpush3.bf16.xpose.msra.mxu1 %v1328_v63 }
 0x1da   : > { %2323 = vmatprep.mubr.msk.bf16.mxu0 %vm2705_vm0, %v2704_v0  ;;  %2329 = vmatprep.mubr.msk.bf16.mxu1 %vm2705_vm0, %v2704_v0 }
 0x1db   : > { %2333 = vmatprep.subr.bf16.mxu0 %v2704_v0  ;;  %2339 = vmatprep.subr.bf16.mxu1 %v2704_v0 }
 0x1e0   : > { %2324 = vmatmul.mubr.msk.bf16.vlgmr.msra.gmra.mrb[8].mxu0 %vm1185_vm3, %v1179_v3  ;;  %2330 = vmatmul.mubr.msk.bf16.vlgmr.msra.gmra.mrb[8].mxu1 %vm1185_vm3, %v1180_v4 }
 0x1e1   : > { %2335 = vmatprep.mubr.msk.bf16.mxu0 %vm2705_vm0, %v2704_v0  ;;  %2341 = vmatprep.mubr.msk.bf16.mxu1 %vm2705_vm0, %v2704_v0 }
 0x2ab   : > { %v1226_v6 = vpop.f32.mrb[4].mxu0  ;;  %v1272_v7 = vpop.f32.mrb[4].mxu1 }
 0x2ac   : > { %v2313_v8 = vpop.f32.mrb[5].mxu0  ;;  %v2319_v9 = vpop.f32.mrb[5].mxu1  ;;  %v1373_v11 = vsel %vm1185_vm3, %v1272_v7, -inf  ;;  %v1370_v12 = vsel %vm1185_vm3, %v1226_v6, -inf }
 0x2ad   : > { %1374 = vmax.xlane.f32.xlu1 %v1373_v11  ;;  %v1275_v13 = vpop.f32.mrb[6].mxu1  ;;  %1371 = vmax.xlane.f32.xlu0 %v1370_v12  ;;  %v1229_v14 = vpop.f32.mrb[6].mxu0 }
 0x2ae   : > { %v2314_v15 = vpop.f32.mrb[7].mxu0  ;;  %v2320_v16 = vpop.f32.mrb[7].mxu1 }
 0x2b3   : > { %v1318_v17 = vpop.f32.mrb[8].mxu0  ;;  %v1364_v18 = vpop.f32.mrb[8].mxu1 }
 0x2b4   : > { %v2325_v19 = vpop.f32.mrb[9].mxu0  ;;  %v2331_v20 = vpop.f32.mrb[9].mxu1  ;;  %v1376_v21 = vsel %vm1185_vm3, %v1318_v17, -inf  ;;  %v1379_v26 = vsel %vm1185_vm3, %v1364_v18, -inf }
 0x2b5   : > { %v1367_v22 = vpop.f32.mrb[10].mxu1  ;;  %1377 = vmax.xlane.f32.xlu0 %v1376_v21  ;;  %v1321_v23 = vpop.f32.mrb[10].mxu0 }
 0x2b6   : > { %v2326_v24 = vpop.f32.mrb[11].mxu0  ;;  %v2332_v25 = vpop.f32.mrb[11].mxu1 }
 0x2b9   : > { %1380 = vmax.xlane.f32.xlu0 %v1379_v26 }
 0x2be   : > { %803 = vrot.lane.b32.xlu1 %v2974_v10, %s2711_s26 }
 0x2c2   : > { %807 = vrot.lane.b32.xlu1 %v2989_v34, %s2711_s26 }
 0x2c6   : > { %809 = vrot.lane.b32.xlu1 %v2979_v27, %s2711_s26 }
 0x2cf   : > { %805 = vrot.lane.b32.xlu0 %v2981_v28, %s2711_s26  ;;  %s2580_s26 = scalar_lea.vmem %s3194_s17, 256 }
 0x2d0   : > { %p2581_p13 = scmp.ne.s32.totalorder %s3194_s17, %s2580_s26 }
 0x2d2   : > { %p2582_p10 = pnand %p2581_p13, %p3339_p8 }
 0x2d4   : > { %p2583_p11 = pneg %p2582_p10 }
 0x33a   : > { %v1375_v29 = vpop.xlane.xlu1 %1374  ;;  %v1372_v31 = vpop.xlane.xlu0 %1371 }
 0x33b   : > { %v1383_v32 = vsub.f32 %v1272_v7, %v1375_v29  ;;  %v1382_v33 = vsub.f32 %v1226_v6, %v1372_v31 }
 0x33d   : > { %v1388_v35 = vmul.f32 1.442695, %v1383_v32  ;;  %v1386_v36 = vmul.f32 1.442695, %v1382_v33 }
 0x33e   : > { %v804_v38 = vpop.permute.xlu1 %803 }
 0x33f   : > { %2504 = vpow2.f32 %v1388_v35 }
 0x340   : > { %2506 = vpow2.f32 %v1386_v36 }
 0x342   : > { %v1378_v39 = vpop.xlane.xlu0 %1377  ;;  %v808_v41 = vpop.permute.xlu1 %807 }
 0x343   : > { %v1384_v40 = vsub.f32 %v1318_v17, %v1378_v39  ;;  %v815_v27 = vcombine.low %v804_v38, %v808_v41  ;;  %v816_v28 = vcombine.high %v804_v38, %v808_v41 }
 0x345   : > { %v1390_v42 = vmul.f32 1.442695, %v1384_v40  ;;  %v823_v52 = vrot.slane %v815_v27, %v2983_v30  ;;  %v830_v53 = vrot.slane %v816_v28, %v2983_v30 }
 0x346   : > { %v1381_v10 = vpop.xlane.xlu0 %1380  ;;  %v810_v46 = vpop.permute.xlu1 %809 }
 0x347   : > { %2508 = vpow2.f32 %v1390_v42  ;;  %v1385_v34 = vsub.f32 %v1364_v18, %v1381_v10 }
 0x349   : > { %v3061_v43 = vpop.eup %2504  ;;  %v1392_v44 = vmul.f32 1.442695, %v1385_v34 }
 0x34a   : > { %v3063_v45 = vpop.eup %2506  ;;  %v806_v47 = vpop.permute.xlu0 %805  ;;  %v1397_v48 = vsel %vm1185_vm3, %v3061_v43, 0.0 }
 0x34b   : > { %2510 = vpow2.f32 %v1392_v44  ;;  %v831_v49 = vcombine.low %v806_v47, %v810_v46  ;;  %v832_v50 = vcombine.high %v806_v47, %v810_v46  ;;  %1398 = vadd.xlane.f32.xlu1 %v1397_v48  ;;  %v1394_v51 = vsel %vm1185_vm3, %v3063_v45, 0.0 }
 0x34c   : > { %1395 = vadd.xlane.f32.xlu0 %v1394_v51 }
 0x34d   : > { %v839_v54 = vrot.slane %v831_v49, %v2983_v30  ;;  %v846_v55 = vrot.slane %v832_v50, %v2983_v30  ;;  %v1616_v50 = vld [vmem:[#allocation4 + $0x4] sm:$0xf] }
 0x34f   : > { %v847_v56 = vcombine.low %v823_v52, %v839_v54  ;;  %v848_v57 = vcombine.high %v823_v52, %v839_v54  ;;  %v863_v58 = vcombine.low %v830_v53, %v846_v55  ;;  %v864_v59 = vcombine.high %v830_v53, %v846_v55 }
 0x350   : > { %v1621_v53 = vsel %vm1430_vm4, %v1616_v50, 0  ;;  %v2501_v50 = vld [vmem:[%s3294_s9 + $0x8] sm:$0xff]  }
 0x351   : > { %v3073_v60 = vpop.eup %2508  ;;  %v855_v61 = vrot.slane %v847_v56, %v2995_v37  ;;  %v862_v62 = vrot.slane %v848_v57, %v2995_v37  ;;  %v871_v63 = vrot.slane %v863_v58, %v2995_v37  ;;  %v878_v1 = vrot.slane %v864_v59, %v2995_v37  ;;  %v1613_v56 = vld [vmem:[#allocation4] sm:$0xf]  ;;  %v1711_v58 = vld [vmem:[#allocation4 + $0x8] sm:$0xf]  ;;  %v1761_v59 = vld [vmem:[#allocation4 + $0xc] sm:$0xf] }
 0x352   : > { %v1400_v2 = vsel %vm1185_vm3, %v3073_v60, 0.0  ;;  %v1667_v57 = vsel %vm1430_vm4, %v1613_v56, 0 }
 0x353   : > { %v883_v3 = vcombine.low %v855_v61, %v862_v62  ;;  %v2212_v4 = vcombine.high %v855_v61, %v862_v62  ;;  %v899_v6 = vcombine.low %v871_v63, %v878_v1  ;;  %v2213_v7 = vcombine.high %v871_v63, %v878_v1  ;;  %1401 = vadd.xlane.f32.xlu0 %v1400_v2 }
 0x354   : > { %v1716_v1 = vsel %vm1430_vm4, %v1711_v58, 0 }
 0x355   : > { %v3081_v8 = vpop.eup %2510  ;;  %v890_v9 = vrot.slane %v883_v3, %v2983_v30  ;;  %v898_v11 = vrot.slane %v2212_v4, %v2983_v30  ;;  %v906_v12 = vrot.slane %v899_v6, %v2983_v30  ;;  %v914_v13 = vrot.slane %v2213_v7, %v2983_v30 }
 0x356   : > { %v1403_v14 = vsel %vm1185_vm3, %v3081_v8, 0.0  ;;  %v1766_v6 = vsel %vm1430_vm4, %v1761_v59, 0 }
 0x357   : > { %v915_v15 = vcombine.low %v890_v9, %v898_v11  ;;  %v916_v16 = vcombine.high %v890_v9, %v898_v11  ;;  %v931_v17 = vcombine.low %v906_v12, %v914_v13  ;;  %v932_v18 = vcombine.high %v906_v12, %v914_v13  ;;  %1404 = vadd.xlane.f32.xlu0 %v1403_v14 }
 0x359   : > { %v923_v19 = vrot.slane %v915_v15, %v2995_v37  ;;  %v930_v20 = vrot.slane %v916_v16, %v2995_v37  ;;  %v939_v21 = vrot.slane %v931_v17, %v2995_v37  ;;  %v946_v22 = vrot.slane %v932_v18, %v2995_v37 }
 0x35b   : > { %v947_v23 = vcombine.low %v923_v19, %v939_v21  ;;  %v948_v24 = vcombine.high %v923_v19, %v939_v21  ;;  %v949_v25 = vcombine.low %v930_v20, %v946_v22  ;;  %v950_v30 = vcombine.high %v930_v20, %v946_v22 }
 0x35d   : > { %v951_v26 = vpack.c.bf16 %v947_v23, %v947_v23  ;;  %v952_v29 = vpack.c.bf16 %v948_v24, %v948_v24  ;;  %v953_v31 = vpack.c.bf16 %v949_v25, %v949_v25  ;;  %v954_v32 = vpack.c.bf16 %v950_v30, %v950_v30 }
 0x35f   : > { %955 = vst.msk [vmem:[#allocation3] sm:$0xf] %vm798_vm2, %v951_v26  ;;  %956 = vst.msk [vmem:[#allocation3 + $0x4] sm:$0xf] %vm798_vm2, %v952_v29 }
 0x360   : > { %957 = vst.msk [vmem:[#allocation3 + $0x8] sm:$0xf] %vm798_vm2, %v953_v31  ;;  %958 = vst.msk [vmem:[#allocation3 + $0xc] sm:$0xf] %vm798_vm2, %v954_v32 }
 0x366   : > { %v1423_v33 = vld [vmem:[#allocation3] sm:$0xf]  ;;  %v1424_v37 = vld [vmem:[#allocation3 + $0x4] sm:$0xf] }
 0x367   : > { %v1432_v35 = vsel %vm1430_vm4, %v1423_v33, 0  ;;  %v1478_v36 = vsel %vm1430_vm4, %v1424_v37, 0  ;;  %v1426_v28 = vld [vmem:[#allocation3 + $0xc] sm:$0xf]  ;;  %v1425_v46 = vld [vmem:[#allocation3 + $0x8] sm:$0xf] }
 0x368   : > { %2334 = vmatpush3.bf16.msra.mxu0 %v1432_v35  ;;  %2340 = vmatpush3.bf16.msra.mxu1 %v1478_v36  ;;  %v1570_v48 = vsel %vm1430_vm4, %v1426_v28, 0 }
 0x369   : > { %2345 = vmatprep.subr.bf16.mxu0 %v2704_v0  ;;  %2351 = vmatprep.subr.bf16.mxu1 %v2704_v0 }
 0x3d8   : > { %v1399_v38 = vpop.xlane.xlu1 %1398 }
 0x3d9   : > { %2512 = vrcp.f32 %v1399_v38  ;;  %v1396_v39 = vpop.xlane.xlu0 %1395 }
 0x3da   : > { %2514 = vrcp.f32 %v1396_v39  ;;  %v2232_v39 = vld [vmem:[%s3291_s6] ss:$0 sm:$0xff] }
 0x3e0   : > { %v1402_v40 = vpop.xlane.xlu0 %1401 }
 0x3e1   : > { %2516 = vrcp.f32 %v1402_v40 }
 0x3e3   : > { %v2513_v41 = vpop.eup %2512 }
 0x3e4   : > { %v2515_v42 = vpop.eup %2514  ;;  %v1411_v10 = vmul.f32 %v2513_v41, %v3061_v43  ;;  %v1405_v34 = vpop.xlane.xlu0 %1404  ;;  %v1524_v43 = vsel %vm1430_vm4, %v1425_v46, 0 }
 0x3e5   : > { %v1410_v27 = vmul.f32 %v2515_v42, %v3063_v45  ;;  %2518 = vrcp.f32 %v1405_v34 }
 0x3e6   : > { %v1415_v44 = vpack.c.bf16 %v1411_v10, %v1411_v10 }
 0x3e7   : > { %v1414_v47 = vpack.c.bf16 %v1410_v27, %v1410_v27 }
 0x3e8   : > { %2342 = vmatmul.mubr.msk.bf16.vlgmr.msra.gmra.mrb[12].mxu1 %vm1185_vm3, %v1415_v44  ;;  %1420 = vst.msk [vmem:[%s3109_s23 + $0x4] sm:$0xf] %vm798_vm2, %v1415_v44 }
 0x3e9   : > { %2336 = vmatmul.mubr.msk.bf16.vlgmr.msra.gmra.mrb[12].mxu0 %vm1185_vm3, %v1414_v47  ;;  %2352 = vmatpush3.bf16.msra.mxu1 %v1570_v48  ;;  %1419 = vst.msk [vmem:[%s3109_s23] sm:$0xf] %vm798_vm2, %v1414_v47 }
 0x3ea   : > { %2346 = vmatpush3.bf16.msra.mxu0 %v1524_v43  ;;  %2347 = vmatprep.mubr.msk.bf16.mxu0 %vm2705_vm0, %v2704_v0 }
 0x3eb   : > { %v2517_v45 = vpop.eup %2516  ;;  %2353 = vmatprep.mubr.msk.bf16.mxu1 %vm2705_vm0, %v2704_v0  ;;  %2357 = vmatprep.subr.bf16.mxu0 %v2704_v0 }
 0x3ec   : > { %v1412_v49 = vmul.f32 %v2517_v45, %v3073_v60  ;;  %2363 = vmatprep.subr.bf16.mxu1 %v2704_v0  ;;  %v2498_v45 = vld [vmem:[#allocation7] sm:$0xff]  }
 0x3ee   : > { %v1416_v51 = vpack.c.bf16 %v1412_v49, %v1412_v49  ;;  %v2499_v49 = vld [vmem:[#allocation7 + $0x8] sm:$0xff]  }
 0x3ef   : > { %v2519_v52 = vpop.eup %2518 }
 0x3f0   : > { %v1413_v54 = vmul.f32 %v2519_v52, %v3081_v8  ;;  %1421 = vst.msk [vmem:[%s3109_s23 + $0x8] sm:$0xf] %vm798_vm2, %v1416_v51 }
 0x3f1   : > { %2348 = vmatmul.mubr.msk.bf16.vlgmr.msra.gmra.mrb[16].mxu0 %vm1185_vm3, %v1416_v51 }
 0x3f2   : > { %v1417_v55 = vpack.c.bf16 %v1413_v54, %v1413_v54  ;;  %2358 = vmatpush3.bf16.msra.mxu0 %v1621_v53  ;;  %2359 = vmatprep.mubr.msk.bf16.mxu0 %vm2705_vm0, %v2704_v0 }
 0x3f3   : > { %2369 = vmatprep.subr.bf16.mxu0 %v2704_v0 }
 0x3f4   : > { %2354 = vmatmul.mubr.msk.bf16.vlgmr.msra.gmra.mrb[16].mxu1 %vm1185_vm3, %v1417_v55  ;;  %1422 = vst.msk [vmem:[%s3109_s23 + $0xc] sm:$0xf] %vm798_vm2, %v1417_v55  ;;  %v2233_v55 = vld [vmem:[%s3296_s11] ss:$0 sm:$0xff]  ;;  %s2586_s23 = scalar_lea.vmem %s2585_s19, 512 }
 0x3f5   : > { %2365 = vmatprep.mubr.msk.bf16.mxu1 %vm2705_vm0, %v2704_v0  ;;  %2364 = vmatpush3.bf16.msra.mxu1 %v1667_v57  ;;  %v2234_v57 = vld [vmem:[%s3297_s12] ss:$0 sm:$0xff]  ;;  %p2588_p3 = scmp.lt.s32.totalorder %s2586_s23, %s2580_s26 }
 0x3f6   : > { %2375 = vmatprep.subr.bf16.mxu1 %v2704_v0 }
 0x3f7   : > { %p2589_p5 = por %p2588_p3, %p2587_p2 }
 0x3f9   : > { %p2590_p6 = pnand %p2589_p5, %p2583_p11 }
 0x4bb   : > { %v1514_v60 = vpop.f32.mrb[12].mxu1 }
 0x4bc   : > { %v1468_v61 = vpop.f32.mrb[12].mxu0  ;;  %v1614_v62 = vpack.c.bf16 %v1514_v60, %v1514_v60  ;;  %v2343_v63 = vpop.f32.mrb[13].mxu1 }
 0x4bd   : > { %v1612_v2 = vpack.c.bf16 %v1468_v61, %v1468_v61  ;;  %v2337_v3 = vpop.f32.mrb[13].mxu0  ;;  %v1517_v4 = vpop.f32.mrb[14].mxu1  ;;  %v2502_v61 = vld [vmem:[%s3294_s9 + $0x10] sm:$0xff]   ;;  %v2235_v63 = vld [vmem:[%s3293_s8] ss:$0 sm:$0xff] }
 0x4be   : > { %v1471_v7 = vpop.f32.mrb[14].mxu0  ;;  %v2344_v8 = vpop.f32.mrb[15].mxu1  ;;  %2360 = vmatmul.mubr.msk.bf16.vlgmr.msra.gmra.mrb[20].mxu0 %vm1185_vm3, %v1614_v62  ;;  %v2503_v62 = vld [vmem:[%s3294_s9 + $0x18] sm:$0xff]  }
 0x4bf   : > { %v2338_v9 = vpop.f32.mrb[15].mxu0  ;;  %2366 = vmatmul.mubr.msk.bf16.vlgmr.msra.gmra.mrb[20].mxu1 %vm1185_vm3, %v1612_v2  ;;  %2370 = vmatpush3.bf16.msra.mxu0 %v1716_v1 }
 0x4c0   : > { %2376 = vmatpush3.bf16.msra.mxu1 %v1766_v6  ;;  %2371 = vmatprep.mubr.msk.bf16.mxu0 %vm2705_vm0, %v2704_v0 }
 0x4c1   : > { %2377 = vmatprep.mubr.msk.bf16.mxu1 %vm2705_vm0, %v2704_v0  ;;  %2381 = vmatprep.subr.bf16.mxu0 %v2704_v0 }
 0x4c2   : > { %2389 = vmatprep.subr.bf16.mxu1 %v2704_v0 }
 0x4c4   : > { %v1560_v11 = vpop.f32.mrb[16].mxu0 }
 0x4c5   : > { %v1709_v12 = vpack.c.bf16 %v1560_v11, %v1560_v11  ;;  %v2349_v13 = vpop.f32.mrb[17].mxu0 }
 0x4c6   : > { %v1563_v14 = vpop.f32.mrb[18].mxu0 }
 0x4c7   : > { %v2350_v15 = vpop.f32.mrb[19].mxu0  ;;  %2372 = vmatmul.mubr.msk.bf16.vlgmr.msra.gmra.mrb[24].mxu0 %vm1185_vm3, %v1709_v12  ;;  %v1606_v16 = vpop.f32.mrb[16].mxu1 }
 0x4c8   : > { %v1759_v17 = vpack.c.bf16 %v1606_v16, %v1606_v16  ;;  %v2355_v18 = vpop.f32.mrb[17].mxu1  ;;  %2385 = vmatprep.mubr.msk.bf16.mxu0 %vm2705_vm0, %v2704_v0  ;;  %2382 = vmatpush3.bf16.msra.mxu0 %v2498_v45 }
 0x4c9   : > { %v1609_v19 = vpop.f32.mrb[18].mxu1  ;;  %2383 = vmatprep.subr.bf16.mxu0 %v2704_v0 }
 0x4ca   : > { %v2356_v20 = vpop.f32.mrb[19].mxu1  ;;  %2378 = vmatmul.mubr.msk.bf16.vlgmr.msra.gmra.mrb[24].mxu1 %vm1185_vm3, %v1759_v17 }
 0x4cb   : > { %2397 = vmatprep.mubr.msk.bf16.mxu1 %vm2705_vm0, %v2704_v0 }
 0x4cc   : > { %2384 = vmatpush3.bf16.msra.mxu0 %v2499_v49 }
 0x591   : > { %v1657_v21 = vpop.f32.mrb[20].mxu0 }
 0x592   : > { %v1703_v22 = vpop.f32.mrb[20].mxu1  ;;  %v2361_v23 = vpop.f32.mrb[21].mxu0 }
 0x593   : > { %v1704_v24 = vadd.f32 %v1703_v22, %v1657_v21  ;;  %v2367_v25 = vpop.f32.mrb[21].mxu1  ;;  %v1660_v30 = vpop.f32.mrb[22].mxu0 }
 0x594   : > { %v1706_v26 = vpop.f32.mrb[22].mxu1  ;;  %v2362_v29 = vpop.f32.mrb[23].mxu0 }
 0x595   : > { %v2368_v31 = vpop.f32.mrb[23].mxu1 }
 0x59a   : > { %v1752_v32 = vpop.f32.mrb[24].mxu0 }
 0x59b   : > { %v1758_v33 = vadd.f32 %v1752_v32, %v1704_v24  ;;  %v2373_v37 = vpop.f32.mrb[25].mxu0 }
 0x59c   : > { %v1755_v35 = vpop.f32.mrb[26].mxu0 }
 0x59d   : > { %v2374_v36 = vpop.f32.mrb[27].mxu0  ;;  %v1802_v38 = vpop.f32.mrb[24].mxu1 }
 0x59e   : > { %v1808_v40 = vadd.f32 %v1802_v38, %v1758_v33  ;;  %v2379_v41 = vpop.f32.mrb[25].mxu1 }
 0x59f   : > { %v1805_v42 = vpop.f32.mrb[26].mxu1 }
 0x5a0   : > { %v1816_v10 = vadd.f32 %v2232_v39, %v1808_v40  ;;  %v2380_v34 = vpop.f32.mrb[27].mxu1 }
 0x5a2   : > { %v1817_v27 = vadd.f32 %v1816_v10, %v2956_v5  ;;  %v2500_v5 = vld [vmem:[%s3294_s9] sm:$0xff]  }
 0x5a3   : > { %2390 = vmatpush3.bf16.msra.mxu1 %v2500_v5 }
 0x5a4   : > { %v1818_v28 = vsel %vm604_vm1, %v1817_v27, 0.0  ;;  %2391 = vmatprep.subr.bf16.mxu1 %v2704_v0 }
 0x5a5   : > { %1819 = vadd.xlane.f32.xlu1 %v1818_v28 }
 0x5a7   : > { %2392 = vmatpush3.bf16.msra.mxu1 %v2501_v50 }
 0x5a8   : > { %2393 = vmatprep.subr.bf16.mxu1 %v2704_v0 }
 0x5ab   : > { %2394 = vmatpush3.bf16.msra.mxu1 %v2502_v61 }
 0x5ac   : > { %2395 = vmatprep.subr.bf16.mxu1 %v2704_v0  ;;  %v2239_v0 = vld [vmem:[%s3295_s10] ss:$0 sm:$0xff] }
 0x5af   : > { %2396 = vmatpush3.bf16.msra.mxu1 %v2503_v62 }
 0x632   : > { %v1820_v44 = vpop.xlane.xlu1 %1819 }
 0x633   : > { %v1822_v46 = vmul.f32 0.03125, %v1820_v44 }
 0x635   : > { %v1823_v47 = vsub.f32 %v1817_v27, %v1822_v46 }
 0x637   : > { %v1824_v48 = vmul.f32 %v1823_v47, %v1823_v47 }
 0x639   : > { %v1825_v43 = vsel %vm604_vm1, %v1824_v48, 0.0 }
 0x63a   : > { %1826 = vadd.xlane.f32.xlu0 %v1825_v43 }
 0x6c7   : > { %v1827_v51 = vpop.xlane.xlu0 %1826 }
 0x6c8   : > { %v1828_v52 = vmul.f32 0.03125, %v1827_v51 }
 0x6ca   : > { %v1829_v53 = vadd.f32 1e-05, %v1828_v52 }
 0x6cc   : > { %2520 = vrsqrt.f32 %v1829_v53 }
 0x6d6   : > { %v2521_v54 = vpop.eup %2520 }
 0x6d7   : > { %v1831_v56 = vmul.f32 %v2521_v54, %v1823_v47 }
 0x6d9   : > { %v1839_v58 = vmul.f32 %v2233_v55, %v1831_v56 }
 0x6db   : > { %v1847_v59 = vadd.f32 %v2234_v57, %v1839_v58 }
 0x6dd   : > { %v1848_v60 = vpack.c.bf16 %v1847_v59, %v1847_v59 }
 0x6df   : > { %2386 = vmatmul.mubr.msk.bf16.vlgmr.msra.gmra.mrb[28].mxu0 %vm604_vm1, %v1848_v60 }
 0x7b2   : > { %v1909_v1 = vpop.f32.mrb[28].mxu0 }
 0x7b3   : > { %v1910_v2 = vadd.f32 %v2235_v63, %v1909_v1  ;;  %v2387_v3 = vpop.f32.mrb[29].mxu0 }
 0x7b4   : > { %v1912_v4 = vpop.f32.mrb[30].mxu0 }
 0x7b5   : > { %v1915_v6 = vmax.f32 %v1910_v2, 0.0  ;;  %v2388_v7 = vpop.f32.mrb[31].mxu0 }
 0x7b7   : > { %v1916_v8 = vpack.c.bf16 %v1915_v6, %v1915_v6 }
 0x7b9   : > { %2398 = vmatmul.mubr.msk.bf16.vlgmr.msra.gmra.mrb[28].mxu1 %vm1956_vm5, %v1916_v8 }
 0x88c   : > { %v1994_v9 = vpop.f32.mrb[28].mxu1 }
 0x88d   : > { %v1995_v11 = vadd.f32 %v2239_v0, %v1994_v9  ;;  %v2399_v12 = vpop.f32.mrb[29].mxu1 }
 0x88e   : > { %v1997_v13 = vpop.f32.mrb[30].mxu1 }
 0x88f   : > { %v2400_v14 = vpop.f32.mrb[31].mxu1  ;;  %v2000_v15 = vadd.f32 %v1995_v11, %v1847_v59 }
 0x891   : > { %v2001_v16 = vsel %vm604_vm1, %v2000_v15, 0.0 }
 0x892   : > { %2002 = vadd.xlane.f32.xlu1 %v2001_v16 }
 0x91f   : > { %v2003_v17 = vpop.xlane.xlu1 %2002 }
 0x920   : > { %v2004_v18 = vmul.f32 0.03125, %v2003_v17 }
 0x922   : > { %v2005_v19 = vsub.f32 %v2000_v15, %v2004_v18 }
 0x924   : > { %v2006_v20 = vmul.f32 %v2005_v19, %v2005_v19 }
 0x926   : > { %v2007_v21 = vsel %vm604_vm1, %v2006_v20, 0.0 }
 0x927   : > { %2008 = vadd.xlane.f32.xlu0 %v2007_v21 }
 0x928   : > { %2593 = shalt.err (!%p2590_p6)
}
 0x929   : > { %s2594_s27 = scalar_lea.hbm %s3199_s21, 256  ;;  %s2598_s13 = scalar_lea.hbm %s3338_s29, 512 }
 0x92a   : > { %p2595_p7 = scmp.ne.s32.totalorder %s3199_s21, %s2594_s27  ;;  %p2599_p0 = scmp.lt.u32.totalorder %s3199_s21, %s3338_s29 }
 0x92b   : > { %p2600_p4 = scmp.lt.u32.totalorder %s2598_s13, %s2594_s27  ;;  %p2602_p13 = scmp.lt.u32.totalorder %s2594_s27, %s3199_s21 }
 0x92c   : > { %p2596_p9 = pnand %p2595_p7, %p3339_p8 }
 0x92d   : > { %p2601_p1 = por %p2600_p4, %p2599_p0 }
 0x92e   : > { %p2597_p12 = pneg %p2596_p9 }
 0x92f   : > { %p2603_p10 = por %p2602_p13, %p2601_p1 }
 0x931   : > { %p2604_p11 = pnand %p2603_p10, %p2597_p12 }
 0x933   : > { %2607 = shalt.err (!%p2604_p11)
}
 0x934   : > { %s2713_s25 = smov 64   ;;  %s2714_s26 = smov 4  }
 0x935   : > { %2410 = dma.vmem_to_hbm [thread:$0]  (%p3339_p8), %s3194_s17, 256, %s3199_s21, %s2037_s20, %s2713_s25, %s2713_s25, %s2714_s26  }
 0x936   : > { %s2203_s15 = sshll.u32 %s3102_s18, 3  ;;  %s3340_s27 = sld [smem:[#allocation25_spill]] }
 0x937   : > { %s3341_s13 = sld [smem:[#allocation26_spill]]  ;;  %s2249_s14 = sshll.u32 %s2690_s24, 7 }
 0x938   : > { %s562_s16 = scalar_lea.vmem [#allocation9], %s2203_s15  ;;  %s3342_s25 = sld [smem:[#allocation27_spill]] }
 0x939   : > { %s2051_s17 = sshll.u32 %s562_s16, 4  ;;  %s2032_s19 = scalar_lea.sflag [#allocation6], %s3102_s18  ;;  %s3238_s17 = int_to_ptr.vmem [resolvable:$true] %s2051_s17 }
 0x93a   : > { %s2608_s23 = scalar_lea.vmem %s3238_s17, 128  ;;  %s2715_s24 = smov [#allocation9]  }
 0x93b   : > { %p2609_p2 = scmp.ne.s32.totalorder %s3238_s17, %s2608_s23  ;;  %s2612_s15 = sshll.u32 %s2715_s24, 4  ;;  %s2613_s15 = int_to_ptr.vmem [resolvable:$false] %s2612_s15 }
 0x93c   : > { %v2245_v30 = vld [vmem:[%s3340_s27] ss:$0 sm:$0xff]  ;;  %s2614_s27 = scalar_lea.vmem %s2613_s15, 256  ;;  %p2615_p6 = scmp.lt.s32.totalorder %s3238_s17, %s2613_s15 }
 0x93d   : > { %v2246_v29 = vld [vmem:[%s3341_s13] ss:$0 sm:$0xff]  ;;  %p2610_p3 = pnand %p2609_p2, %p3339_p8  ;;  %p2616_p7 = scmp.lt.s32.totalorder %s2614_s27, %s2608_s23 }
 0x93e   : > { %s3343_s1 = smov %s3342_s25  ;;  %s3236_s26 = scalar_lea.hbm %s3342_s25, %s2249_s14 }
 0x93f   : > { %p2611_p5 = pneg %p2610_p3  ;;  %p2617_p9 = por %p2616_p7, %p2615_p6 }
 0x941   : > { %p2618_p12 = pnand %p2617_p9, %p2611_p5 }
 0x9b4   : > { %v2009_v22 = vpop.xlane.xlu0 %2008 }
 0x9b5   : > { %v2010_v23 = vmul.f32 0.03125, %v2009_v22 }
 0x9b7   : > { %v2011_v24 = vadd.f32 1e-05, %v2010_v23 }
 0x9b9   : > { %2522 = vrsqrt.f32 %v2011_v24 }
 0x9c3   : > { %v2523_v25 = vpop.eup %2522 }
 0x9c4   : > { %v2013_v26 = vmul.f32 %v2523_v25, %v2005_v19 }
 0x9c6   : > { %v2021_v31 = vmul.f32 %v2245_v30, %v2013_v26 }
 0x9c8   : > { %v2029_v32 = vadd.f32 %v2246_v29, %v2021_v31 }
 0x9ca   : > { %2030 = vst.msk [vmem:[%s562_s16] sm:$0xff] %vm604_vm1, %v2029_v32 }
 0x9cb   : > { %2621 = shalt.err (!%p2618_p12)
}
 0x9cc   : > { %s2622_s18 = scalar_lea.hbm %s3236_s26, 128  ;;  %s2626_s13 = scalar_lea.hbm %s3343_s1, 256 }
 0x9cd   : > { %p2623_p0 = scmp.ne.s32.totalorder %s3236_s26, %s2622_s18  ;;  %p2627_p13 = scmp.lt.u32.totalorder %s3236_s26, %s3343_s1 }
 0x9ce   : > { %p2628_p10 = scmp.lt.u32.totalorder %s2626_s13, %s2622_s18  ;;  %p2630_p2 = scmp.lt.u32.totalorder %s2622_s18, %s3236_s26 }
 0x9cf   : > { %p2624_p4 = pnand %p2623_p0, %p3339_p8 }
 0x9d0   : > { %p2629_p11 = por %p2628_p10, %p2627_p13 }
 0x9d1   : > { %p2625_p1 = pneg %p2624_p4 }
 0x9d2   : > { %p2631_p3 = por %p2630_p2, %p2629_p11 }
 0x9d4   : > { %p2632_p5 = pnand %p2631_p3, %p2625_p1 }
 0x9d6   : > { %2635 = shalt.err (!%p2632_p5)
}
 0x9d7   : > { %2409 = dma.vmem_to_hbm [thread:$0]  (%p3339_p8), %s3238_s17, 128, %s3236_s26, %s2032_s19  }
 0x9d8 PF: > { %s3344_s21 = sld [smem:[#allocation19_spill]]  ;;  %s3345_s20 = sld [smem:[#allocation16_spill]] }
 0x9d9   : > { %s3346_s25 = sld [smem:[#allocation21_spill]] }
 0x9de   : > { %p2431_p6 = scmp.ge.s32.totalorder %s3344_s21, 2  ;;  %s2080_s23 = sand.u32 1, %s3345_s20  }
 0x9df   : > { %p3347_p7 = scmp.ne.s32.totalorder %s3346_s25, 0  ;;  %s2081_s24 = scalar_lea.sflag [#allocation6], %s2080_s23 }
 0x9e1   : > { %p2421_p9 = pnand %p2431_p6, %p3347_p7 }
 0x9e3   : > { %2669 = dma.done.wait (!%p2421_p9), %s2081_s24, 128  }
 0x9e4   : > { %2671 = vsyncadd (!%p2421_p9), %s2081_s24, 4294967168  ;;  %s2090_s15 = scalar_lea.sflag [#allocation11], %s2080_s23 }
 0x9e5   : > { %2673 = dma.done.wait (!%p2421_p9), %s2090_s15, 256  }
 0x9e6   : > { %2675 = vsyncadd (!%p2421_p9), %s2090_s15, 4294967040  ;;  %s35_s26 = sadd.s32 1, %s3344_s21   ;;  %s3348_s0 = sld [smem:[#allocation17_spill]] }
 0x9e7   : > { %p32_p12 = scmp.ge.s32.totalorder %s35_s26, 4   ;;  %s3349_s23 = sld [smem:[#allocation22_spill]] }
 0x9e8   : > { %s3350_s24 = sld [smem:[#allocation18_spill]]  ;;  %s3351_s25 = sld [smem:[#allocation20_spill]] }
 0x9e9   : > { %s3352_s21 = smov %s2682_s22  ;;  %34 = sbr.rel (!%p32_p12) target bundleno = 15 (0xf), region = 149 }
 0x9ec   : > { %s3353_s22 = smov %s3348_s0 }
 0x9f0   :  { %2095 = vsyncpa [#allocation5], 1 }
 0x9f1   :  { %2097 = vsyncpa [#allocation5 + $0x1], 1 }
 0x9f2   :  { %2098 = vsyncpa [#allocation8], 1 }
 0x9f3   :  { %2099 = vsyncpa [#allocation6], 1 }
 0x9f4   :  { %2101 = vsyncpa [#allocation6 + $0x1], 1 }
 0x9f5   :  { %2102 = vsyncpa [#allocation11], 1 }
 0x9f6   :  { %2104 = vsyncpa [#allocation11 + $0x1], 1 }

// kernel: tpu_custom_call.1
= control target key start
LH: loop header
LB: loop body
LE: loop exit
PB: predicated region body
PF: predicated region fallthrough
CT: control target
= control target key end

     0   :  { %s3285_s0 = inlined_call_operand.vmem [shape: f32[2,8,32], index: 0, kind: input, shape index: {}]   ;;  %s3286_s1 = inlined_call_operand.vmem [shape: bf16[32,32], index: 1, kind: input, shape index: {}]   ;;  %s3287_s2 = inlined_call_operand.vmem [shape: f32[1,32], index: 2, kind: input, shape index: {}]   ;;  %s3288_s3 = inlined_call_operand.vmem [shape: bf16[32,64], index: 3, kind: input, shape index: {}]   ;;  %s3289_s4 = inlined_call_operand.vmem [shape: f32[1,64], index: 4, kind: input, shape index: {}]   ;;  %s3290_s5 = inlined_call_operand.hbm [shape: bf16[4,8,32], index: 5, kind: input, shape index: {}]   ;;  %s3291_s6 = inlined_call_operand.vmem [shape: f32[1,32], index: 6, kind: input, shape index: {}]   ;;  %s3292_s7 = inlined_call_operand.hbm [shape: bf16[32,64], index: 7, kind: input, shape index: {}]   ;;  %s3293_s8 = inlined_call_operand.vmem [shape: f32[1,64], index: 8, kind: input, shape index: {}]   ;;  %s3294_s9 = inlined_call_operand.vmem [shape: bf16[64,32], index: 9, kind: input, shape index: {}]   ;;  %s3295_s10 = inlined_call_operand.vmem [shape: f32[1,32], index: 10, kind: input, shape index: {}]   ;;  %s3296_s11 = inlined_call_operand.vmem [shape: f32[1,32], index: 11, kind: input, shape index: {}]   ;;  %s3297_s12 = inlined_call_operand.vmem [shape: f32[1,32], index: 12, kind: input, shape index: {}]   ;;  %s3298_s13 = inlined_call_operand.vmem [shape: f32[1,32], index: 13, kind: input, shape index: {}]   ;;  %s3299_s14 = inlined_call_operand.vmem [shape: f32[1,32], index: 14, kind: input, shape index: {}]   ;;  %s3300_s15 = inlined_call_operand.hbm [shape: f32[2,8,32], index: 15, kind: output, shape index: {0}]   ;;  %s3301_s16 = inlined_call_operand.hbm [shape: bf16[2,4,8,8], index: 16, kind: output, shape index: {1}]  }
   0x1   :  { %3315 = sst [smem:[#allocation23_spill]] %s3285_s0 }
   0x2   :  { %3316 = sst [smem:[#allocation24_spill]] %s3286_s1 }
   0x3   :  { %3317 = sst [smem:[#allocation25_spill]] %s3298_s13 }
   0x4   :  { %3318 = sst [smem:[#allocation26_spill]] %s3299_s14 }
   0x5   :  { %3319 = sst [smem:[#allocation27_spill]] %s3300_s15 }
   0x6   :  { %3320 = sst [smem:[#allocation28_spill]] %s3301_s16 }
   0x7   :  { %22 = vsyncpa [#allocation5], 0 }
   0x8   :  { %23 = vsyncpa [#allocation8], 0 }
   0x9   :  { %24 = vsyncpa [#allocation6], 0 }
   0xa   :  { %26 = vsyncpa [#allocation6 + $0x1], 0 }
   0xb   :  { %27 = vsyncpa [#allocation11], 0 }
   0xc   :  { %29 = vsyncpa [#allocation11 + $0x1], 0  ;;  %s2801_s21 = smov 0   ;;  %s2803_s22 = smov 0  }
   0xd   :  { %s2805_s23 = smov 0   ;;  %s2807_s24 = smov 0  }
   0xe   :  { %s2809_s25 = smov 0   ;;  %s2811_s26 = smov 0  }
   0xf LB: > { %3321 = sst [smem:[#allocation16_spill]] %s2678_s21  ;;  %s2194_s27 = sadd.s32 4294967295, %s2698_s26   ;;  %s2698_s26 = sphi %s2811_s26, %s35_s26   ;;  %s2694_s25 = sphi %s2809_s25, %s3351_s25   ;;  %s2690_s24 = sphi %s2807_s24, %s3350_s24   ;;  %s2686_s23 = sphi %s2805_s23, %s3349_s23   ;;  %s2682_s22 = sphi %s2803_s22, %s3353_s22   ;;  %s2678_s21 = sphi %s2801_s21, %s3352_s21  }
  0x10   : > { %3322 = sst [smem:[#allocation17_spill]] %s2686_s23  ;;  %s2195_s28 = sadd.s32 4294967294, %s2698_s26  }
  0x11   : > { %3323 = sst [smem:[#allocation18_spill]] %s2694_s25  ;;  %s47_s29 = sadd.s32 1, %s2694_s25 }
  0x12   : > { %3324 = sst [smem:[#allocation19_spill]] %s2698_s26  ;;  %s376_s30 = sadd.s32 1, %s2686_s23 }
  0x13   : > { %p49_p0 = scmp.ge.s32.totalorder %s47_s29, 2  ;;  %p386_p1 = scmp.ne.s32.totalorder %s2686_s23, %s2682_s22 }
  0x14   : > { %p387_p2 = scmp.eq.s32.totalorder %s2194_s27, 1  ;;  %p392_p3 = scmp.ne.s32.totalorder %s2682_s22, %s2678_s21 }
  0x15   : > { %s3355_s29 = smov (%p49_p0, %s47_s29), 0  ;;  %p393_p5 = scmp.eq.s32.totalorder %s2195_s28, 1 }
  0x16   : > { %3325 = sst [smem:[#allocation20_spill]] %s3355_s29  ;;  %p2841_p4 = por %p387_p2, %p386_p1 }
  0x17   : > { %s371_s17 = ssub.s32 %s2694_s25, %s3355_s29  ;;  %p2196_p6 = scmp.ge.s32.totalorder %s2698_s26, 1 }
  0x18   : > { %s3326_s0 = scalar_select %p2841_p4, 1, 0 }
  0x19   : > { %p374_p7 = scmp.eq.s32.totalorder %s371_s17, 0  ;;  %p2848_p8 = por %p393_p5, %p392_p3 }
  0x1a   : > { %p428_p9 = scmp.lt.s32.totalorder %s2698_s26, 3  ;;  %p2860_p11 = scmp.eq.s32.totalorder %s2194_s27, 0 }
  0x1b   : > { %s3327_s18 = scalar_select %p2848_p8, 1, 0 }
  0x1c   : > { %s2854_s19 = scalar_select %p374_p7, %s2686_s23, %s376_s30  }
  0x1d   : > { %3328 = sst [smem:[#allocation21_spill]] %s3327_s18  ;;  %p2856_p10 = pnand %p2196_p6, %p428_p9 }
  0x1e   : > { %3329 = sst [smem:[#allocation22_spill]] %s2854_s19  ;;  %s2700_s28 = smov [#allocation4]  }
  0x1f   : > { %s3330_s20 = scalar_select %p2856_p10, 1, 0 }
  0x20   : > { %s3331_s21 = scalar_select %p2860_p11, 1, 0 }
  0x21   : > { %p2413_p12 = pneg %p2856_p10  ;;  %s452_s17 = sshll.u32 %s2700_s28, 4  ;;  %s453_s17 = int_to_ptr.vmem [resolvable:$true] %s452_s17 }
  0x22   : > { %s2701_s30 = smov [#allocation7]   ;;  %s2524_s23 = scalar_lea.hbm %s3290_s5, 256 }
  0x23   : > { %p2868_p13 = pnand %p2860_p11, %p2413_p12  ;;  %s468_s25 = sshll.u32 %s2701_s30, 4  ;;  %s2872_s25 = int_to_ptr.vmem [resolvable:$true] %s468_s25 }
  0x24   : > { %p2525_p0 = scmp.ne.s32.totalorder %s3290_s5, %s2524_s23  ;;  %p2531_p5 = scmp.lt.u32.totalorder %s2524_s23, %s3290_s5 }
  0x25   : > { %p2526_p1 = pneg %p2868_p13 }
  0x27   : > { %p2527_p2 = pnand %p2526_p1, %p2525_p0 }
  0x29   : > { %p2528_p3 = pneg %p2527_p2 }
  0x2b   : > { %p2533_p6 = pnand %p2531_p5, %p2528_p3 }
  0x2d   : > { %2536 = shalt.err (!%p2533_p6)
}
  0x2e   : > { %s2537_s30 = scalar_lea.vmem %s453_s17, 256  ;;  %p2545_p8 = scmp.lt.s32.totalorder %s453_s17, %s453_s17 }
  0x2f   : > { %p2538_p7 = scmp.ne.s32.totalorder %s453_s17, %s2537_s30  ;;  %p2546_p4 = scmp.lt.s32.totalorder %s2537_s30, %s2537_s30 }
  0x31   : > { %p2540_p9 = pnand %p2538_p7, %p2526_p1  ;;  %p2547_p11 = por %p2546_p4, %p2545_p8 }
  0x33   : > { %p2541_p12 = pneg %p2540_p9 }
  0x35   : > { %p2548_p10 = pnand %p2547_p11, %p2541_p12 }
  0x37   : > { %2551 = shalt.err (!%p2548_p10)
}
  0x38   : > { %s2702_s26 = smov 64   ;;  %s2703_s18 = smov 4  }
  0x39   : > { %2416 = dma.hbm_to_vmem [thread:$0]  (!%p2868_p13), %s3290_s5, 256, %s453_s17, [#allocation5], %s2702_s26, %s2702_s26, %s2703_s18  }
  0x3a   : > { %s2552_s28 = scalar_lea.hbm %s3292_s7, 256 }
  0x3b   : > { %p2553_p0 = scmp.ne.s32.totalorder %s3292_s7, %s2552_s28  ;;  %p2559_p10 = scmp.lt.u32.totalorder %s2552_s28, %s3292_s7 }
  0x3d   : > { %p2555_p4 = pnand %p2553_p0, %p2526_p1 }
  0x3f   : > { %p2556_p8 = pneg %p2555_p4 }
  0x41   : > { %p2561_p11 = pnand %p2559_p10, %p2556_p8 }
  0x43   : > { %2564 = shalt.err (!%p2561_p11)
}
  0x44   : > { %s2565_s17 = scalar_lea.vmem %s2872_s25, 256  ;;  %p2573_p6 = scmp.lt.s32.totalorder %s2872_s25, %s2872_s25 }
  0x45   : > { %p2566_p2 = scmp.ne.s32.totalorder %s2872_s25, %s2565_s17  ;;  %p2574_p7 = scmp.lt.s32.totalorder %s2565_s17, %s2565_s17 }
  0x47   : > { %p2568_p3 = pnand %p2566_p2, %p2526_p1  ;;  %p2575_p9 = por %p2574_p7, %p2573_p6 }
  0x49   : > { %p2569_p5 = pneg %p2568_p3 }
  0x4b   : > { %p2576_p12 = pnand %p2575_p9, %p2569_p5 }
  0x4d   : > { %2579 = shalt.err (!%p2576_p12)
}
  0x4e   : > { %2419 = dma.hbm_to_vmem [thread:$0]  (!%p2868_p13), %s3292_s7, 256, %s2872_s25, [#allocation8], %s2702_s26, %s2702_s26, %s2703_s18  }
  0x4f   : > { %p3333_p0 = scmp.ne.s32.totalorder %s3330_s20, 0 }
  0x50   : > { %p3334_p4 = scmp.ne.s32.totalorder (!%p3333_p0), %s3331_s21, 0 }
  0x51   : > { %512 = sbr.rel (%p3333_p0) target bundleno = 2520 (0x9d8), region = 80 }
  0x58   : > { %2661 = dma.done.wait (%p3334_p4), [#allocation5], 256  }
  0x59   : > { %2663 = vsyncadd (%p3334_p4), [#allocation5], 4294967040 }
  0x5a   : > { %2665 = dma.done.wait (%p3334_p4), [#allocation8], 256  }
  0x5b   : > { %2667 = vsyncadd (%p3334_p4), [#allocation8], 4294967040  ;;  %p570_p1 = scmp.lt.s32.totalorder %s2690_s24, 1  ;;  %v2704_v0 = vmov 0.0   ;;  %vm2705_vm0 = vmmov 0   ;;  %v2494_v1 = vld [vmem:[%s3288_s3] sm:$0xff]   ;;  %v663_v22 = vlaneseq }
  0x5c   : > { %2293 = vmatprep.subr.bf16.mxu0 %v2704_v0  ;;  %2301 = vmatprep.subr.bf16.mxu1 %v2704_v0  ;;  %s3335_s1 = sld [smem:[#allocation24_spill]]  ;;  %s3336_s23 = sld [smem:[#allocation23_spill]]  ;;  %v2496_v3 = vld [vmem:[%s3288_s3 + $0x8] sm:$0xff]   ;;  %vm604_vm1 = vcmask 261120   ;;  %v2206_v7 = vld [vmem:[%s3289_s4] ss:$0 sm:$0xff] }
  0x5d   : > { %2297 = vmatprep.mubr.msk.bf16.mxu0 %vm2705_vm0, %v2704_v0  ;;  %s571_s16 = scalar_select %p570_p1, %s2690_s24, 1  ;;  %2305 = vmatprep.mubr.msk.bf16.mxu1 %vm2705_vm0, %v2704_v0  ;;  %v2214_v8 = vld [vmem:[%s3287_s2] ss:$0 sm:$0xff]  ;;  %v2709_v20 = vmov 1983009808   ;;  %v664_v26 = vshrl.u32 %v663_v22, 7 }
  0x5e   : > { %2294 = vmatpush3.bf16.msra.mxu0 %v2494_v1  ;;  %s2706_s29 = smov 104   ;;  %s2707_s21 = smov 120   ;;  %v661_v21 = vunpack.c.l.s4 %v2709_v20  ;;  %v2710_v23 = vmov 1934713408   ;;  %vm798_vm2 = vcmask 60416   ;;  %vm1185_vm3 = vcmask 64512  }
  0x5f   : > { %s2205_s25 = sshll.u32 %s571_s16, 3  ;;  %2295 = vmatprep.subr.bf16.mxu0 %v2704_v0  ;;  %s2708_s20 = smov 112   ;;  %v693_v24 = vunpack.c.l.s4 %v2710_v23  ;;  %vm1430_vm4 = vcmask 1043456   ;;  %vm1956_vm5 = vcmask 523264  }
  0x60   : > { %v662_v25 = vunpack.c.0.s8 %v661_v21  ;;  %s2711_s26 = smov 96   ;;  %s3102_s18 = sand.u32 1, %s2682_s22  }
  0x61   : > { %v694_v29 = vunpack.c.0.s8 %v693_v24  ;;  %s2204_s15 = sshll.u32 %s3102_s18, 4  ;;  %s2254_s13 = sshll.u32 %s2690_s24, 8 }
  0x62   : > { %v2495_v2 = vld [vmem:[%s3335_s1] sm:$0xff]   ;;  %s573_s19 = scalar_lea.vmem %s3336_s23, %s2205_s25  ;;  %v2497_v4 = vld [vmem:[%s3335_s1 + $0x8] sm:$0xff]   ;;  %2296 = vmatpush3.bf16.msra.mxu0 %v2496_v3  ;;  %v2983_v30 = vsub.s32 %v662_v25, %v664_v26  ;;  %s3109_s23 = scalar_lea.vmem [#allocation10], %s2204_s15 }
  0x63   : > { %2302 = vmatpush3.bf16.msra.mxu1 %v2495_v2  ;;  %v2956_v5 = vld [vmem:[%s573_s19] sm:$0xff]  ;;  %2309 = vmatprep.subr.bf16.mxu0 %v2704_v0  ;;  %v2995_v37 = vsub.s32 %v694_v29, %v664_v26  ;;  %s2065_s17 = sshll.u32 %s3109_s23, 4  ;;  %s3337_s25 = sld [smem:[#allocation28_spill]]  ;;  %s3194_s17 = int_to_ptr.vmem [resolvable:$true] %s2065_s17 }
  0x64   : > { %2303 = vmatprep.subr.bf16.mxu1 %v2704_v0  ;;  %v580_v6 = vpack.c.bf16 %v2956_v5, %v2956_v5  ;;  %p3339_p8 = scmp.ne.s32.totalorder %s3326_s0, 0  ;;  %s2712_s15 = smov [#allocation10]  }
  0x65   : > { %s2584_s19 = sshll.u32 %s2712_s15, 4  ;;  %s2585_s19 = int_to_ptr.vmem [resolvable:$false] %s2584_s19 }
  0x66   : > { %2298 = vmatmul.mubr.msk.bf16.vlgmr.msra.gmra.mrb[0].mxu0 %vm604_vm1, %v580_v6  ;;  %p2587_p2 = scmp.lt.s32.totalorder %s3194_s17, %s2585_s19 }
  0x67   : > { %2304 = vmatpush3.bf16.msra.mxu1 %v2497_v4  ;;  %2311 = vmatprep.mubr.msk.bf16.mxu0 %vm2705_vm0, %v2704_v0 }
  0x68   : > { %2315 = vmatprep.subr.bf16.mxu1 %v2704_v0 }
  0x6a   : > { %2306 = vmatmul.mubr.msk.bf16.vlgmr.msra.gmra.mrb[0].mxu1 %vm604_vm1, %v580_v6 }
  0x6b   : > { %2317 = vmatprep.mubr.msk.bf16.mxu1 %vm2705_vm0, %v2704_v0 }
 0x139   : > { %v642_v9 = vpop.f32.mrb[0].mxu0 }
 0x13a   : > { %v2974_v10 = vadd.f32 %v2206_v7, %v642_v9  ;;  %v2299_v11 = vpop.f32.mrb[1].mxu0 }
 0x13b   : > { %v645_v13 = vpop.f32.mrb[2].mxu0 }
 0x13c   : > { %655 = vrot.lane.b32.xlu1 %v2974_v10, %s2706_s29  ;;  %649 = vrot.lane.b32.xlu0 %v2974_v10, %s2707_s21  ;;  %v2300_v16 = vpop.f32.mrb[3].mxu0 }
 0x13d   : > { %v1024_v12 = vpop.f32.mrb[0].mxu1 }
 0x13e   : > { %v1025_v14 = vadd.f32 %v2214_v8, %v1024_v12  ;;  %v2307_v15 = vpop.f32.mrb[1].mxu1 }
 0x13f   : > { %v1027_v17 = vpop.f32.mrb[2].mxu1 }
 0x140   : > { %v1030_v18 = vmul.f32 0.35355338, %v1025_v14  ;;  %v2308_v19 = vpop.f32.mrb[3].mxu1  ;;  %652 = vrot.lane.b32.xlu0 %v2974_v10, %s2708_s20 }
 0x142   : > { %1032 = vrot.lane.b32.xlu1 %v1030_v18, %s2707_s21  ;;  %s3199_s21 = scalar_lea.hbm %s3337_s25, %s2254_s13 }
 0x144   : > { %1035 = vrot.lane.b32.xlu0 %v1030_v18, %s2708_s20  ;;  %s2037_s20 = scalar_lea.sflag [#allocation11], %s3102_s18 }
 0x146   : > { %1038 = vrot.lane.b32.xlu1 %v1030_v18, %s2706_s29  ;;  %s3338_s29 = smov %s3337_s25 }
 0x1ae   : > { %v2979_v27 = vpop.permute.xlu1 %655  ;;  %v2981_v28 = vpop.permute.xlu0 %649 }
 0x1af   : > { %v674_v31 = vcombine.low %v2981_v28, %v2979_v27  ;;  %v675_v32 = vcombine.high %v2981_v28, %v2979_v27 }
 0x1b1   : > { %v682_v38 = vrot.slane %v674_v31, %v2983_v30  ;;  %v689_v39 = vrot.slane %v675_v32, %v2983_v30 }
 0x1b2   : > { %v2989_v34 = vpop.permute.xlu0 %652 }
 0x1b3   : > { %v658_v35 = vcombine.low %v2974_v10, %v2989_v34  ;;  %v659_v36 = vcombine.high %v2974_v10, %v2989_v34 }
 0x1b4   : > { %v1033_v33 = vpop.permute.xlu1 %1032 }
 0x1b5   : > { %v666_v40 = vrot.slane %v658_v35, %v2983_v30  ;;  %v673_v41 = vrot.slane %v659_v36, %v2983_v30 }
 0x1b6   : > { %v1036_v43 = vpop.permute.xlu0 %1035 }
 0x1b7   : > { %v690_v44 = vcombine.low %v666_v40, %v682_v38  ;;  %v691_v45 = vcombine.high %v666_v40, %v682_v38  ;;  %v706_v46 = vcombine.low %v673_v41, %v689_v39  ;;  %v707_v47 = vcombine.high %v673_v41, %v689_v39 }
 0x1b8   : > { %v1039_v42 = vpop.permute.xlu1 %1038  ;;  %v1041_v50 = vcombine.low %v1030_v18, %v1036_v43  ;;  %v1042_v51 = vcombine.high %v1030_v18, %v1036_v43 }
 0x1b9   : > { %v1057_v48 = vcombine.low %v1033_v33, %v1039_v42  ;;  %v1058_v49 = vcombine.high %v1033_v33, %v1039_v42  ;;  %v698_v52 = vrot.slane %v690_v44, %v2995_v37  ;;  %v705_v53 = vrot.slane %v691_v45, %v2995_v37 }
 0x1ba   : > { %v714_v54 = vrot.slane %v706_v46, %v2995_v37  ;;  %v721_v55 = vrot.slane %v707_v47, %v2995_v37  ;;  %v1049_v58 = vrot.slane %v1041_v50, %v2983_v30  ;;  %v1056_v59 = vrot.slane %v1042_v51, %v2983_v30 }
 0x1bb   : > { %v1065_v56 = vrot.slane %v1057_v48, %v2983_v30  ;;  %v1072_v57 = vrot.slane %v1058_v49, %v2983_v30  ;;  %v726_v60 = vcombine.low %v698_v52, %v705_v53  ;;  %v2210_v61 = vcombine.high %v698_v52, %v705_v53 }
 0x1bc   : > { %v742_v62 = vcombine.low %v714_v54, %v721_v55  ;;  %v2211_v63 = vcombine.high %v714_v54, %v721_v55 }
 0x1bd   : > { %v1073_v1 = vcombine.low %v1049_v58, %v1065_v56  ;;  %v1074_v2 = vcombine.high %v1049_v58, %v1065_v56  ;;  %v1089_v3 = vcombine.low %v1056_v59, %v1072_v57  ;;  %v1090_v4 = vcombine.high %v1056_v59, %v1072_v57 }
 0x1be   : > { %v733_v6 = vrot.slane %v726_v60, %v2983_v30  ;;  %v741_v7 = vrot.slane %v2210_v61, %v2983_v30  ;;  %v749_v8 = vrot.slane %v742_v62, %v2983_v30  ;;  %v757_v9 = vrot.slane %v2211_v63, %v2983_v30 }
 0x1bf   : > { %v1081_v11 = vrot.slane %v1073_v1, %v2995_v37  ;;  %v1088_v12 = vrot.slane %v1074_v2, %v2995_v37  ;;  %v1097_v13 = vrot.slane %v1089_v3, %v2995_v37  ;;  %v1104_v14 = vrot.slane %v1090_v4, %v2995_v37 }
 0x1c0   : > { %v758_v15 = vcombine.low %v733_v6, %v741_v7  ;;  %v759_v16 = vcombine.high %v733_v6, %v741_v7  ;;  %v774_v17 = vcombine.low %v749_v8, %v757_v9  ;;  %v775_v18 = vcombine.high %v749_v8, %v757_v9 }
 0x1c1   : > { %v1109_v19 = vcombine.low %v1081_v11, %v1088_v12  ;;  %v2218_v20 = vcombine.high %v1081_v11, %v1088_v12  ;;  %v1125_v21 = vcombine.low %v1097_v13, %v1104_v14  ;;  %v2219_v22 = vcombine.high %v1097_v13, %v1104_v14 }
 0x1c2   : > { %v766_v23 = vrot.slane %v758_v15, %v2995_v37  ;;  %v773_v24 = vrot.slane %v759_v16, %v2995_v37  ;;  %v782_v25 = vrot.slane %v774_v17, %v2995_v37  ;;  %v789_v26 = vrot.slane %v775_v18, %v2995_v37 }
 0x1c3   : > { %v1116_v35 = vrot.slane %v1109_v19, %v2983_v30  ;;  %v1124_v36 = vrot.slane %v2218_v20, %v2983_v30  ;;  %v1132_v38 = vrot.slane %v1125_v21, %v2983_v30  ;;  %v1140_v39 = vrot.slane %v2219_v22, %v2983_v30 }
 0x1c4   : > { %v790_v29 = vcombine.low %v766_v23, %v782_v25  ;;  %v791_v31 = vcombine.high %v766_v23, %v782_v25  ;;  %v792_v32 = vcombine.low %v773_v24, %v789_v26  ;;  %v793_v33 = vcombine.high %v773_v24, %v789_v26 }
 0x1c5   : > { %v1141_v44 = vcombine.low %v1116_v35, %v1124_v36  ;;  %v1157_v45 = vcombine.low %v1132_v38, %v1140_v39  ;;  %v1142_v52 = vcombine.high %v1116_v35, %v1124_v36  ;;  %v1158_v53 = vcombine.high %v1132_v38, %v1140_v39 }
 0x1c6   : > { %v794_v40 = vpack.c.bf16 %v790_v29, %v790_v29  ;;  %v795_v41 = vpack.c.bf16 %v791_v31, %v791_v31  ;;  %v796_v42 = vpack.c.bf16 %v792_v32, %v792_v32  ;;  %v797_v43 = vpack.c.bf16 %v793_v33, %v793_v33 }
 0x1c7   : > { %v1149_v46 = vrot.slane %v1141_v44, %v2995_v37  ;;  %v1165_v47 = vrot.slane %v1157_v45, %v2995_v37  ;;  %v1156_v60 = vrot.slane %v1142_v52, %v2995_v37  ;;  %v1172_v61 = vrot.slane %v1158_v53, %v2995_v37 }
 0x1c8   : > { %799 = vst.msk [vmem:[#allocation2] sm:$0xf] %vm798_vm2, %v794_v40  ;;  %800 = vst.msk [vmem:[#allocation2 + $0x4] sm:$0xf] %vm798_vm2, %v795_v41 }
 0x1c9   : > { %801 = vst.msk [vmem:[#allocation2 + $0x8] sm:$0xf] %vm798_vm2, %v796_v42  ;;  %802 = vst.msk [vmem:[#allocation2 + $0xc] sm:$0xf] %vm798_vm2, %v797_v43  ;;  %v1173_v54 = vcombine.low %v1149_v46, %v1165_v47  ;;  %v1174_v55 = vcombine.high %v1149_v46, %v1165_v47  ;;  %v1175_v1 = vcombine.low %v1156_v60, %v1172_v61 }
 0x1ca   : > { %v1176_v2 = vcombine.high %v1156_v60, %v1172_v61 }
 0x1cb   : > { %v1177_v58 = vpack.c.bf16 %v1173_v54, %v1173_v54  ;;  %v1178_v59 = vpack.c.bf16 %v1174_v55, %v1174_v55  ;;  %v1179_v3 = vpack.c.bf16 %v1175_v1, %v1175_v1 }
 0x1cc   : > { %v1180_v4 = vpack.c.bf16 %v1176_v2, %v1176_v2 }
 0x1cf   : > { %v1181_v48 = vld [vmem:[#allocation2] sm:$0xf]  ;;  %v1182_v49 = vld [vmem:[#allocation2 + $0x4] sm:$0xf] }
 0x1d0   : > { %v1190_v50 = vsel %vm1185_vm3, %v1181_v48, 0  ;;  %v1236_v51 = vsel %vm1185_vm3, %v1182_v49, 0  ;;  %v1183_v56 = vld [vmem:[#allocation2 + $0x8] sm:$0xf]  ;;  %v1184_v57 = vld [vmem:[#allocation2 + $0xc] sm:$0xf] }
 0x1d1   : > { %2310 = vmatpush3.bf16.xpose.msra.mxu0 %v1190_v50  ;;  %2316 = vmatpush3.bf16.xpose.msra.mxu1 %v1236_v51  ;;  %v1282_v62 = vsel %vm1185_vm3, %v1183_v56, 0  ;;  %v1328_v63 = vsel %vm1185_vm3, %v1184_v57, 0 }
 0x1d2   : > { %2321 = vmatprep.subr.bf16.mxu0 %v2704_v0  ;;  %2327 = vmatprep.subr.bf16.mxu1 %v2704_v0 }
 0x1d8   : > { %2312 = vmatmul.mubr.msk.bf16.vlgmr.msra.gmra.mrb[4].mxu0 %vm1185_vm3, %v1177_v58  ;;  %2318 = vmatmul.mubr.msk.bf16.vlgmr.msra.gmra.mrb[4].mxu1 %vm1185_vm3, %v1178_v59 }
 0x1d9   : > { %2322 = vmatpush3.bf16.xpose.msra.mxu0 %v1282_v62  ;;  %2328 = vmatpush3.bf16.xpose.msra.mxu1 %v1328_v63 }
 0x1da   : > { %2323 = vmatprep.mubr.msk.bf16.mxu0 %vm2705_vm0, %v2704_v0  ;;  %2329 = vmatprep.mubr.msk.bf16.mxu1 %vm2705_vm0, %v2704_v0 }
 0x1db   : > { %2333 = vmatprep.subr.bf16.mxu0 %v2704_v0  ;;  %2339 = vmatprep.subr.bf16.mxu1 %v2704_v0 }
 0x1e0   : > { %2324 = vmatmul.mubr.msk.bf16.vlgmr.msra.gmra.mrb[8].mxu0 %vm1185_vm3, %v1179_v3  ;;  %2330 = vmatmul.mubr.msk.bf16.vlgmr.msra.gmra.mrb[8].mxu1 %vm1185_vm3, %v1180_v4 }
 0x1e1   : > { %2335 = vmatprep.mubr.msk.bf16.mxu0 %vm2705_vm0, %v2704_v0  ;;  %2341 = vmatprep.mubr.msk.bf16.mxu1 %vm2705_vm0, %v2704_v0 }
 0x2ab   : > { %v1226_v6 = vpop.f32.mrb[4].mxu0  ;;  %v1272_v7 = vpop.f32.mrb[4].mxu1 }
 0x2ac   : > { %v2313_v8 = vpop.f32.mrb[5].mxu0  ;;  %v2319_v9 = vpop.f32.mrb[5].mxu1  ;;  %v1373_v11 = vsel %vm1185_vm3, %v1272_v7, -inf  ;;  %v1370_v12 = vsel %vm1185_vm3, %v1226_v6, -inf }
 0x2ad   : > { %1374 = vmax.xlane.f32.xlu1 %v1373_v11  ;;  %v1275_v13 = vpop.f32.mrb[6].mxu1  ;;  %1371 = vmax.xlane.f32.xlu0 %v1370_v12  ;;  %v1229_v14 = vpop.f32.mrb[6].mxu0 }
 0x2ae   : > { %v2314_v15 = vpop.f32.mrb[7].mxu0  ;;  %v2320_v16 = vpop.f32.mrb[7].mxu1 }
 0x2b3   : > { %v1318_v17 = vpop.f32.mrb[8].mxu0  ;;  %v1364_v18 = vpop.f32.mrb[8].mxu1 }
 0x2b4   : > { %v2325_v19 = vpop.f32.mrb[9].mxu0  ;;  %v2331_v20 = vpop.f32.mrb[9].mxu1  ;;  %v1376_v21 = vsel %vm1185_vm3, %v1318_v17, -inf  ;;  %v1379_v26 = vsel %vm1185_vm3, %v1364_v18, -inf }
 0x2b5   : > { %v1367_v22 = vpop.f32.mrb[10].mxu1  ;;  %1377 = vmax.xlane.f32.xlu0 %v1376_v21  ;;  %v1321_v23 = vpop.f32.mrb[10].mxu0 }
 0x2b6   : > { %v2326_v24 = vpop.f32.mrb[11].mxu0  ;;  %v2332_v25 = vpop.f32.mrb[11].mxu1 }
 0x2b9   : > { %1380 = vmax.xlane.f32.xlu0 %v1379_v26 }
 0x2be   : > { %803 = vrot.lane.b32.xlu1 %v2974_v10, %s2711_s26 }
 0x2c2   : > { %807 = vrot.lane.b32.xlu1 %v2989_v34, %s2711_s26 }
 0x2c6   : > { %809 = vrot.lane.b32.xlu1 %v2979_v27, %s2711_s26 }
 0x2cf   : > { %805 = vrot.lane.b32.xlu0 %v2981_v28, %s2711_s26  ;;  %s2580_s26 = scalar_lea.vmem %s3194_s17, 256 }
 0x2d0   : > { %p2581_p13 = scmp.ne.s32.totalorder %s3194_s17, %s2580_s26 }
 0x2d2   : > { %p2582_p10 = pnand %p2581_p13, %p3339_p8 }
 0x2d4   : > { %p2583_p11 = pneg %p2582_p10 }
 0x33a   : > { %v1375_v29 = vpop.xlane.xlu1 %1374  ;;  %v1372_v31 = vpop.xlane.xlu0 %1371 }
 0x33b   : > { %v1383_v32 = vsub.f32 %v1272_v7, %v1375_v29  ;;  %v1382_v33 = vsub.f32 %v1226_v6, %v1372_v31 }
 0x33d   : > { %v1388_v35 = vmul.f32 1.442695, %v1383_v32  ;;  %v1386_v36 = vmul.f32 1.442695, %v1382_v33 }
 0x33e   : > { %v804_v38 = vpop.permute.xlu1 %803 }
 0x33f   : > { %2504 = vpow2.f32 %v1388_v35 }
 0x340   : > { %2506 = vpow2.f32 %v1386_v36 }
 0x342   : > { %v1378_v39 = vpop.xlane.xlu0 %1377  ;;  %v808_v41 = vpop.permute.xlu1 %807 }
 0x343   : > { %v1384_v40 = vsub.f32 %v1318_v17, %v1378_v39  ;;  %v815_v27 = vcombine.low %v804_v38, %v808_v41  ;;  %v816_v28 = vcombine.high %v804_v38, %v808_v41 }
 0x345   : > { %v1390_v42 = vmul.f32 1.442695, %v1384_v40  ;;  %v823_v52 = vrot.slane %v815_v27, %v2983_v30  ;;  %v830_v53 = vrot.slane %v816_v28, %v2983_v30 }
 0x346   : > { %v1381_v10 = vpop.xlane.xlu0 %1380  ;;  %v810_v46 = vpop.permute.xlu1 %809 }
 0x347   : > { %2508 = vpow2.f32 %v1390_v42  ;;  %v1385_v34 = vsub.f32 %v1364_v18, %v1381_v10 }
 0x349   : > { %v3061_v43 = vpop.eup %2504  ;;  %v1392_v44 = vmul.f32 1.442695, %v1385_v34 }
 0x34a   : > { %v3063_v45 = vpop.eup %2506  ;;  %v806_v47 = vpop.permute.xlu0 %805  ;;  %v1397_v48 = vsel %vm1185_vm3, %v3061_v43, 0.0 }
 0x34b   : > { %2510 = vpow2.f32 %v1392_v44  ;;  %v831_v49 = vcombine.low %v806_v47, %v810_v46  ;;  %v832_v50 = vcombine.high %v806_v47, %v810_v46  ;;  %1398 = vadd.xlane.f32.xlu1 %v1397_v48  ;;  %v1394_v51 = vsel %vm1185_vm3, %v3063_v45, 0.0 }
 0x34c   : > { %1395 = vadd.xlane.f32.xlu0 %v1394_v51 }
 0x34d   : > { %v839_v54 = vrot.slane %v831_v49, %v2983_v30  ;;  %v846_v55 = vrot.slane %v832_v50, %v2983_v30  ;;  %v1616_v50 = vld [vmem:[#allocation4 + $0x4] sm:$0xf] }
 0x34f   : > { %v847_v56 = vcombine.low %v823_v52, %v839_v54  ;;  %v848_v57 = vcombine.high %v823_v52, %v839_v54  ;;  %v863_v58 = vcombine.low %v830_v53, %v846_v55  ;;  %v864_v59 = vcombine.high %v830_v53, %v846_v55 }
 0x350   : > { %v1621_v53 = vsel %vm1430_vm4, %v1616_v50, 0  ;;  %v2501_v50 = vld [vmem:[%s3294_s9 + $0x8] sm:$0xff]  }
 0x351   : > { %v3073_v60 = vpop.eup %2508  ;;  %v855_v61 = vrot.slane %v847_v56, %v2995_v37  ;;  %v862_v62 = vrot.slane %v848_v57, %v2995_v37  ;;  %v871_v63 = vrot.slane %v863_v58, %v2995_v37  ;;  %v878_v1 = vrot.slane %v864_v59, %v2995_v37  ;;  %v1613_v56 = vld [vmem:[#allocation4] sm:$0xf]  ;;  %v1711_v58 = vld [vmem:[#allocation4 + $0x8] sm:$0xf]  ;;  %v1761_v59 = vld [vmem:[#allocation4 + $0xc] sm:$0xf] }
 0x352   : > { %v1400_v2 = vsel %vm1185_vm3, %v3073_v60, 0.0  ;;  %v1667_v57 = vsel %vm1430_vm4, %v1613_v56, 0 }
 0x353   : > { %v883_v3 = vcombine.low %v855_v61, %v862_v62  ;;  %v2212_v4 = vcombine.high %v855_v61, %v862_v62  ;;  %v899_v6 = vcombine.low %v871_v63, %v878_v1  ;;  %v2213_v7 = vcombine.high %v871_v63, %v878_v1  ;;  %1401 = vadd.xlane.f32.xlu0 %v1400_v2 }
 0x354   : > { %v1716_v1 = vsel %vm1430_vm4, %v1711_v58, 0 }
 0x355   : > { %v3081_v8 = vpop.eup %2510  ;;  %v890_v9 = vrot.slane %v883_v3, %v2983_v30  ;;  %v898_v11 = vrot.slane %v2212_v4, %v2983_v30  ;;  %v906_v12 = vrot.slane %v899_v6, %v2983_v30  ;;  %v914_v13 = vrot.slane %v2213_v7, %v2983_v30 }
 0x356   : > { %v1403_v14 = vsel %vm1185_vm3, %v3081_v8, 0.0  ;;  %v1766_v6 = vsel %vm1430_vm4, %v1761_v59, 0 }
 0x357   : > { %v915_v15 = vcombine.low %v890_v9, %v898_v11  ;;  %v916_v16 = vcombine.high %v890_v9, %v898_v11  ;;  %v931_v17 = vcombine.low %v906_v12, %v914_v13  ;;  %v932_v18 = vcombine.high %v906_v12, %v914_v13  ;;  %1404 = vadd.xlane.f32.xlu0 %v1403_v14 }
 0x359   : > { %v923_v19 = vrot.slane %v915_v15, %v2995_v37  ;;  %v930_v20 = vrot.slane %v916_v16, %v2995_v37  ;;  %v939_v21 = vrot.slane %v931_v17, %v2995_v37  ;;  %v946_v22 = vrot.slane %v932_v18, %v2995_v37 }
 0x35b   : > { %v947_v23 = vcombine.low %v923_v19, %v939_v21  ;;  %v948_v24 = vcombine.high %v923_v19, %v939_v21  ;;  %v949_v25 = vcombine.low %v930_v20, %v946_v22  ;;  %v950_v30 = vcombine.high %v930_v20, %v946_v22 }
 0x35d   : > { %v951_v26 = vpack.c.bf16 %v947_v23, %v947_v23  ;;  %v952_v29 = vpack.c.bf16 %v948_v24, %v948_v24  ;;  %v953_v31 = vpack.c.bf16 %v949_v25, %v949_v25  ;;  %v954_v32 = vpack.c.bf16 %v950_v30, %v950_v30 }
 0x35f   : > { %955 = vst.msk [vmem:[#allocation3] sm:$0xf] %vm798_vm2, %v951_v26  ;;  %956 = vst.msk [vmem:[#allocation3 + $0x4] sm:$0xf] %vm798_vm2, %v952_v29 }
 0x360   : > { %957 = vst.msk [vmem:[#allocation3 + $0x8] sm:$0xf] %vm798_vm2, %v953_v31  ;;  %958 = vst.msk [vmem:[#allocation3 + $0xc] sm:$0xf] %vm798_vm2, %v954_v32 }
 0x366   : > { %v1423_v33 = vld [vmem:[#allocation3] sm:$0xf]  ;;  %v1424_v37 = vld [vmem:[#allocation3 + $0x4] sm:$0xf] }
 0x367   : > { %v1432_v35 = vsel %vm1430_vm4, %v1423_v33, 0  ;;  %v1478_v36 = vsel %vm1430_vm4, %v1424_v37, 0  ;;  %v1426_v28 = vld [vmem:[#allocation3 + $0xc] sm:$0xf]  ;;  %v1425_v46 = vld [vmem:[#allocation3 + $0x8] sm:$0xf] }
 0x368   : > { %2334 = vmatpush3.bf16.msra.mxu0 %v1432_v35  ;;  %2340 = vmatpush3.bf16.msra.mxu1 %v1478_v36  ;;  %v1570_v48 = vsel %vm1430_vm4, %v1426_v28, 0 }
 0x369   : > { %2345 = vmatprep.subr.bf16.mxu0 %v2704_v0  ;;  %2351 = vmatprep.subr.bf16.mxu1 %v2704_v0 }
 0x3d8   : > { %v1399_v38 = vpop.xlane.xlu1 %1398 }
 0x3d9   : > { %2512 = vrcp.f32 %v1399_v38  ;;  %v1396_v39 = vpop.xlane.xlu0 %1395 }
 0x3da   : > { %2514 = vrcp.f32 %v1396_v39  ;;  %v2232_v39 = vld [vmem:[%s3291_s6] ss:$0 sm:$0xff] }
 0x3e0   : > { %v1402_v40 = vpop.xlane.xlu0 %1401 }
 0x3e1   : > { %2516 = vrcp.f32 %v1402_v40 }
 0x3e3   : > { %v2513_v41 = vpop.eup %2512 }
 0x3e4   : > { %v2515_v42 = vpop.eup %2514  ;;  %v1411_v10 = vmul.f32 %v2513_v41, %v3061_v43  ;;  %v1405_v34 = vpop.xlane.xlu0 %1404  ;;  %v1524_v43 = vsel %vm1430_vm4, %v1425_v46, 0 }
 0x3e5   : > { %v1410_v27 = vmul.f32 %v2515_v42, %v3063_v45  ;;  %2518 = vrcp.f32 %v1405_v34 }
 0x3e6   : > { %v1415_v44 = vpack.c.bf16 %v1411_v10, %v1411_v10 }
 0x3e7   : > { %v1414_v47 = vpack.c.bf16 %v1410_v27, %v1410_v27 }
 0x3e8   : > { %2342 = vmatmul.mubr.msk.bf16.vlgmr.msra.gmra.mrb[12].mxu1 %vm1185_vm3, %v1415_v44  ;;  %1420 = vst.msk [vmem:[%s3109_s23 + $0x4] sm:$0xf] %vm798_vm2, %v1415_v44 }
 0x3e9   : > { %2336 = vmatmul.mubr.msk.bf16.vlgmr.msra.gmra.mrb[12].mxu0 %vm1185_vm3, %v1414_v47  ;;  %2352 = vmatpush3.bf16.msra.mxu1 %v1570_v48  ;;  %1419 = vst.msk [vmem:[%s3109_s23] sm:$0xf] %vm798_vm2, %v1414_v47 }
 0x3ea   : > { %2346 = vmatpush3.bf16.msra.mxu0 %v1524_v43  ;;  %2347 = vmatprep.mubr.msk.bf16.mxu0 %vm2705_vm0, %v2704_v0 }
 0x3eb   : > { %v2517_v45 = vpop.eup %2516  ;;  %2353 = vmatprep.mubr.msk.bf16.mxu1 %vm2705_vm0, %v2704_v0  ;;  %2357 = vmatprep.subr.bf16.mxu0 %v2704_v0 }
 0x3ec   : > { %v1412_v49 = vmul.f32 %v2517_v45, %v3073_v60  ;;  %2363 = vmatprep.subr.bf16.mxu1 %v2704_v0  ;;  %v2498_v45 = vld [vmem:[#allocation7] sm:$0xff]  }
 0x3ee   : > { %v1416_v51 = vpack.c.bf16 %v1412_v49, %v1412_v49  ;;  %v2499_v49 = vld [vmem:[#allocation7 + $0x8] sm:$0xff]  }
 0x3ef   : > { %v2519_v52 = vpop.eup %2518 }
 0x3f0   : > { %v1413_v54 = vmul.f32 %v2519_v52, %v3081_v8  ;;  %1421 = vst.msk [vmem:[%s3109_s23 + $0x8] sm:$0xf] %vm798_vm2, %v1416_v51 }
 0x3f1   : > { %2348 = vmatmul.mubr.msk.bf16.vlgmr.msra.gmra.mrb[16].mxu0 %vm1185_vm3, %v1416_v51 }
 0x3f2   : > { %v1417_v55 = vpack.c.bf16 %v1413_v54, %v1413_v54  ;;  %2358 = vmatpush3.bf16.msra.mxu0 %v1621_v53  ;;  %2359 = vmatprep.mubr.msk.bf16.mxu0 %vm2705_vm0, %v2704_v0 }
 0x3f3   : > { %2369 = vmatprep.subr.bf16.mxu0 %v2704_v0 }
 0x3f4   : > { %2354 = vmatmul.mubr.msk.bf16.vlgmr.msra.gmra.mrb[16].mxu1 %vm1185_vm3, %v1417_v55  ;;  %1422 = vst.msk [vmem:[%s3109_s23 + $0xc] sm:$0xf] %vm798_vm2, %v1417_v55  ;;  %v2233_v55 = vld [vmem:[%s3296_s11] ss:$0 sm:$0xff]  ;;  %s2586_s23 = scalar_lea.vmem %s2585_s19, 512 }
 0x3f5   : > { %2365 = vmatprep.mubr.msk.bf16.mxu1 %vm2705_vm0, %v2704_v0  ;;  %2364 = vmatpush3.bf16.msra.mxu1 %v1667_v57  ;;  %v2234_v57 = vld [vmem:[%s3297_s12] ss:$0 sm:$0xff]  ;;  %p2588_p3 = scmp.lt.s32.totalorder %s2586_s23, %s2580_s26 }
 0x3f6   : > { %2375 = vmatprep.subr.bf16.mxu1 %v2704_v0 }
 0x3f7   : > { %p2589_p5 = por %p2588_p3, %p2587_p2 }
 0x3f9   : > { %p2590_p6 = pnand %p2589_p5, %p2583_p11 }
 0x4bb   : > { %v1514_v60 = vpop.f32.mrb[12].mxu1 }
 0x4bc   : > { %v1468_v61 = vpop.f32.mrb[12].mxu0  ;;  %v1614_v62 = vpack.c.bf16 %v1514_v60, %v1514_v60  ;;  %v2343_v63 = vpop.f32.mrb[13].mxu1 }
 0x4bd   : > { %v1612_v2 = vpack.c.bf16 %v1468_v61, %v1468_v61  ;;  %v2337_v3 = vpop.f32.mrb[13].mxu0  ;;  %v1517_v4 = vpop.f32.mrb[14].mxu1  ;;  %v2502_v61 = vld [vmem:[%s3294_s9 + $0x10] sm:$0xff]   ;;  %v2235_v63 = vld [vmem:[%s3293_s8] ss:$0 sm:$0xff] }
 0x4be   : > { %v1471_v7 = vpop.f32.mrb[14].mxu0  ;;  %v2344_v8 = vpop.f32.mrb[15].mxu1  ;;  %2360 = vmatmul.mubr.msk.bf16.vlgmr.msra.gmra.mrb[20].mxu0 %vm1185_vm3, %v1614_v62  ;;  %v2503_v62 = vld [vmem:[%s3294_s9 + $0x18] sm:$0xff]  }
 0x4bf   : > { %v2338_v9 = vpop.f32.mrb[15].mxu0  ;;  %2366 = vmatmul.mubr.msk.bf16.vlgmr.msra.gmra.mrb[20].mxu1 %vm1185_vm3, %v1612_v2  ;;  %2370 = vmatpush3.bf16.msra.mxu0 %v1716_v1 }
 0x4c0   : > { %2376 = vmatpush3.bf16.msra.mxu1 %v1766_v6  ;;  %2371 = vmatprep.mubr.msk.bf16.mxu0 %vm2705_vm0, %v2704_v0 }
 0x4c1   : > { %2377 = vmatprep.mubr.msk.bf16.mxu1 %vm2705_vm0, %v2704_v0  ;;  %2381 = vmatprep.subr.bf16.mxu0 %v2704_v0 }
 0x4c2   : > { %2389 = vmatprep.subr.bf16.mxu1 %v2704_v0 }
 0x4c4   : > { %v1560_v11 = vpop.f32.mrb[16].mxu0 }
 0x4c5   : > { %v1709_v12 = vpack.c.bf16 %v1560_v11, %v1560_v11  ;;  %v2349_v13 = vpop.f32.mrb[17].mxu0 }
 0x4c6   : > { %v1563_v14 = vpop.f32.mrb[18].mxu0 }
 0x4c7   : > { %v2350_v15 = vpop.f32.mrb[19].mxu0  ;;  %2372 = vmatmul.mubr.msk.bf16.vlgmr.msra.gmra.mrb[24].mxu0 %vm1185_vm3, %v1709_v12  ;;  %v1606_v16 = vpop.f32.mrb[16].mxu1 }
 0x4c8   : > { %v1759_v17 = vpack.c.bf16 %v1606_v16, %v1606_v16  ;;  %v2355_v18 = vpop.f32.mrb[17].mxu1  ;;  %2385 = vmatprep.mubr.msk.bf16.mxu0 %vm2705_vm0, %v2704_v0  ;;  %2382 = vmatpush3.bf16.msra.mxu0 %v2498_v45 }
 0x4c9   : > { %v1609_v19 = vpop.f32.mrb[18].mxu1  ;;  %2383 = vmatprep.subr.bf16.mxu0 %v2704_v0 }
 0x4ca   : > { %v2356_v20 = vpop.f32.mrb[19].mxu1  ;;  %2378 = vmatmul.mubr.msk.bf16.vlgmr.msra.gmra.mrb[24].mxu1 %vm1185_vm3, %v1759_v17 }
 0x4cb   : > { %2397 = vmatprep.mubr.msk.bf16.mxu1 %vm2705_vm0, %v2704_v0 }
 0x4cc   : > { %2384 = vmatpush3.bf16.msra.mxu0 %v2499_v49 }
 0x591   : > { %v1657_v21 = vpop.f32.mrb[20].mxu0 }
 0x592   : > { %v1703_v22 = vpop.f32.mrb[20].mxu1  ;;  %v2361_v23 = vpop.f32.mrb[21].mxu0 }
 0x593   : > { %v1704_v24 = vadd.f32 %v1703_v22, %v1657_v21  ;;  %v2367_v25 = vpop.f32.mrb[21].mxu1  ;;  %v1660_v30 = vpop.f32.mrb[22].mxu0 }
 0x594   : > { %v1706_v26 = vpop.f32.mrb[22].mxu1  ;;  %v2362_v29 = vpop.f32.mrb[23].mxu0 }
 0x595   : > { %v2368_v31 = vpop.f32.mrb[23].mxu1 }
 0x59a   : > { %v1752_v32 = vpop.f32.mrb[24].mxu0 }
 0x59b   : > { %v1758_v33 = vadd.f32 %v1752_v32, %v1704_v24  ;;  %v2373_v37 = vpop.f32.mrb[25].mxu0 }
 0x59c   : > { %v1755_v35 = vpop.f32.mrb[26].mxu0 }
 0x59d   : > { %v2374_v36 = vpop.f32.mrb[27].mxu0  ;;  %v1802_v38 = vpop.f32.mrb[24].mxu1 }
 0x59e   : > { %v1808_v40 = vadd.f32 %v1802_v38, %v1758_v33  ;;  %v2379_v41 = vpop.f32.mrb[25].mxu1 }
 0x59f   : > { %v1805_v42 = vpop.f32.mrb[26].mxu1 }
 0x5a0   : > { %v1816_v10 = vadd.f32 %v2232_v39, %v1808_v40  ;;  %v2380_v34 = vpop.f32.mrb[27].mxu1 }
 0x5a2   : > { %v1817_v27 = vadd.f32 %v1816_v10, %v2956_v5  ;;  %v2500_v5 = vld [vmem:[%s3294_s9] sm:$0xff]  }
 0x5a3   : > { %2390 = vmatpush3.bf16.msra.mxu1 %v2500_v5 }
 0x5a4   : > { %v1818_v28 = vsel %vm604_vm1, %v1817_v27, 0.0  ;;  %2391 = vmatprep.subr.bf16.mxu1 %v2704_v0 }
 0x5a5   : > { %1819 = vadd.xlane.f32.xlu1 %v1818_v28 }
 0x5a7   : > { %2392 = vmatpush3.bf16.msra.mxu1 %v2501_v50 }
 0x5a8   : > { %2393 = vmatprep.subr.bf16.mxu1 %v2704_v0 }
 0x5ab   : > { %2394 = vmatpush3.bf16.msra.mxu1 %v2502_v61 }
 0x5ac   : > { %2395 = vmatprep.subr.bf16.mxu1 %v2704_v0  ;;  %v2239_v0 = vld [vmem:[%s3295_s10] ss:$0 sm:$0xff] }
 0x5af   : > { %2396 = vmatpush3.bf16.msra.mxu1 %v2503_v62 }
 0x632   : > { %v1820_v44 = vpop.xlane.xlu1 %1819 }
 0x633   : > { %v1822_v46 = vmul.f32 0.03125, %v1820_v44 }
 0x635   : > { %v1823_v47 = vsub.f32 %v1817_v27, %v1822_v46 }
 0x637   : > { %v1824_v48 = vmul.f32 %v1823_v47, %v1823_v47 }
 0x639   : > { %v1825_v43 = vsel %vm604_vm1, %v1824_v48, 0.0 }
 0x63a   : > { %1826 = vadd.xlane.f32.xlu0 %v1825_v43 }
 0x6c7   : > { %v1827_v51 = vpop.xlane.xlu0 %1826 }
 0x6c8   : > { %v1828_v52 = vmul.f32 0.03125, %v1827_v51 }
 0x6ca   : > { %v1829_v53 = vadd.f32 1e-05, %v1828_v52 }
 0x6cc   : > { %2520 = vrsqrt.f32 %v1829_v53 }
 0x6d6   : > { %v2521_v54 = vpop.eup %2520 }
 0x6d7   : > { %v1831_v56 = vmul.f32 %v2521_v54, %v1823_v47 }
 0x6d9   : > { %v1839_v58 = vmul.f32 %v2233_v55, %v1831_v56 }
 0x6db   : > { %v1847_v59 = vadd.f32 %v2234_v57, %v1839_v58 }
 0x6dd   : > { %v1848_v60 = vpack.c.bf16 %v1847_v59, %v1847_v59 }
 0x6df   : > { %2386 = vmatmul.mubr.msk.bf16.vlgmr.msra.gmra.mrb[28].mxu0 %vm604_vm1, %v1848_v60 }
 0x7b2   : > { %v1909_v1 = vpop.f32.mrb[28].mxu0 }
 0x7b3   : > { %v1910_v2 = vadd.f32 %v2235_v63, %v1909_v1  ;;  %v2387_v3 = vpop.f32.mrb[29].mxu0 }
 0x7b4   : > { %v1912_v4 = vpop.f32.mrb[30].mxu0 }
 0x7b5   : > { %v1915_v6 = vmax.f32 %v1910_v2, 0.0  ;;  %v2388_v7 = vpop.f32.mrb[31].mxu0 }
 0x7b7   : > { %v1916_v8 = vpack.c.bf16 %v1915_v6, %v1915_v6 }
 0x7b9   : > { %2398 = vmatmul.mubr.msk.bf16.vlgmr.msra.gmra.mrb[28].mxu1 %vm1956_vm5, %v1916_v8 }
 0x88c   : > { %v1994_v9 = vpop.f32.mrb[28].mxu1 }
 0x88d   : > { %v1995_v11 = vadd.f32 %v2239_v0, %v1994_v9  ;;  %v2399_v12 = vpop.f32.mrb[29].mxu1 }
 0x88e   : > { %v1997_v13 = vpop.f32.mrb[30].mxu1 }
 0x88f   : > { %v2400_v14 = vpop.f32.mrb[31].mxu1  ;;  %v2000_v15 = vadd.f32 %v1995_v11, %v1847_v59 }
 0x891   : > { %v2001_v16 = vsel %vm604_vm1, %v2000_v15, 0.0 }
 0x892   : > { %2002 = vadd.xlane.f32.xlu1 %v2001_v16 }
 0x91f   : > { %v2003_v17 = vpop.xlane.xlu1 %2002 }
 0x920   : > { %v2004_v18 = vmul.f32 0.03125, %v2003_v17 }
 0x922   : > { %v2005_v19 = vsub.f32 %v2000_v15, %v2004_v18 }
 0x924   : > { %v2006_v20 = vmul.f32 %v2005_v19, %v2005_v19 }
 0x926   : > { %v2007_v21 = vsel %vm604_vm1, %v2006_v20, 0.0 }
 0x927   : > { %2008 = vadd.xlane.f32.xlu0 %v2007_v21 }
 0x928   : > { %2593 = shalt.err (!%p2590_p6)
}
 0x929   : > { %s2594_s27 = scalar_lea.hbm %s3199_s21, 256  ;;  %s2598_s13 = scalar_lea.hbm %s3338_s29, 512 }
 0x92a   : > { %p2595_p7 = scmp.ne.s32.totalorder %s3199_s21, %s2594_s27  ;;  %p2599_p0 = scmp.lt.u32.totalorder %s3199_s21, %s3338_s29 }
 0x92b   : > { %p2600_p4 = scmp.lt.u32.totalorder %s2598_s13, %s2594_s27  ;;  %p2602_p13 = scmp.lt.u32.totalorder %s2594_s27, %s3199_s21 }
 0x92c   : > { %p2596_p9 = pnand %p2595_p7, %p3339_p8 }
 0x92d   : > { %p2601_p1 = por %p2600_p4, %p2599_p0 }
 0x92e   : > { %p2597_p12 = pneg %p2596_p9 }
 0x92f   : > { %p2603_p10 = por %p2602_p13, %p2601_p1 }
 0x931   : > { %p2604_p11 = pnand %p2603_p10, %p2597_p12 }
 0x933   : > { %2607 = shalt.err (!%p2604_p11)
}
 0x934   : > { %s2713_s25 = smov 64   ;;  %s2714_s26 = smov 4  }
 0x935   : > { %2410 = dma.vmem_to_hbm [thread:$0]  (%p3339_p8), %s3194_s17, 256, %s3199_s21, %s2037_s20, %s2713_s25, %s2713_s25, %s2714_s26  }
 0x936   : > { %s2203_s15 = sshll.u32 %s3102_s18, 3  ;;  %s3340_s27 = sld [smem:[#allocation25_spill]] }
 0x937   : > { %s3341_s13 = sld [smem:[#allocation26_spill]]  ;;  %s2249_s14 = sshll.u32 %s2690_s24, 7 }
 0x938   : > { %s562_s16 = scalar_lea.vmem [#allocation9], %s2203_s15  ;;  %s3342_s25 = sld [smem:[#allocation27_spill]] }
 0x939   : > { %s2051_s17 = sshll.u32 %s562_s16, 4  ;;  %s2032_s19 = scalar_lea.sflag [#allocation6], %s3102_s18  ;;  %s3238_s17 = int_to_ptr.vmem [resolvable:$true] %s2051_s17 }
 0x93a   : > { %s2608_s23 = scalar_lea.vmem %s3238_s17, 128  ;;  %s2715_s24 = smov [#allocation9]  }
 0x93b   : > { %p2609_p2 = scmp.ne.s32.totalorder %s3238_s17, %s2608_s23  ;;  %s2612_s15 = sshll.u32 %s2715_s24, 4  ;;  %s2613_s15 = int_to_ptr.vmem [resolvable:$false] %s2612_s15 }
 0x93c   : > { %v2245_v30 = vld [vmem:[%s3340_s27] ss:$0 sm:$0xff]  ;;  %s2614_s27 = scalar_lea.vmem %s2613_s15, 256  ;;  %p2615_p6 = scmp.lt.s32.totalorder %s3238_s17, %s2613_s15 }
 0x93d   : > { %v2246_v29 = vld [vmem:[%s3341_s13] ss:$0 sm:$0xff]  ;;  %p2610_p3 = pnand %p2609_p2, %p3339_p8  ;;  %p2616_p7 = scmp.lt.s32.totalorder %s2614_s27, %s2608_s23 }
 0x93e   : > { %s3343_s1 = smov %s3342_s25  ;;  %s3236_s26 = scalar_lea.hbm %s3342_s25, %s2249_s14 }
 0x93f   : > { %p2611_p5 = pneg %p2610_p3  ;;  %p2617_p9 = por %p2616_p7, %p2615_p6 }
 0x941   : > { %p2618_p12 = pnand %p2617_p9, %p2611_p5 }
 0x9b4   : > { %v2009_v22 = vpop.xlane.xlu0 %2008 }
 0x9b5   : > { %v2010_v23 = vmul.f32 0.03125, %v2009_v22 }
 0x9b7   : > { %v2011_v24 = vadd.f32 1e-05, %v2010_v23 }
 0x9b9   : > { %2522 = vrsqrt.f32 %v2011_v24 }
 0x9c3   : > { %v2523_v25 = vpop.eup %2522 }
 0x9c4   : > { %v2013_v26 = vmul.f32 %v2523_v25, %v2005_v19 }
 0x9c6   : > { %v2021_v31 = vmul.f32 %v2245_v30, %v2013_v26 }
 0x9c8   : > { %v2029_v32 = vadd.f32 %v2246_v29, %v2021_v31 }
 0x9ca   : > { %2030 = vst.msk [vmem:[%s562_s16] sm:$0xff] %vm604_vm1, %v2029_v32 }
 0x9cb   : > { %2621 = shalt.err (!%p2618_p12)
}
 0x9cc   : > { %s2622_s18 = scalar_lea.hbm %s3236_s26, 128  ;;  %s2626_s13 = scalar_lea.hbm %s3343_s1, 256 }
 0x9cd   : > { %p2623_p0 = scmp.ne.s32.totalorder %s3236_s26, %s2622_s18  ;;  %p2627_p13 = scmp.lt.u32.totalorder %s3236_s26, %s3343_s1 }
 0x9ce   : > { %p2628_p10 = scmp.lt.u32.totalorder %s2626_s13, %s2622_s18  ;;  %p2630_p2 = scmp.lt.u32.totalorder %s2622_s18, %s3236_s26 }
 0x9cf   : > { %p2624_p4 = pnand %p2623_p0, %p3339_p8 }
 0x9d0   : > { %p2629_p11 = por %p2628_p10, %p2627_p13 }
 0x9d1   : > { %p2625_p1 = pneg %p2624_p4 }
 0x9d2   : > { %p2631_p3 = por %p2630_p2, %p2629_p11 }
 0x9d4   : > { %p2632_p5 = pnand %p2631_p3, %p2625_p1 }
 0x9d6   : > { %2635 = shalt.err (!%p2632_p5)
}
 0x9d7   : > { %2409 = dma.vmem_to_hbm [thread:$0]  (%p3339_p8), %s3238_s17, 128, %s3236_s26, %s2032_s19  }
 0x9d8 PF: > { %s3344_s21 = sld [smem:[#allocation19_spill]]  ;;  %s3345_s20 = sld [smem:[#allocation16_spill]] }
 0x9d9   : > { %s3346_s25 = sld [smem:[#allocation21_spill]] }
 0x9de   : > { %p2431_p6 = scmp.ge.s32.totalorder %s3344_s21, 2  ;;  %s2080_s23 = sand.u32 1, %s3345_s20  }
 0x9df   : > { %p3347_p7 = scmp.ne.s32.totalorder %s3346_s25, 0  ;;  %s2081_s24 = scalar_lea.sflag [#allocation6], %s2080_s23 }
 0x9e1   : > { %p2421_p9 = pnand %p2431_p6, %p3347_p7 }
 0x9e3   : > { %2669 = dma.done.wait (!%p2421_p9), %s2081_s24, 128  }
 0x9e4   : > { %2671 = vsyncadd (!%p2421_p9), %s2081_s24, 4294967168  ;;  %s2090_s15 = scalar_lea.sflag [#allocation11], %s2080_s23 }
 0x9e5   : > { %2673 = dma.done.wait (!%p2421_p9), %s2090_s15, 256  }
 0x9e6   : > { %2675 = vsyncadd (!%p2421_p9), %s2090_s15, 4294967040  ;;  %s35_s26 = sadd.s32 1, %s3344_s21   ;;  %s3348_s0 = sld [smem:[#allocation17_spill]] }
 0x9e7   : > { %p32_p12 = scmp.ge.s32.totalorder %s35_s26, 4   ;;  %s3349_s23 = sld [smem:[#allocation22_spill]] }
 0x9e8   : > { %s3350_s24 = sld [smem:[#allocation18_spill]]  ;;  %s3351_s25 = sld [smem:[#allocation20_spill]] }
 0x9e9   : > { %s3352_s21 = smov %s2682_s22  ;;  %34 = sbr.rel (!%p32_p12) target bundleno = 15 (0xf), region = 149 }
 0x9ec   : > { %s3353_s22 = smov %s3348_s0 }
 0x9f0   :  { %2095 = vsyncpa [#allocation5], 1 }
 0x9f1   :  { %2097 = vsyncpa [#allocation5 + $0x1], 1 }
 0x9f2   :  { %2098 = vsyncpa [#allocation8], 1 }
 0x9f3   :  { %2099 = vsyncpa [#allocation6], 1 }
 0x9f4   :  { %2101 = vsyncpa [#allocation6 + $0x1], 1 }
 0x9f5   :  { %2102 = vsyncpa [#allocation11], 1 }
 0x9f6   :  { %2104 = vsyncpa [#allocation11 + $0x1], 1 }

</bundles_post_ra>
